<compile_context>
chip_gen: v6e
topology: v6e:2x2x1
jax: 0.10.0
libtpu: 0.0.40
codegen_flags: <defaults>
</compile_context>

<pallas_src>
import functools

import jax
import jax.numpy as jnp
from jax.experimental import pallas as pl
from jax.experimental.pallas import tpu as pltpu

LANE = 128     # TPU lane width: channel padding target
_W_OFF = 8     # column where un-padded data starts inside the padded VMEM
               # scratch (sublane-aligned so interior stores are unmasked)

_COMPILER_PARAMS = pltpu.CompilerParams(
    dimension_semantics=("parallel",),
    vmem_limit_bytes=32 * 1024 * 1024,
)


# --------------------------------- kernel ----------------------------------- #

def _fused_kernel(xcol_ref,
                  stem_w_ref, stem_s_ref, stem_b_ref,
                  down_w_ref, down_s_ref, down_b_ref,
                  mid_w_ref, mid_s_ref, mid_b_ref,
                  up_w_ref, up_s_ref, up_b_ref,
                  out_w_ref, out_b_ref,
                  o_ref,
                  xpad_big_ref, xpad_sml_ref, col_s_ref, col_l_ref, skip_ref):
    """stem -> down(stride2) -> mid -> 2x up + up-conv -> skip add -> conv1x1."""
    _, H, W, C = o_ref.shape
    Ho, Wo = H // 2, W // 2

    # Zero the padded scratches (borders only are ever *read* as zeros; interiors
    # are fully overwritten before every use).  See header note for why this is
    # unconditional rather than program_id==0-gated.
    xpad_big_ref[...] = jnp.zeros(xpad_big_ref.shape, xpad_big_ref.dtype)
    xpad_sml_ref[...] = jnp.zeros(xpad_sml_ref.shape, xpad_sml_ref.dtype)

    def conv3x3(xpad_ref, col_ref, ho, wo, w_ref, s_ref, b_ref, stride):
        """3x3 conv (pad=1) + folded BN + ReLU from an already-padded scratch."""
        for dy in range(3):
            for dx in range(3):
                t = dy * 3 + dx
                c0 = _W_OFF - 1 + dx
                if stride == 1:
                    patch = xpad_ref[dy:dy + ho, c0:c0 + wo, :]
                else:
                    patch = xpad_ref[pl.ds(dy, ho, stride), pl.ds(c0, wo, stride), :]
                # direct 3-D, 128-lane-aligned store (no per-tap reshape copy)
                col_ref[:, :, t * C:(t + 1) * C] = patch
        lhs = col_ref[...].reshape(ho * wo, 9 * C).astype(jnp.bfloat16)
        y = jnp.dot(lhs, w_ref[...], preferred_element_type=jnp.float32)
        return jnp.maximum(y * s_ref[...] + b_ref[...], 0.0)       # f32 epilogue

    # ---- stem: dense-K (host-packed im2col) matmul + BN + ReLU -------------- #
    xcol = xcol_ref[0].reshape(H * W, C).astype(jnp.bfloat16)
    x = jnp.dot(xcol, stem_w_ref[...], preferred_element_type=jnp.float32)
    x = jnp.maximum(x * stem_s_ref[...] + stem_b_ref[...], 0.0)    # (H*W, C) f32
    x3 = x.reshape(H, W, C)
    skip_ref[...] = x3                                             # keep for skip

    # ---- down: conv3x3 stride-2 + BN + ReLU (stride-2 reads, no subsample) -- #
    xpad_big_ref[1:H + 1, _W_OFF:_W_OFF + W, :] = x3
    d = conv3x3(xpad_big_ref, col_s_ref, Ho, Wo,
                down_w_ref, down_s_ref, down_b_ref, stride=2)

    # ---- mid: conv3x3 stride-1 + BN + ReLU ---------------------------------- #
    xpad_sml_ref[1:Ho + 1, _W_OFF:_W_OFF + Wo, :] = d.reshape(Ho, Wo, C)
    d = conv3x3(xpad_sml_ref, col_s_ref, Ho, Wo,
                mid_w_ref, mid_s_ref, mid_b_ref, stride=1)

    # ---- nearest-2x upsample, written straight into the up-conv pad scratch - #
    d3 = d.reshape(Ho, Wo, C)
    # row doubling: pure leading-dim broadcast + reshape (layout-free)
    dup = jnp.broadcast_to(d3[:, None, :, :], (Ho, 2, Wo, C)).reshape(H, Wo, C)
    # column doubling: per source column, one size-1 sublane broadcast + store
    for b in range(Wo):   # TODO(synk): replace with tiled relayout at prod W
        xpad_big_ref[1:H + 1, _W_OFF + 2 * b:_W_OFF + 2 * b + 2, :] = (
            jnp.broadcast_to(dup[:, b:b + 1, :], (H, 2, C)))

    # ---- up: conv3x3 stride-1 + BN + ReLU ------------------------------------ #
    y = conv3x3(xpad_big_ref, col_l_ref, H, W,
                up_w_ref, up_s_ref, up_b_ref, stride=1)

    # ---- skip add + conv_out (1x1 + bias) ------------------------------------ #
    y = y + skip_ref[...].reshape(H * W, C)
    z = jnp.dot(y.astype(jnp.bfloat16), out_w_ref[...],
                preferred_element_type=jnp.float32) + out_b_ref[...]
    o_ref[0] = z.reshape(H, W, C)


# ------------------------------ host wrapper -------------------------------- #

def fused_forward(xcol, packed):
    """xcol: (B, H, W, 128) f32 host-packed stem im2col. Returns (B,H,W,128) f32."""
    B, H, W, C = xcol.shape
    Ho, Wo = H // 2, W // 2
    pad_w_big = W + 2 * _W_OFF
    pad_w_sml = Wo + 2 * _W_OFF

    def full2(r, c):
        return pl.BlockSpec((r, c), lambda b: (0, 0))

    in_specs = [
        pl.BlockSpec((1, H, W, C), lambda b: (b, 0, 0, 0)),          # xcol
        full2(C, C), full2(1, C), full2(1, C),                       # stem
        full2(9 * C, C), full2(1, C), full2(1, C),                   # down
        full2(9 * C, C), full2(1, C), full2(1, C),                   # mid
        full2(9 * C, C), full2(1, C), full2(1, C),                   # up
        full2(C, C), full2(1, C),                                    # conv_out
    ]
    return pl.pallas_call(
        _fused_kernel,
        out_shape=jax.ShapeDtypeStruct((B, H, W, C), jnp.float32),
        grid=(B,),
        in_specs=in_specs,
        out_specs=pl.BlockSpec((1, H, W, C), lambda b: (b, 0, 0, 0)),
        scratch_shapes=[
            pltpu.VMEM((H + 2, pad_w_big, C), jnp.float32),    # padded x / u
            pltpu.VMEM((Ho + 2, pad_w_sml, C), jnp.float32),   # padded d
            pltpu.VMEM((Ho, Wo, 9 * C), jnp.float32),          # im2col (small)
            pltpu.VMEM((H, W, 9 * C), jnp.float32),            # im2col (large)
            pltpu.VMEM((H, W, C), jnp.float32),                # stem output (skip)
        ],
        compiler_params=_COMPILER_PARAMS,
    )(xcol,
      packed["stem_w"], packed["stem_s"], packed["stem_b"],
      packed["down_w"], packed["down_s"], packed["down_b"],
      packed["mid_w"], packed["mid_s"], packed["mid_b"],
      packed["up_w"], packed["up_s"], packed["up_b"],
      packed["out_w"], packed["out_b"])


# -------------------------------- parameters -------------------------------- #

def _fold_bn(gamma, beta, mean, var, eps=1e-5):
    scale = gamma / jnp.sqrt(var + eps)
    return scale, beta - mean * scale


def init_params(key, in_channels, out_channels):
    """Same (un-padded) parameterization as the reference module."""
    c = out_channels
    ks = jax.random.split(key, 10)

    def conv_w(k, cin, cout):
        return jax.random.normal(k, (3, 3, cin, cout), jnp.float32) * 0.1

    def bn(k, cout):
        k1, k2, k3 = jax.random.split(k, 3)
        gamma = 1.0 + 0.1 * jax.random.normal(k1, (cout,), jnp.float32)
        beta = 0.1 * jax.random.normal(k2, (cout,), jnp.float32)
        mean = 0.1 * jax.random.normal(k3, (cout,), jnp.float32)
        var = jnp.full((cout,), 0.5, jnp.float32)
        return _fold_bn(gamma, beta, mean, var)

    p = {}
    p["stem_w"] = conv_w(ks[0], in_channels, c)
    p["stem_s"], p["stem_b"] = bn(ks[1], c)
    p["down_w"] = conv_w(ks[2], c, 2 * c)
    p["down_s"], p["down_b"] = bn(ks[3], 2 * c)
    p["mid_w"] = conv_w(ks[4], 2 * c, 2 * c)
    p["mid_s"], p["mid_b"] = bn(ks[5], 2 * c)
    p["up_w"] = conv_w(ks[6], 2 * c, c)
    p["up_s"], p["up_b"] = bn(ks[7], c)
    p["out_w"] = jax.random.normal(ks[8], (c, c), jnp.float32) * 0.1
    p["out_b"] = jax.random.normal(ks[9], (c,), jnp.float32) * 0.1
    return p


def _pad_vec(v, lane=LANE):
    return jnp.pad(v, (0, lane - v.shape[0])).reshape(1, lane).astype(jnp.float32)


def _pack_conv3x3(w_hwio, scale, bias, lane=LANE):
    """Pad Cin/Cout to the 128-lane width; rows are (tap, cin)-major."""
    _, _, cin, cout = w_hwio.shape
    w = jnp.pad(w_hwio, ((0, 0), (0, 0), (0, lane - cin), (0, lane - cout)))
    w = w.reshape(9 * lane, lane).astype(jnp.bfloat16)
    return w, _pad_vec(scale, lane), _pad_vec(bias, lane)


def _pack_stem_dense(w_hwio, scale, bias, lane=LANE):
    """Dense-K stem: 9 taps x Cin_real packed into one 128-lane group."""
    kh, kw, cin, cout = w_hwio.shape
    w = w_hwio.reshape(kh * kw * cin, cout)                    # (tap,cin)-major
    w = jnp.pad(w, ((0, lane - kh * kw * cin), (0, lane - cout)))
    return w.astype(jnp.bfloat16), _pad_vec(scale, lane), _pad_vec(bias, lane)


def pack_params(p, lane=LANE):
    """Channel-pad to the 128-lane width and fold into bf16 matmul form.

    Padded output channels get scale=0 / bias=0, so they stay exactly zero
    through every layer and are sliced away at the end.
    """
    q = {}
    q["stem_w"], q["stem_s"], q["stem_b"] = _pack_stem_dense(
        p["stem_w"], p["stem_s"], p["stem_b"], lane)
    for name in ("down", "mid", "up"):
        q[name + "_w"], q[name + "_s"], q[name + "_b"] = _pack_conv3x3(
            p[name + "_w"], p[name + "_s"], p[name + "_b"], lane)
    c = p["out_w"].shape[0]
    q["out_w"] = jnp.pad(p["out_w"],
                         ((0, lane - c), (0, lane - c))).astype(jnp.bfloat16)
    q["out_b"] = _pad_vec(p["out_b"], lane)
    return q


def _stem_im2col(x_nchw, lane=LANE):
    """Host-side layout packing: NCHW -> NHWC, 3x3 taps concatenated on lanes.

    HBM traffic into the kernel is identical to the old zero-padded NHWC input
    (lane-128 f32), but the stem contraction becomes K=128 instead of K=1152.
    """
    B, Cin, H, W = x_nchw.shape
    x = jnp.transpose(x_nchw, (0, 2, 3, 1)).astype(jnp.float32)    # (B,H,W,Cin)
    xp = jnp.pad(x, ((0, 0), (1, 1), (1, 1), (0, 0)))
    taps = [xp[:, dy:dy + H, dx:dx + W, :]
            for dy in range(3) for dx in range(3)]
    xcol = jnp.concatenate(taps, axis=-1)                          # (B,H,W,9*Cin)
    return jnp.pad(xcol, ((0, 0), (0, 0), (0, 0), (0, lane - 9 * Cin)))


# ---------------------------------- forward --------------------------------- #

def depth_volume_encoder(x_nchw, packed, *, out_channels):
    """Mirrors DepthVolumeEncoder.forward: stem -> SimpleUnet -> conv_out."""
    B, Cin, H, W = x_nchw.shape
    assert 9 * Cin <= LANE, "dense-K stem packing requires 9*in_channels <= 128"
    assert 2 * out_channels <= LANE
    assert H % 2 == 0 and W % 16 == 0, "even H, W multiple of 16 required"

    xcol = _stem_im2col(x_nchw)                    # (B, H, W, 128) f32
    y = fused_forward(xcol, packed)                # (B, H, W, 128) f32
    # Drop channel padding, NHWC -> NCHW.
    return jnp.transpose(y[..., :out_channels], (0, 3, 1, 2))


# ------------------------------------ main ----------------------------------- #

if __name__ == "__main__":
    B, in_channels, out_channels, H, W = 2, 8, 16, 16, 16
    key = jax.random.PRNGKey(0)
    kx, kp = jax.random.split(key)

    x = jax.random.normal(kx, (B, in_channels, H, W), jnp.float32)
    params = init_params(kp, in_channels, out_channels)
    packed = pack_params(params)

    fwd = jax.jit(functools.partial(depth_volume_encoder,
                                    out_channels=out_channels))
    out = jax.block_until_ready(fwd(x, packed))

    assert out.shape == (B, out_channels, H, W), out.shape
    assert out.dtype == jnp.float32
    assert bool(jnp.all(jnp.isfinite(out)))
    print("KERNEL_OK")
</pallas_src>

<mosaic_0001>
module attributes {stable_mosaic.version = 11 : i64} {
  func.func @_fused_kernel(%arg0: i32, %arg1: memref<1x16x16x128xf32, #tpu.memory_space<vmem>>, %arg2: memref<128x128xbf16, #tpu.memory_space<vmem>>, %arg3: memref<1x128xf32, #tpu.memory_space<vmem>>, %arg4: memref<1x128xf32, #tpu.memory_space<vmem>>, %arg5: memref<1152x128xbf16, #tpu.memory_space<vmem>>, %arg6: memref<1x128xf32, #tpu.memory_space<vmem>>, %arg7: memref<1x128xf32, #tpu.memory_space<vmem>>, %arg8: memref<1152x128xbf16, #tpu.memory_space<vmem>>, %arg9: memref<1x128xf32, #tpu.memory_space<vmem>>, %arg10: memref<1x128xf32, #tpu.memory_space<vmem>>, %arg11: memref<1152x128xbf16, #tpu.memory_space<vmem>>, %arg12: memref<1x128xf32, #tpu.memory_space<vmem>>, %arg13: memref<1x128xf32, #tpu.memory_space<vmem>>, %arg14: memref<128x128xbf16, #tpu.memory_space<vmem>>, %arg15: memref<1x128xf32, #tpu.memory_space<vmem>>, %arg16: memref<1x16x16x128xf32, #tpu.memory_space<vmem>>, %arg17: memref<18x32x128xf32, #tpu.memory_space<vmem>>, %arg18: memref<10x24x128xf32, #tpu.memory_space<vmem>>, %arg19: memref<8x8x1152xf32, #tpu.memory_space<vmem>>, %arg20: memref<16x16x1152xf32, #tpu.memory_space<vmem>>, %arg21: memref<16x16x128xf32, #tpu.memory_space<vmem>>) attributes {dimension_semantics = [#tpu.dimension_semantics<parallel>], iteration_bounds = array<i64: 2>, scalar_prefetch = 0 : i64, scratch_operands = 5 : i64, tpu.core_type = #tpu.core_type<tc>, window_params = [{transform_indices = @transform_0, window_bounds = array<i64: 1, 16, 16, 128>}, {pipeline_mode = #tpu.pipeline_mode<synchronous>, transform_indices = @transform_1, window_bounds = array<i64: 128, 128>}, {pipeline_mode = #tpu.pipeline_mode<synchronous>, transform_indices = @transform_2, window_bounds = array<i64: 1, 128>}, {pipeline_mode = #tpu.pipeline_mode<synchronous>, transform_indices = @transform_3, window_bounds = array<i64: 1, 128>}, {pipeline_mode = #tpu.pipeline_mode<synchronous>, transform_indices = @transform_4, window_bounds = array<i64: 1152, 128>}, {pipeline_mode = #tpu.pipeline_mode<synchronous>, transform_indices = @transform_5, window_bounds = array<i64: 1, 128>}, {pipeline_mode = #tpu.pipeline_mode<synchronous>, transform_indices = @transform_6, window_bounds = array<i64: 1, 128>}, {pipeline_mode = #tpu.pipeline_mode<synchronous>, transform_indices = @transform_7, window_bounds = array<i64: 1152, 128>}, {pipeline_mode = #tpu.pipeline_mode<synchronous>, transform_indices = @transform_8, window_bounds = array<i64: 1, 128>}, {pipeline_mode = #tpu.pipeline_mode<synchronous>, transform_indices = @transform_9, window_bounds = array<i64: 1, 128>}, {pipeline_mode = #tpu.pipeline_mode<synchronous>, transform_indices = @transform_10, window_bounds = array<i64: 1152, 128>}, {pipeline_mode = #tpu.pipeline_mode<synchronous>, transform_indices = @transform_11, window_bounds = array<i64: 1, 128>}, {pipeline_mode = #tpu.pipeline_mode<synchronous>, transform_indices = @transform_12, window_bounds = array<i64: 1, 128>}, {pipeline_mode = #tpu.pipeline_mode<synchronous>, transform_indices = @transform_13, window_bounds = array<i64: 128, 128>}, {pipeline_mode = #tpu.pipeline_mode<synchronous>, transform_indices = @transform_14, window_bounds = array<i64: 1, 128>}, {transform_indices = @transform_15, window_bounds = array<i64: 1, 16, 16, 128>}]} {
    %cst = arith.constant 0.000000e+00 : f32
    %0 = vector.broadcast %cst : f32 to vector<18x32x128xf32>
    %c0 = arith.constant 0 : index
    %c0_0 = arith.constant 0 : index
    %c0_1 = arith.constant 0 : index
    %1 = vector.load %arg17[%c0, %c0_0, %c0_1] : memref<18x32x128xf32, #tpu.memory_space<vmem>>, vector<18x32x128xf32>
    tpu.vector_store %arg17[%c0, %c0_0, %c0_1], %0 {strides = array<i32>} : memref<18x32x128xf32, #tpu.memory_space<vmem>>, vector<18x32x128xf32>,
    %cst_2 = arith.constant 0.000000e+00 : f32
    %2 = vector.broadcast %cst_2 : f32 to vector<10x24x128xf32>
    %c0_3 = arith.constant 0 : index
    %c0_4 = arith.constant 0 : index
    %c0_5 = arith.constant 0 : index
    %3 = vector.load %arg18[%c0_3, %c0_4, %c0_5] : memref<10x24x128xf32, #tpu.memory_space<vmem>>, vector<10x24x128xf32>
    tpu.vector_store %arg18[%c0_3, %c0_4, %c0_5], %2 {strides = array<i32>} : memref<10x24x128xf32, #tpu.memory_space<vmem>>, vector<10x24x128xf32>,
    %c0_6 = arith.constant 0 : index
    %c0_7 = arith.constant 0 : index
    %c0_8 = arith.constant 0 : index
    %c0_9 = arith.constant 0 : index
    %4 = vector.load %arg1[%c0_6, %c0_7, %c0_8, %c0_9] : memref<1x16x16x128xf32, #tpu.memory_space<vmem>>, vector<1x16x16x128xf32>
    %5 = vector.shape_cast %4 : vector<1x16x16x128xf32> to vector<16x16x128xf32>
    %6 = vector.shape_cast %5 : vector<16x16x128xf32> to vector<256x128xf32>
    %7 = arith.truncf %6 : vector<256x128xf32> to vector<256x128xbf16>
    %c0_10 = arith.constant 0 : index
    %c0_11 = arith.constant 0 : index
    %8 = vector.load %arg2[%c0_10, %c0_11] : memref<128x128xbf16, #tpu.memory_space<vmem>>, vector<128x128xbf16>
    %cst_12 = arith.constant dense<0.000000e+00> : vector<256x128xf32>
    %9 = tpu.matmul %7, %8, %cst_12 {dimension_numbers = #tpu.dot_dimension_numbers<[1], [0], [0], [1], [0, 0, 1, 1], [], []>} : vector<256x128xbf16>, vector<128x128xbf16>, vector<256x128xf32> -> vector<256x128xf32>
    %c0_13 = arith.constant 0 : index
    %c0_14 = arith.constant 0 : index
    %10 = vector.load %arg3[%c0_13, %c0_14] : memref<1x128xf32, #tpu.memory_space<vmem>>, vector<1x128xf32>
    %11 = vector.broadcast %10 : vector<1x128xf32> to vector<256x128xf32>
    %12 = arith.mulf %9, %11 : vector<256x128xf32>
    %c0_15 = arith.constant 0 : index
    %c0_16 = arith.constant 0 : index
    %13 = vector.load %arg4[%c0_15, %c0_16] : memref<1x128xf32, #tpu.memory_space<vmem>>, vector<1x128xf32>
    %14 = vector.broadcast %13 : vector<1x128xf32> to vector<256x128xf32>
    %15 = arith.addf %12, %14 : vector<256x128xf32>
    %cst_17 = arith.constant 0.000000e+00 : f32
    %16 = vector.broadcast %cst_17 : f32 to vector<256x128xf32>
    %17 = arith.maximumf %15, %16 : vector<256x128xf32>
    %18 = vector.shape_cast %17 : vector<256x128xf32> to vector<16x16x128xf32>
    %c0_18 = arith.constant 0 : index
    %c0_19 = arith.constant 0 : index
    %c0_20 = arith.constant 0 : index
    %19 = vector.load %arg21[%c0_18, %c0_19, %c0_20] : memref<16x16x128xf32, #tpu.memory_space<vmem>>, vector<16x16x128xf32>
    tpu.vector_store %arg21[%c0_18, %c0_19, %c0_20], %18 {strides = array<i32>} : memref<16x16x128xf32, #tpu.memory_space<vmem>>, vector<16x16x128xf32>,
    %c1 = arith.constant 1 : index
    %c8 = arith.constant 8 : index
    %c0_21 = arith.constant 0 : index
    %20 = vector.load %arg17[%c1, %c8, %c0_21] : memref<18x32x128xf32, #tpu.memory_space<vmem>>, vector<16x16x128xf32>
    tpu.vector_store %arg17[%c1, %c8, %c0_21], %18 {strides = array<i32>} : memref<18x32x128xf32, #tpu.memory_space<vmem>>, vector<16x16x128xf32>,
    %c0_22 = arith.constant 0 : index
    %c7 = arith.constant 7 : index
    %c0_23 = arith.constant 0 : index
    %21 = tpu.strided_load %arg17[%c0_22, %c7, %c0_23] {strides = array<i32: 2, 2, 1>} : memref<18x32x128xf32, #tpu.memory_space<vmem>>, vector<8x8x128xf32>
    %c0_24 = arith.constant 0 : index
    %c0_25 = arith.constant 0 : index
    %c0_26 = arith.constant 0 : index
    %22 = vector.load %arg19[%c0_24, %c0_25, %c0_26] : memref<8x8x1152xf32, #tpu.memory_space<vmem>>, vector<8x8x128xf32>
    tpu.vector_store %arg19[%c0_24, %c0_25, %c0_26], %21 {strides = array<i32>} : memref<8x8x1152xf32, #tpu.memory_space<vmem>>, vector<8x8x128xf32>,
    %c0_27 = arith.constant 0 : index
    %c8_28 = arith.constant 8 : index
    %c0_29 = arith.constant 0 : index
    %23 = tpu.strided_load %arg17[%c0_27, %c8_28, %c0_29] {strides = array<i32: 2, 2, 1>} : memref<18x32x128xf32, #tpu.memory_space<vmem>>, vector<8x8x128xf32>
    %c0_30 = arith.constant 0 : index
    %c0_31 = arith.constant 0 : index
    %c128 = arith.constant 128 : index
    %24 = vector.load %arg19[%c0_30, %c0_31, %c128] : memref<8x8x1152xf32, #tpu.memory_space<vmem>>, vector<8x8x128xf32>
    tpu.vector_store %arg19[%c0_30, %c0_31, %c128], %23 {strides = array<i32>} : memref<8x8x1152xf32, #tpu.memory_space<vmem>>, vector<8x8x128xf32>,
    %c0_32 = arith.constant 0 : index
    %c9 = arith.constant 9 : index
    %c0_33 = arith.constant 0 : index
    %25 = tpu.strided_load %arg17[%c0_32, %c9, %c0_33] {strides = array<i32: 2, 2, 1>} : memref<18x32x128xf32, #tpu.memory_space<vmem>>, vector<8x8x128xf32>
    %c0_34 = arith.constant 0 : index
    %c0_35 = arith.constant 0 : index
    %c256 = arith.constant 256 : index
    %26 = vector.load %arg19[%c0_34, %c0_35, %c256] : memref<8x8x1152xf32, #tpu.memory_space<vmem>>, vector<8x8x128xf32>
    tpu.vector_store %arg19[%c0_34, %c0_35, %c256], %25 {strides = array<i32>} : memref<8x8x1152xf32, #tpu.memory_space<vmem>>, vector<8x8x128xf32>,
    %c1_36 = arith.constant 1 : index
    %c7_37 = arith.constant 7 : index
    %c0_38 = arith.constant 0 : index
    %27 = tpu.strided_load %arg17[%c1_36, %c7_37, %c0_38] {strides = array<i32: 2, 2, 1>} : memref<18x32x128xf32, #tpu.memory_space<vmem>>, vector<8x8x128xf32>
    %c0_39 = arith.constant 0 : index
    %c0_40 = arith.constant 0 : index
    %c384 = arith.constant 384 : index
    %28 = vector.load %arg19[%c0_39, %c0_40, %c384] : memref<8x8x1152xf32, #tpu.memory_space<vmem>>, vector<8x8x128xf32>
    tpu.vector_store %arg19[%c0_39, %c0_40, %c384], %27 {strides = array<i32>} : memref<8x8x1152xf32, #tpu.memory_space<vmem>>, vector<8x8x128xf32>,
    %c1_41 = arith.constant 1 : index
    %c8_42 = arith.constant 8 : index
    %c0_43 = arith.constant 0 : index
    %29 = tpu.strided_load %arg17[%c1_41, %c8_42, %c0_43] {strides = array<i32: 2, 2, 1>} : memref<18x32x128xf32, #tpu.memory_space<vmem>>, vector<8x8x128xf32>
    %c0_44 = arith.constant 0 : index
    %c0_45 = arith.constant 0 : index
    %c512 = arith.constant 512 : index
    %30 = vector.load %arg19[%c0_44, %c0_45, %c512] : memref<8x8x1152xf32, #tpu.memory_space<vmem>>, vector<8x8x128xf32>
    tpu.vector_store %arg19[%c0_44, %c0_45, %c512], %29 {strides = array<i32>} : memref<8x8x1152xf32, #tpu.memory_space<vmem>>, vector<8x8x128xf32>,
    %c1_46 = arith.constant 1 : index
    %c9_47 = arith.constant 9 : index
    %c0_48 = arith.constant 0 : index
    %31 = tpu.strided_load %arg17[%c1_46, %c9_47, %c0_48] {strides = array<i32: 2, 2, 1>} : memref<18x32x128xf32, #tpu.memory_space<vmem>>, vector<8x8x128xf32>
    %c0_49 = arith.constant 0 : index
    %c0_50 = arith.constant 0 : index
    %c640 = arith.constant 640 : index
    %32 = vector.load %arg19[%c0_49, %c0_50, %c640] : memref<8x8x1152xf32, #tpu.memory_space<vmem>>, vector<8x8x128xf32>
    tpu.vector_store %arg19[%c0_49, %c0_50, %c640], %31 {strides = array<i32>} : memref<8x8x1152xf32, #tpu.memory_space<vmem>>, vector<8x8x128xf32>,
    %c2 = arith.constant 2 : index
    %c7_51 = arith.constant 7 : index
    %c0_52 = arith.constant 0 : index
    %33 = tpu.strided_load %arg17[%c2, %c7_51, %c0_52] {strides = array<i32: 2, 2, 1>} : memref<18x32x128xf32, #tpu.memory_space<vmem>>, vector<8x8x128xf32>
    %c0_53 = arith.constant 0 : index
    %c0_54 = arith.constant 0 : index
    %c768 = arith.constant 768 : index
    %34 = vector.load %arg19[%c0_53, %c0_54, %c768] : memref<8x8x1152xf32, #tpu.memory_space<vmem>>, vector<8x8x128xf32>
    tpu.vector_store %arg19[%c0_53, %c0_54, %c768], %33 {strides = array<i32>} : memref<8x8x1152xf32, #tpu.memory_space<vmem>>, vector<8x8x128xf32>,
    %c2_55 = arith.constant 2 : index
    %c8_56 = arith.constant 8 : index
    %c0_57 = arith.constant 0 : index
    %35 = tpu.strided_load %arg17[%c2_55, %c8_56, %c0_57] {strides = array<i32: 2, 2, 1>} : memref<18x32x128xf32, #tpu.memory_space<vmem>>, vector<8x8x128xf32>
    %c0_58 = arith.constant 0 : index
    %c0_59 = arith.constant 0 : index
    %c896 = arith.constant 896 : index
    %36 = vector.load %arg19[%c0_58, %c0_59, %c896] : memref<8x8x1152xf32, #tpu.memory_space<vmem>>, vector<8x8x128xf32>
    tpu.vector_store %arg19[%c0_58, %c0_59, %c896], %35 {strides = array<i32>} : memref<8x8x1152xf32, #tpu.memory_space<vmem>>, vector<8x8x128xf32>,
    %c2_60 = arith.constant 2 : index
    %c9_61 = arith.constant 9 : index
    %c0_62 = arith.constant 0 : index
    %37 = tpu.strided_load %arg17[%c2_60, %c9_61, %c0_62] {strides = array<i32: 2, 2, 1>} : memref<18x32x128xf32, #tpu.memory_space<vmem>>, vector<8x8x128xf32>
    %c0_63 = arith.constant 0 : index
    %c0_64 = arith.constant 0 : index
    %c1024 = arith.constant 1024 : index
    %38 = vector.load %arg19[%c0_63, %c0_64, %c1024] : memref<8x8x1152xf32, #tpu.memory_space<vmem>>, vector<8x8x128xf32>
    tpu.vector_store %arg19[%c0_63, %c0_64, %c1024], %37 {strides = array<i32>} : memref<8x8x1152xf32, #tpu.memory_space<vmem>>, vector<8x8x128xf32>,
    %c0_65 = arith.constant 0 : index
    %c0_66 = arith.constant 0 : index
    %c0_67 = arith.constant 0 : index
    %39 = vector.load %arg19[%c0_65, %c0_66, %c0_67] : memref<8x8x1152xf32, #tpu.memory_space<vmem>>, vector<8x8x1152xf32>
    %40 = vector.shape_cast %39 : vector<8x8x1152xf32> to vector<64x1152xf32>
    %41 = arith.truncf %40 : vector<64x1152xf32> to vector<64x1152xbf16>
    %c0_68 = arith.constant 0 : index
    %c0_69 = arith.constant 0 : index
    %42 = vector.load %arg5[%c0_68, %c0_69] : memref<1152x128xbf16, #tpu.memory_space<vmem>>, vector<1152x128xbf16>
    %cst_70 = arith.constant dense<0.000000e+00> : vector<64x128xf32>
    %43 = tpu.matmul %41, %42, %cst_70 {dimension_numbers = #tpu.dot_dimension_numbers<[1], [0], [0], [1], [0, 0, 1, 1], [], []>} : vector<64x1152xbf16>, vector<1152x128xbf16>, vector<64x128xf32> -> vector<64x128xf32>
    %c0_71 = arith.constant 0 : index
    %c0_72 = arith.constant 0 : index
    %44 = vector.load %arg6[%c0_71, %c0_72] : memref<1x128xf32, #tpu.memory_space<vmem>>, vector<1x128xf32>
    %45 = vector.broadcast %44 : vector<1x128xf32> to vector<64x128xf32>
    %46 = arith.mulf %43, %45 : vector<64x128xf32>
    %c0_73 = arith.constant 0 : index
    %c0_74 = arith.constant 0 : index
    %47 = vector.load %arg7[%c0_73, %c0_74] : memref<1x128xf32, #tpu.memory_space<vmem>>, vector<1x128xf32>
    %48 = vector.broadcast %47 : vector<1x128xf32> to vector<64x128xf32>
    %49 = arith.addf %46, %48 : vector<64x128xf32>
    %cst_75 = arith.constant 0.000000e+00 : f32
    %50 = vector.broadcast %cst_75 : f32 to vector<64x128xf32>
    %51 = arith.maximumf %49, %50 : vector<64x128xf32>
    %52 = vector.shape_cast %51 : vector<64x128xf32> to vector<8x8x128xf32>
    %c1_76 = arith.constant 1 : index
    %c8_77 = arith.constant 8 : index
    %c0_78 = arith.constant 0 : index
    %53 = vector.load %arg18[%c1_76, %c8_77, %c0_78] : memref<10x24x128xf32, #tpu.memory_space<vmem>>, vector<8x8x128xf32>
    tpu.vector_store %arg18[%c1_76, %c8_77, %c0_78], %52 {strides = array<i32>} : memref<10x24x128xf32, #tpu.memory_space<vmem>>, vector<8x8x128xf32>,
    %c0_79 = arith.constant 0 : index
    %c7_80 = arith.constant 7 : index
    %c0_81 = arith.constant 0 : index
    %54 = vector.load %arg18[%c0_79, %c7_80, %c0_81] : memref<10x24x128xf32, #tpu.memory_space<vmem>>, vector<8x8x128xf32>
    %c0_82 = arith.constant 0 : index
    %c0_83 = arith.constant 0 : index
    %c0_84 = arith.constant 0 : index
    %55 = vector.load %arg19[%c0_82, %c0_83, %c0_84] : memref<8x8x1152xf32, #tpu.memory_space<vmem>>, vector<8x8x128xf32>
    tpu.vector_store %arg19[%c0_82, %c0_83, %c0_84], %54 {strides = array<i32>} : memref<8x8x1152xf32, #tpu.memory_space<vmem>>, vector<8x8x128xf32>,
    %c0_85 = arith.constant 0 : index
    %c8_86 = arith.constant 8 : index
    %c0_87 = arith.constant 0 : index
    %56 = vector.load %arg18[%c0_85, %c8_86, %c0_87] : memref<10x24x128xf32, #tpu.memory_space<vmem>>, vector<8x8x128xf32>
    %c0_88 = arith.constant 0 : index
    %c0_89 = arith.constant 0 : index
    %c128_90 = arith.constant 128 : index
    %57 = vector.load %arg19[%c0_88, %c0_89, %c128_90] : memref<8x8x1152xf32, #tpu.memory_space<vmem>>, vector<8x8x128xf32>
    tpu.vector_store %arg19[%c0_88, %c0_89, %c128_90], %56 {strides = array<i32>} : memref<8x8x1152xf32, #tpu.memory_space<vmem>>, vector<8x8x128xf32>,
    %c0_91 = arith.constant 0 : index
    %c9_92 = arith.constant 9 : index
    %c0_93 = arith.constant 0 : index
    %58 = vector.load %arg18[%c0_91, %c9_92, %c0_93] : memref<10x24x128xf32, #tpu.memory_space<vmem>>, vector<8x8x128xf32>
    %c0_94 = arith.constant 0 : index
    %c0_95 = arith.constant 0 : index
    %c256_96 = arith.constant 256 : index
    %59 = vector.load %arg19[%c0_94, %c0_95, %c256_96] : memref<8x8x1152xf32, #tpu.memory_space<vmem>>, vector<8x8x128xf32>
    tpu.vector_store %arg19[%c0_94, %c0_95, %c256_96], %58 {strides = array<i32>} : memref<8x8x1152xf32, #tpu.memory_space<vmem>>, vector<8x8x128xf32>,
    %c1_97 = arith.constant 1 : index
    %c7_98 = arith.constant 7 : index
    %c0_99 = arith.constant 0 : index
    %60 = vector.load %arg18[%c1_97, %c7_98, %c0_99] : memref<10x24x128xf32, #tpu.memory_space<vmem>>, vector<8x8x128xf32>
    %c0_100 = arith.constant 0 : index
    %c0_101 = arith.constant 0 : index
    %c384_102 = arith.constant 384 : index
    %61 = vector.load %arg19[%c0_100, %c0_101, %c384_102] : memref<8x8x1152xf32, #tpu.memory_space<vmem>>, vector<8x8x128xf32>
    tpu.vector_store %arg19[%c0_100, %c0_101, %c384_102], %60 {strides = array<i32>} : memref<8x8x1152xf32, #tpu.memory_space<vmem>>, vector<8x8x128xf32>,
    %c1_103 = arith.constant 1 : index
    %c8_104 = arith.constant 8 : index
    %c0_105 = arith.constant 0 : index
    %62 = vector.load %arg18[%c1_103, %c8_104, %c0_105] : memref<10x24x128xf32, #tpu.memory_space<vmem>>, vector<8x8x128xf32>
    %c0_106 = arith.constant 0 : index
    %c0_107 = arith.constant 0 : index
    %c512_108 = arith.constant 512 : index
    %63 = vector.load %arg19[%c0_106, %c0_107, %c512_108] : memref<8x8x1152xf32, #tpu.memory_space<vmem>>, vector<8x8x128xf32>
    tpu.vector_store %arg19[%c0_106, %c0_107, %c512_108], %62 {strides = array<i32>} : memref<8x8x1152xf32, #tpu.memory_space<vmem>>, vector<8x8x128xf32>,
    %c1_109 = arith.constant 1 : index
    %c9_110 = arith.constant 9 : index
    %c0_111 = arith.constant 0 : index
    %64 = vector.load %arg18[%c1_109, %c9_110, %c0_111] : memref<10x24x128xf32, #tpu.memory_space<vmem>>, vector<8x8x128xf32>
    %c0_112 = arith.constant 0 : index
    %c0_113 = arith.constant 0 : index
    %c640_114 = arith.constant 640 : index
    %65 = vector.load %arg19[%c0_112, %c0_113, %c640_114] : memref<8x8x1152xf32, #tpu.memory_space<vmem>>, vector<8x8x128xf32>
    tpu.vector_store %arg19[%c0_112, %c0_113, %c640_114], %64 {strides = array<i32>} : memref<8x8x1152xf32, #tpu.memory_space<vmem>>, vector<8x8x128xf32>,
    %c2_115 = arith.constant 2 : index
    %c7_116 = arith.constant 7 : index
    %c0_117 = arith.constant 0 : index
    %66 = vector.load %arg18[%c2_115, %c7_116, %c0_117] : memref<10x24x128xf32, #tpu.memory_space<vmem>>, vector<8x8x128xf32>
    %c0_118 = arith.constant 0 : index
    %c0_119 = arith.constant 0 : index
    %c768_120 = arith.constant 768 : index
    %67 = vector.load %arg19[%c0_118, %c0_119, %c768_120] : memref<8x8x1152xf32, #tpu.memory_space<vmem>>, vector<8x8x128xf32>
    tpu.vector_store %arg19[%c0_118, %c0_119, %c768_120], %66 {strides = array<i32>} : memref<8x8x1152xf32, #tpu.memory_space<vmem>>, vector<8x8x128xf32>,
    %c2_121 = arith.constant 2 : index
    %c8_122 = arith.constant 8 : index
    %c0_123 = arith.constant 0 : index
    %68 = vector.load %arg18[%c2_121, %c8_122, %c0_123] : memref<10x24x128xf32, #tpu.memory_space<vmem>>, vector<8x8x128xf32>
    %c0_124 = arith.constant 0 : index
    %c0_125 = arith.constant 0 : index
    %c896_126 = arith.constant 896 : index
    %69 = vector.load %arg19[%c0_124, %c0_125, %c896_126] : memref<8x8x1152xf32, #tpu.memory_space<vmem>>, vector<8x8x128xf32>
    tpu.vector_store %arg19[%c0_124, %c0_125, %c896_126], %68 {strides = array<i32>} : memref<8x8x1152xf32, #tpu.memory_space<vmem>>, vector<8x8x128xf32>,
    %c2_127 = arith.constant 2 : index
    %c9_128 = arith.constant 9 : index
    %c0_129 = arith.constant 0 : index
    %70 = vector.load %arg18[%c2_127, %c9_128, %c0_129] : memref<10x24x128xf32, #tpu.memory_space<vmem>>, vector<8x8x128xf32>
    %c0_130 = arith.constant 0 : index
    %c0_131 = arith.constant 0 : index
    %c1024_132 = arith.constant 1024 : index
    %71 = vector.load %arg19[%c0_130, %c0_131, %c1024_132] : memref<8x8x1152xf32, #tpu.memory_space<vmem>>, vector<8x8x128xf32>
    tpu.vector_store %arg19[%c0_130, %c0_131, %c1024_132], %70 {strides = array<i32>} : memref<8x8x1152xf32, #tpu.memory_space<vmem>>, vector<8x8x128xf32>,
    %c0_133 = arith.constant 0 : index
    %c0_134 = arith.constant 0 : index
    %c0_135 = arith.constant 0 : index
    %72 = vector.load %arg19[%c0_133, %c0_134, %c0_135] : memref<8x8x1152xf32, #tpu.memory_space<vmem>>, vector<8x8x1152xf32>
    %73 = vector.shape_cast %72 : vector<8x8x1152xf32> to vector<64x1152xf32>
    %74 = arith.truncf %73 : vector<64x1152xf32> to vector<64x1152xbf16>
    %c0_136 = arith.constant 0 : index
    %c0_137 = arith.constant 0 : index
    %75 = vector.load %arg8[%c0_136, %c0_137] : memref<1152x128xbf16, #tpu.memory_space<vmem>>, vector<1152x128xbf16>
    %cst_138 = arith.constant dense<0.000000e+00> : vector<64x128xf32>
    %76 = tpu.matmul %74, %75, %cst_138 {dimension_numbers = #tpu.dot_dimension_numbers<[1], [0], [0], [1], [0, 0, 1, 1], [], []>} : vector<64x1152xbf16>, vector<1152x128xbf16>, vector<64x128xf32> -> vector<64x128xf32>
    %c0_139 = arith.constant 0 : index
    %c0_140 = arith.constant 0 : index
    %77 = vector.load %arg9[%c0_139, %c0_140] : memref<1x128xf32, #tpu.memory_space<vmem>>, vector<1x128xf32>
    %78 = vector.broadcast %77 : vector<1x128xf32> to vector<64x128xf32>
    %79 = arith.mulf %76, %78 : vector<64x128xf32>
    %c0_141 = arith.constant 0 : index
    %c0_142 = arith.constant 0 : index
    %80 = vector.load %arg10[%c0_141, %c0_142] : memref<1x128xf32, #tpu.memory_space<vmem>>, vector<1x128xf32>
    %81 = vector.broadcast %80 : vector<1x128xf32> to vector<64x128xf32>
    %82 = arith.addf %79, %81 : vector<64x128xf32>
    %cst_143 = arith.constant 0.000000e+00 : f32
    %83 = vector.broadcast %cst_143 : f32 to vector<64x128xf32>
    %84 = arith.maximumf %82, %83 : vector<64x128xf32>
    %85 = vector.shape_cast %84 : vector<64x128xf32> to vector<8x8x128xf32>
    %86 = vector.shape_cast %85 : vector<8x8x128xf32> to vector<8x1x8x128xf32>
    %87 = vector.shape_cast %86 : vector<8x1x8x128xf32> to vector<8x1x8x128xf32>
    %88 = vector.broadcast %87 : vector<8x1x8x128xf32> to vector<8x2x8x128xf32>
    %89 = vector.shape_cast %88 : vector<8x2x8x128xf32> to vector<16x8x128xf32>
    %90 = vector.extract_strided_slice %89 {offsets = [0, 0, 0], sizes = [16, 1, 128], strides = [1, 1, 1]} : vector<16x8x128xf32> to vector<16x1x128xf32>
    %91 = vector.shape_cast %90 : vector<16x1x128xf32> to vector<16x1x128xf32>
    %92 = vector.broadcast %91 : vector<16x1x128xf32> to vector<16x2x128xf32>
    %c1_144 = arith.constant 1 : index
    %c8_145 = arith.constant 8 : index
    %c0_146 = arith.constant 0 : index
    %93 = vector.load %arg17[%c1_144, %c8_145, %c0_146] : memref<18x32x128xf32, #tpu.memory_space<vmem>>, vector<16x2x128xf32>
    tpu.vector_store %arg17[%c1_144, %c8_145, %c0_146], %92 {strides = array<i32>} : memref<18x32x128xf32, #tpu.memory_space<vmem>>, vector<16x2x128xf32>,
    %94 = vector.extract_strided_slice %89 {offsets = [0, 1, 0], sizes = [16, 1, 128], strides = [1, 1, 1]} : vector<16x8x128xf32> to vector<16x1x128xf32>
    %95 = vector.shape_cast %94 : vector<16x1x128xf32> to vector<16x1x128xf32>
    %96 = vector.broadcast %95 : vector<16x1x128xf32> to vector<16x2x128xf32>
    %c1_147 = arith.constant 1 : index
    %c10 = arith.constant 10 : index
    %c0_148 = arith.constant 0 : index
    %97 = vector.load %arg17[%c1_147, %c10, %c0_148] : memref<18x32x128xf32, #tpu.memory_space<vmem>>, vector<16x2x128xf32>
    tpu.vector_store %arg17[%c1_147, %c10, %c0_148], %96 {strides = array<i32>} : memref<18x32x128xf32, #tpu.memory_space<vmem>>, vector<16x2x128xf32>,
    %98 = vector.extract_strided_slice %89 {offsets = [0, 2, 0], sizes = [16, 1, 128], strides = [1, 1, 1]} : vector<16x8x128xf32> to vector<16x1x128xf32>
    %99 = vector.shape_cast %98 : vector<16x1x128xf32> to vector<16x1x128xf32>
    %100 = vector.broadcast %99 : vector<16x1x128xf32> to vector<16x2x128xf32>
    %c1_149 = arith.constant 1 : index
    %c12 = arith.constant 12 : index
    %c0_150 = arith.constant 0 : index
    %101 = vector.load %arg17[%c1_149, %c12, %c0_150] : memref<18x32x128xf32, #tpu.memory_space<vmem>>, vector<16x2x128xf32>
    tpu.vector_store %arg17[%c1_149, %c12, %c0_150], %100 {strides = array<i32>} : memref<18x32x128xf32, #tpu.memory_space<vmem>>, vector<16x2x128xf32>,
    %102 = vector.extract_strided_slice %89 {offsets = [0, 3, 0], sizes = [16, 1, 128], strides = [1, 1, 1]} : vector<16x8x128xf32> to vector<16x1x128xf32>
    %103 = vector.shape_cast %102 : vector<16x1x128xf32> to vector<16x1x128xf32>
    %104 = vector.broadcast %103 : vector<16x1x128xf32> to vector<16x2x128xf32>
    %c1_151 = arith.constant 1 : index
    %c14 = arith.constant 14 : index
    %c0_152 = arith.constant 0 : index
    %105 = vector.load %arg17[%c1_151, %c14, %c0_152] : memref<18x32x128xf32, #tpu.memory_space<vmem>>, vector<16x2x128xf32>
    tpu.vector_store %arg17[%c1_151, %c14, %c0_152], %104 {strides = array<i32>} : memref<18x32x128xf32, #tpu.memory_space<vmem>>, vector<16x2x128xf32>,
    %106 = vector.extract_strided_slice %89 {offsets = [0, 4, 0], sizes = [16, 1, 128], strides = [1, 1, 1]} : vector<16x8x128xf32> to vector<16x1x128xf32>
    %107 = vector.shape_cast %106 : vector<16x1x128xf32> to vector<16x1x128xf32>
    %108 = vector.broadcast %107 : vector<16x1x128xf32> to vector<16x2x128xf32>
    %c1_153 = arith.constant 1 : index
    %c16 = arith.constant 16 : index
    %c0_154 = arith.constant 0 : index
    %109 = vector.load %arg17[%c1_153, %c16, %c0_154] : memref<18x32x128xf32, #tpu.memory_space<vmem>>, vector<16x2x128xf32>
    tpu.vector_store %arg17[%c1_153, %c16, %c0_154], %108 {strides = array<i32>} : memref<18x32x128xf32, #tpu.memory_space<vmem>>, vector<16x2x128xf32>,
    %110 = vector.extract_strided_slice %89 {offsets = [0, 5, 0], sizes = [16, 1, 128], strides = [1, 1, 1]} : vector<16x8x128xf32> to vector<16x1x128xf32>
    %111 = vector.shape_cast %110 : vector<16x1x128xf32> to vector<16x1x128xf32>
    %112 = vector.broadcast %111 : vector<16x1x128xf32> to vector<16x2x128xf32>
    %c1_155 = arith.constant 1 : index
    %c18 = arith.constant 18 : index
    %c0_156 = arith.constant 0 : index
    %113 = vector.load %arg17[%c1_155, %c18, %c0_156] : memref<18x32x128xf32, #tpu.memory_space<vmem>>, vector<16x2x128xf32>
    tpu.vector_store %arg17[%c1_155, %c18, %c0_156], %112 {strides = array<i32>} : memref<18x32x128xf32, #tpu.memory_space<vmem>>, vector<16x2x128xf32>,
    %114 = vector.extract_strided_slice %89 {offsets = [0, 6, 0], sizes = [16, 1, 128], strides = [1, 1, 1]} : vector<16x8x128xf32> to vector<16x1x128xf32>
    %115 = vector.shape_cast %114 : vector<16x1x128xf32> to vector<16x1x128xf32>
    %116 = vector.broadcast %115 : vector<16x1x128xf32> to vector<16x2x128xf32>
    %c1_157 = arith.constant 1 : index
    %c20 = arith.constant 20 : index
    %c0_158 = arith.constant 0 : index
    %117 = vector.load %arg17[%c1_157, %c20, %c0_158] : memref<18x32x128xf32, #tpu.memory_space<vmem>>, vector<16x2x128xf32>
    tpu.vector_store %arg17[%c1_157, %c20, %c0_158], %116 {strides = array<i32>} : memref<18x32x128xf32, #tpu.memory_space<vmem>>, vector<16x2x128xf32>,
    %118 = vector.extract_strided_slice %89 {offsets = [0, 7, 0], sizes = [16, 1, 128], strides = [1, 1, 1]} : vector<16x8x128xf32> to vector<16x1x128xf32>
    %119 = vector.shape_cast %118 : vector<16x1x128xf32> to vector<16x1x128xf32>
    %120 = vector.broadcast %119 : vector<16x1x128xf32> to vector<16x2x128xf32>
    %c1_159 = arith.constant 1 : index
    %c22 = arith.constant 22 : index
    %c0_160 = arith.constant 0 : index
    %121 = vector.load %arg17[%c1_159, %c22, %c0_160] : memref<18x32x128xf32, #tpu.memory_space<vmem>>, vector<16x2x128xf32>
    tpu.vector_store %arg17[%c1_159, %c22, %c0_160], %120 {strides = array<i32>} : memref<18x32x128xf32, #tpu.memory_space<vmem>>, vector<16x2x128xf32>,
    %c0_161 = arith.constant 0 : index
    %c7_162 = arith.constant 7 : index
    %c0_163 = arith.constant 0 : index
    %122 = vector.load %arg17[%c0_161, %c7_162, %c0_163] : memref<18x32x128xf32, #tpu.memory_space<vmem>>, vector<16x16x128xf32>
    %c0_164 = arith.constant 0 : index
    %c0_165 = arith.constant 0 : index
    %c0_166 = arith.constant 0 : index
    %123 = vector.load %arg20[%c0_164, %c0_165, %c0_166] : memref<16x16x1152xf32, #tpu.memory_space<vmem>>, vector<16x16x128xf32>
    tpu.vector_store %arg20[%c0_164, %c0_165, %c0_166], %122 {strides = array<i32>} : memref<16x16x1152xf32, #tpu.memory_space<vmem>>, vector<16x16x128xf32>,
    %c0_167 = arith.constant 0 : index
    %c8_168 = arith.constant 8 : index
    %c0_169 = arith.constant 0 : index
    %124 = vector.load %arg17[%c0_167, %c8_168, %c0_169] : memref<18x32x128xf32, #tpu.memory_space<vmem>>, vector<16x16x128xf32>
    %c0_170 = arith.constant 0 : index
    %c0_171 = arith.constant 0 : index
    %c128_172 = arith.constant 128 : index
    %125 = vector.load %arg20[%c0_170, %c0_171, %c128_172] : memref<16x16x1152xf32, #tpu.memory_space<vmem>>, vector<16x16x128xf32>
    tpu.vector_store %arg20[%c0_170, %c0_171, %c128_172], %124 {strides = array<i32>} : memref<16x16x1152xf32, #tpu.memory_space<vmem>>, vector<16x16x128xf32>,
    %c0_173 = arith.constant 0 : index
    %c9_174 = arith.constant 9 : index
    %c0_175 = arith.constant 0 : index
    %126 = vector.load %arg17[%c0_173, %c9_174, %c0_175] : memref<18x32x128xf32, #tpu.memory_space<vmem>>, vector<16x16x128xf32>
    %c0_176 = arith.constant 0 : index
    %c0_177 = arith.constant 0 : index
    %c256_178 = arith.constant 256 : index
    %127 = vector.load %arg20[%c0_176, %c0_177, %c256_178] : memref<16x16x1152xf32, #tpu.memory_space<vmem>>, vector<16x16x128xf32>
    tpu.vector_store %arg20[%c0_176, %c0_177, %c256_178], %126 {strides = array<i32>} : memref<16x16x1152xf32, #tpu.memory_space<vmem>>, vector<16x16x128xf32>,
    %c1_179 = arith.constant 1 : index
    %c7_180 = arith.constant 7 : index
    %c0_181 = arith.constant 0 : index
    %128 = vector.load %arg17[%c1_179, %c7_180, %c0_181] : memref<18x32x128xf32, #tpu.memory_space<vmem>>, vector<16x16x128xf32>
    %c0_182 = arith.constant 0 : index
    %c0_183 = arith.constant 0 : index
    %c384_184 = arith.constant 384 : index
    %129 = vector.load %arg20[%c0_182, %c0_183, %c384_184] : memref<16x16x1152xf32, #tpu.memory_space<vmem>>, vector<16x16x128xf32>
    tpu.vector_store %arg20[%c0_182, %c0_183, %c384_184], %128 {strides = array<i32>} : memref<16x16x1152xf32, #tpu.memory_space<vmem>>, vector<16x16x128xf32>,
    %c1_185 = arith.constant 1 : index
    %c8_186 = arith.constant 8 : index
    %c0_187 = arith.constant 0 : index
    %130 = vector.load %arg17[%c1_185, %c8_186, %c0_187] : memref<18x32x128xf32, #tpu.memory_space<vmem>>, vector<16x16x128xf32>
    %c0_188 = arith.constant 0 : index
    %c0_189 = arith.constant 0 : index
    %c512_190 = arith.constant 512 : index
    %131 = vector.load %arg20[%c0_188, %c0_189, %c512_190] : memref<16x16x1152xf32, #tpu.memory_space<vmem>>, vector<16x16x128xf32>
    tpu.vector_store %arg20[%c0_188, %c0_189, %c512_190], %130 {strides = array<i32>} : memref<16x16x1152xf32, #tpu.memory_space<vmem>>, vector<16x16x128xf32>,
    %c1_191 = arith.constant 1 : index
    %c9_192 = arith.constant 9 : index
    %c0_193 = arith.constant 0 : index
    %132 = vector.load %arg17[%c1_191, %c9_192, %c0_193] : memref<18x32x128xf32, #tpu.memory_space<vmem>>, vector<16x16x128xf32>
    %c0_194 = arith.constant 0 : index
    %c0_195 = arith.constant 0 : index
    %c640_196 = arith.constant 640 : index
    %133 = vector.load %arg20[%c0_194, %c0_195, %c640_196] : memref<16x16x1152xf32, #tpu.memory_space<vmem>>, vector<16x16x128xf32>
    tpu.vector_store %arg20[%c0_194, %c0_195, %c640_196], %132 {strides = array<i32>} : memref<16x16x1152xf32, #tpu.memory_space<vmem>>, vector<16x16x128xf32>,
    %c2_197 = arith.constant 2 : index
    %c7_198 = arith.constant 7 : index
    %c0_199 = arith.constant 0 : index
    %134 = vector.load %arg17[%c2_197, %c7_198, %c0_199] : memref<18x32x128xf32, #tpu.memory_space<vmem>>, vector<16x16x128xf32>
    %c0_200 = arith.constant 0 : index
    %c0_201 = arith.constant 0 : index
    %c768_202 = arith.constant 768 : index
    %135 = vector.load %arg20[%c0_200, %c0_201, %c768_202] : memref<16x16x1152xf32, #tpu.memory_space<vmem>>, vector<16x16x128xf32>
    tpu.vector_store %arg20[%c0_200, %c0_201, %c768_202], %134 {strides = array<i32>} : memref<16x16x1152xf32, #tpu.memory_space<vmem>>, vector<16x16x128xf32>,
    %c2_203 = arith.constant 2 : index
    %c8_204 = arith.constant 8 : index
    %c0_205 = arith.constant 0 : index
    %136 = vector.load %arg17[%c2_203, %c8_204, %c0_205] : memref<18x32x128xf32, #tpu.memory_space<vmem>>, vector<16x16x128xf32>
    %c0_206 = arith.constant 0 : index
    %c0_207 = arith.constant 0 : index
    %c896_208 = arith.constant 896 : index
    %137 = vector.load %arg20[%c0_206, %c0_207, %c896_208] : memref<16x16x1152xf32, #tpu.memory_space<vmem>>, vector<16x16x128xf32>
    tpu.vector_store %arg20[%c0_206, %c0_207, %c896_208], %136 {strides = array<i32>} : memref<16x16x1152xf32, #tpu.memory_space<vmem>>, vector<16x16x128xf32>,
    %c2_209 = arith.constant 2 : index
    %c9_210 = arith.constant 9 : index
    %c0_211 = arith.constant 0 : index
    %138 = vector.load %arg17[%c2_209, %c9_210, %c0_211] : memref<18x32x128xf32, #tpu.memory_space<vmem>>, vector<16x16x128xf32>
    %c0_212 = arith.constant 0 : index
    %c0_213 = arith.constant 0 : index
    %c1024_214 = arith.constant 1024 : index
    %139 = vector.load %arg20[%c0_212, %c0_213, %c1024_214] : memref<16x16x1152xf32, #tpu.memory_space<vmem>>, vector<16x16x128xf32>
    tpu.vector_store %arg20[%c0_212, %c0_213, %c1024_214], %138 {strides = array<i32>} : memref<16x16x1152xf32, #tpu.memory_space<vmem>>, vector<16x16x128xf32>,
    %c0_215 = arith.constant 0 : index
    %c0_216 = arith.constant 0 : index
    %c0_217 = arith.constant 0 : index
    %140 = vector.load %arg20[%c0_215, %c0_216, %c0_217] : memref<16x16x1152xf32, #tpu.memory_space<vmem>>, vector<16x16x1152xf32>
    %141 = vector.shape_cast %140 : vector<16x16x1152xf32> to vector<256x1152xf32>
    %142 = arith.truncf %141 : vector<256x1152xf32> to vector<256x1152xbf16>
    %c0_218 = arith.constant 0 : index
    %c0_219 = arith.constant 0 : index
    %143 = vector.load %arg11[%c0_218, %c0_219] : memref<1152x128xbf16, #tpu.memory_space<vmem>>, vector<1152x128xbf16>
    %cst_220 = arith.constant dense<0.000000e+00> : vector<256x128xf32>
    %144 = tpu.matmul %142, %143, %cst_220 {dimension_numbers = #tpu.dot_dimension_numbers<[1], [0], [0], [1], [0, 0, 1, 1], [], []>} : vector<256x1152xbf16>, vector<1152x128xbf16>, vector<256x128xf32> -> vector<256x128xf32>
    %c0_221 = arith.constant 0 : index
    %c0_222 = arith.constant 0 : index
    %145 = vector.load %arg12[%c0_221, %c0_222] : memref<1x128xf32, #tpu.memory_space<vmem>>, vector<1x128xf32>
    %146 = vector.broadcast %145 : vector<1x128xf32> to vector<256x128xf32>
    %147 = arith.mulf %144, %146 : vector<256x128xf32>
    %c0_223 = arith.constant 0 : index
    %c0_224 = arith.constant 0 : index
    %148 = vector.load %arg13[%c0_223, %c0_224] : memref<1x128xf32, #tpu.memory_space<vmem>>, vector<1x128xf32>
    %149 = vector.broadcast %148 : vector<1x128xf32> to vector<256x128xf32>
    %150 = arith.addf %147, %149 : vector<256x128xf32>
    %cst_225 = arith.constant 0.000000e+00 : f32
    %151 = vector.broadcast %cst_225 : f32 to vector<256x128xf32>
    %152 = arith.maximumf %150, %151 : vector<256x128xf32>
    %c0_226 = arith.constant 0 : index
    %c0_227 = arith.constant 0 : index
    %c0_228 = arith.constant 0 : index
    %153 = vector.load %arg21[%c0_226, %c0_227, %c0_228] : memref<16x16x128xf32, #tpu.memory_space<vmem>>, vector<16x16x128xf32>
    %154 = vector.shape_cast %153 : vector<16x16x128xf32> to vector<256x128xf32>
    %155 = arith.addf %152, %154 : vector<256x128xf32>
    %156 = arith.truncf %155 : vector<256x128xf32> to vector<256x128xbf16>
    %c0_229 = arith.constant 0 : index
    %c0_230 = arith.constant 0 : index
    %157 = vector.load %arg14[%c0_229, %c0_230] : memref<128x128xbf16, #tpu.memory_space<vmem>>, vector<128x128xbf16>
    %cst_231 = arith.constant dense<0.000000e+00> : vector<256x128xf32>
    %158 = tpu.matmul %156, %157, %cst_231 {dimension_numbers = #tpu.dot_dimension_numbers<[1], [0], [0], [1], [0, 0, 1, 1], [], []>} : vector<256x128xbf16>, vector<128x128xbf16>, vector<256x128xf32> -> vector<256x128xf32>
    %c0_232 = arith.constant 0 : index
    %c0_233 = arith.constant 0 : index
    %159 = vector.load %arg15[%c0_232, %c0_233] : memref<1x128xf32, #tpu.memory_space<vmem>>, vector<1x128xf32>
    %160 = vector.broadcast %159 : vector<1x128xf32> to vector<256x128xf32>
    %161 = arith.addf %158, %160 : vector<256x128xf32>
    %162 = vector.shape_cast %161 : vector<256x128xf32> to vector<16x16x128xf32>
    %c0_234 = arith.constant 0 : index
    %c0_235 = arith.constant 0 : index
    %c0_236 = arith.constant 0 : index
    %c0_237 = arith.constant 0 : index
    %163 = vector.load %arg16[%c0_234, %c0_235, %c0_236, %c0_237] : memref<1x16x16x128xf32, #tpu.memory_space<vmem>>, vector<1x16x16x128xf32>
    %164 = vector.shape_cast %163 : vector<1x16x16x128xf32> to vector<16x16x128xf32>
    %165 = vector.shape_cast %162 : vector<16x16x128xf32> to vector<1x16x16x128xf32>
    tpu.vector_store %arg16[%c0_234, %c0_235, %c0_236, %c0_237], %165 {strides = array<i32>} : memref<1x16x16x128xf32, #tpu.memory_space<vmem>>, vector<1x16x16x128xf32>,
    return
  }
  func.func @transform_0(%arg0: i32) -> (i32, i32, i32, i32) {
    %c0_i32 = arith.constant 0 : i32
    %c0_i32_0 = arith.constant 0 : i32
    %c0_i32_1 = arith.constant 0 : i32
    %c0_i32_2 = arith.constant 0 : i32
    return %arg0, %c0_i32, %c0_i32_0, %c0_i32_1 : i32, i32, i32, i32
  }
  func.func @transform_1(%arg0: i32) -> (i32, i32) {
    %c0_i32 = arith.constant 0 : i32
    %c0_i32_0 = arith.constant 0 : i32
    %c0_i32_1 = arith.constant 0 : i32
    return %c0_i32, %c0_i32_0 : i32, i32
  }
  func.func @transform_2(%arg0: i32) -> (i32, i32) {
    %c0_i32 = arith.constant 0 : i32
    %c0_i32_0 = arith.constant 0 : i32
    %c0_i32_1 = arith.constant 0 : i32
    return %c0_i32, %c0_i32_0 : i32, i32
  }
  func.func @transform_3(%arg0: i32) -> (i32, i32) {
    %c0_i32 = arith.constant 0 : i32
    %c0_i32_0 = arith.constant 0 : i32
    %c0_i32_1 = arith.constant 0 : i32
    return %c0_i32, %c0_i32_0 : i32, i32
  }
  func.func @transform_4(%arg0: i32) -> (i32, i32) {
    %c0_i32 = arith.constant 0 : i32
    %c0_i32_0 = arith.constant 0 : i32
    %c0_i32_1 = arith.constant 0 : i32
    return %c0_i32, %c0_i32_0 : i32, i32
  }
  func.func @transform_5(%arg0: i32) -> (i32, i32) {
    %c0_i32 = arith.constant 0 : i32
    %c0_i32_0 = arith.constant 0 : i32
    %c0_i32_1 = arith.constant 0 : i32
    return %c0_i32, %c0_i32_0 : i32, i32
  }
  func.func @transform_6(%arg0: i32) -> (i32, i32) {
    %c0_i32 = arith.constant 0 : i32
    %c0_i32_0 = arith.constant 0 : i32
    %c0_i32_1 = arith.constant 0 : i32
    return %c0_i32, %c0_i32_0 : i32, i32
  }
  func.func @transform_7(%arg0: i32) -> (i32, i32) {
    %c0_i32 = arith.constant 0 : i32
    %c0_i32_0 = arith.constant 0 : i32
    %c0_i32_1 = arith.constant 0 : i32
    return %c0_i32, %c0_i32_0 : i32, i32
  }
  func.func @transform_8(%arg0: i32) -> (i32, i32) {
    %c0_i32 = arith.constant 0 : i32
    %c0_i32_0 = arith.constant 0 : i32
    %c0_i32_1 = arith.constant 0 : i32
    return %c0_i32, %c0_i32_0 : i32, i32
  }
  func.func @transform_9(%arg0: i32) -> (i32, i32) {
    %c0_i32 = arith.constant 0 : i32
    %c0_i32_0 = arith.constant 0 : i32
    %c0_i32_1 = arith.constant 0 : i32
    return %c0_i32, %c0_i32_0 : i32, i32
  }
  func.func @transform_10(%arg0: i32) -> (i32, i32) {
    %c0_i32 = arith.constant 0 : i32
    %c0_i32_0 = arith.constant 0 : i32
    %c0_i32_1 = arith.constant 0 : i32
    return %c0_i32, %c0_i32_0 : i32, i32
  }
  func.func @transform_11(%arg0: i32) -> (i32, i32) {
    %c0_i32 = arith.constant 0 : i32
    %c0_i32_0 = arith.constant 0 : i32
    %c0_i32_1 = arith.constant 0 : i32
    return %c0_i32, %c0_i32_0 : i32, i32
  }
  func.func @transform_12(%arg0: i32) -> (i32, i32) {
    %c0_i32 = arith.constant 0 : i32
    %c0_i32_0 = arith.constant 0 : i32
    %c0_i32_1 = arith.constant 0 : i32
    return %c0_i32, %c0_i32_0 : i32, i32
  }
  func.func @transform_13(%arg0: i32) -> (i32, i32) {
    %c0_i32 = arith.constant 0 : i32
    %c0_i32_0 = arith.constant 0 : i32
    %c0_i32_1 = arith.constant 0 : i32
    return %c0_i32, %c0_i32_0 : i32, i32
  }
  func.func @transform_14(%arg0: i32) -> (i32, i32) {
    %c0_i32 = arith.constant 0 : i32
    %c0_i32_0 = arith.constant 0 : i32
    %c0_i32_1 = arith.constant 0 : i32
    return %c0_i32, %c0_i32_0 : i32, i32
  }
  func.func @transform_15(%arg0: i32) -> (i32, i32, i32, i32) {
    %c0_i32 = arith.constant 0 : i32
    %c0_i32_0 = arith.constant 0 : i32
    %c0_i32_1 = arith.constant 0 : i32
    %c0_i32_2 = arith.constant 0 : i32
    return %arg0, %c0_i32, %c0_i32_0, %c0_i32_1 : i32, i32, i32, i32
  }
}

</mosaic_0001>

<bundles_post_ra>
// kernel: depth_volume_encoder.1
= control target key start
LH: loop header
LB: loop body
LE: loop exit
PB: predicated region body
PF: predicated region fallthrough
CT: control target
= control target key end

     0   :  { %s8483_s18 = smov 0   ;;  %s10701_s0 = inlined_call_operand.vmem [shape: f32[2,16,16,128], index: 0, kind: input, shape index: {}]   ;;  %s10702_s1 = inlined_call_operand.vmem [shape: bf16[128,128], index: 1, kind: input, shape index: {}]   ;;  %s10703_s2 = inlined_call_operand.vmem [shape: f32[1,128], index: 2, kind: input, shape index: {}]   ;;  %s10704_s3 = inlined_call_operand.vmem [shape: f32[1,128], index: 3, kind: input, shape index: {}]   ;;  %s10705_s4 = inlined_call_operand.vmem [shape: bf16[1152,128], index: 4, kind: input, shape index: {}]   ;;  %s10706_s5 = inlined_call_operand.vmem [shape: f32[1,128], index: 5, kind: input, shape index: {}]   ;;  %s10707_s6 = inlined_call_operand.vmem [shape: f32[1,128], index: 6, kind: input, shape index: {}]   ;;  %s10708_s7 = inlined_call_operand.vmem [shape: bf16[1152,128], index: 7, kind: input, shape index: {}]   ;;  %s10709_s8 = inlined_call_operand.vmem [shape: f32[1,128], index: 8, kind: input, shape index: {}]   ;;  %s10710_s9 = inlined_call_operand.vmem [shape: f32[1,128], index: 9, kind: input, shape index: {}]   ;;  %s10711_s10 = inlined_call_operand.vmem [shape: bf16[1152,128], index: 10, kind: input, shape index: {}]   ;;  %s10712_s11 = inlined_call_operand.vmem [shape: f32[1,128], index: 11, kind: input, shape index: {}]   ;;  %s10713_s12 = inlined_call_operand.vmem [shape: f32[1,128], index: 12, kind: input, shape index: {}]   ;;  %s10714_s13 = inlined_call_operand.vmem [shape: bf16[128,128], index: 13, kind: input, shape index: {}]   ;;  %s10715_s14 = inlined_call_operand.vmem [shape: f32[1,128], index: 14, kind: input, shape index: {}]   ;;  %s10716_s15 = inlined_call_operand.vmem [shape: f32[2,16,16,128], index: 15, kind: output, shape index: {}]  }
   0x1 LB: > { %s6841_s19 = sadd.s32 4294967295, %s8400_s18   ;;  %p6845_p0 = scmp.ge.s32.totalorder %s8400_s18, 1  ;;  %s8400_s18 = sphi %s8483_s18, %s25_s18  }
   0x2   : > { %p437_p1 = scmp.lt.s32.totalorder %s8400_s18, 3 }
   0x4   : > { %p438_p2 = pnand %p6845_p0, %p437_p1 }
   0x6   : > { %441 = sbr.rel (%p438_p2) target bundleno = 1579 (0x62b), region = 80 }
   0xb   : > { %v8494_v0 = vld [vmem:[%s10702_s1 + $0x38] sm:$0xff]   ;;  %p485_p3 = scmp.lt.s32.totalorder %s6841_s19, 1  ;;  %v8499_v1 = vld [vmem:[%s10702_s1 + $0x30] sm:$0xff]   ;;  %v8402_v2 = vmov 0.0   ;;  %v8162_v3 = vld [vmem:[%s10702_s1 + $0x28] sm:$0xff]  }
   0xc   : > { %7959 = vmatprep.subr.bf16.mxu0 %v8494_v0  ;;  %496 = vst [vmem:[#allocation2] sm:$0xff] %v8402_v2  ;;  %497 = vst [vmem:[#allocation2 + $0x8] sm:$0xff] %v8402_v2  ;;  %v8163_v4 = vld [vmem:[%s10702_s1 + $0x20] sm:$0xff]   ;;  %v8164_v8 = vld [vmem:[%s10702_s1 + $0x18] sm:$0xff]  }
   0xd   : > { %s10951_s19 = smov (!%p485_p3, %s6841_s19), 1  ;;  %498 = vst [vmem:[#allocation2 + $0x10] sm:$0xff] %v8402_v2  ;;  %499 = vst [vmem:[#allocation2 + $0x18] sm:$0xff] %v8402_v2  ;;  %7960 = vmatpush3.bf16.msra.mxu0 %v8494_v0  ;;  %v8165_v9 = vld [vmem:[%s10702_s1 + $0x10] sm:$0xff]   ;;  %v8166_v10 = vld [vmem:[%s10702_s1 + $0x8] sm:$0xff]  }
   0xe   : > { %500 = vst [vmem:[#allocation2 + $0x20] sm:$0xff] %v8402_v2  ;;  %503 = vst [vmem:[#allocation2 + $0x38] sm:$0xff] %v8402_v2  ;;  %7961 = vmatprep.subr.bf16.mxu0 %v8499_v1  ;;  %s7093_s26 = sshll.u32 %s10951_s19, 8  ;;  %v8168_v11 = vld [vmem:[%s10705_s4 + $0x78] sm:$0xff]   ;;  %v8170_v13 = vld [vmem:[%s10705_s4 + $0x70] sm:$0xff]  }
   0xf   : > { %504 = vst [vmem:[#allocation2 + $0x40] sm:$0xff] %v8402_v2  ;;  %507 = vst [vmem:[#allocation2 + $0x58] sm:$0xff] %v8402_v2  ;;  %s8515_s29 = scalar_lea.vmem %s10701_s0, %s7093_s26  ;;  %v8169_v12 = vld [vmem:[%s10705_s4 + $0x38] sm:$0xff]   ;;  %7119 = vmatprep.subr.bf16.mxu1 %v8168_v11  ;;  %v8167_v14 = vld [vmem:[%s10702_s1] sm:$0xff]   ;;  %s10632_s30 = scalar_lea.vmem %s10716_s15, %s7093_s26 }
  0x10   : > { %508 = vst [vmem:[#allocation2 + $0x60] sm:$0xff] %v8402_v2  ;;  %511 = vst [vmem:[#allocation2 + $0x78] sm:$0xff] %v8402_v2  ;;  %v598_v5 = vld [vmem:[%s8515_s29] sm:$0xff]  ;;  %v599_v6 = vld [vmem:[%s8515_s29 + $0x8] sm:$0xff]  ;;  %7120 = vmatpush3.bf16.msra.mxu1 %v8169_v12 }
  0x11   : > { %512 = vst [vmem:[#allocation2 + $0x80] sm:$0xff] %v8402_v2  ;;  %515 = vst [vmem:[#allocation2 + $0x98] sm:$0xff] %v8402_v2  ;;  %7962 = vmatpush3.bf16.msra.mxu0 %v8499_v1  ;;  %v630_v7 = vpack.c.bf16 %v599_v6, %v598_v5  ;;  %v8171_v15 = vld [vmem:[%s10705_s4 + $0x30] sm:$0xff]   ;;  %7121 = vmatprep.subr.bf16.mxu1 %v8170_v13  ;;  %v8172_v16 = vld [vmem:[%s10705_s4 + $0x68] sm:$0xff]  }
  0x12   : > { %516 = vst [vmem:[#allocation2 + $0xa0] sm:$0xff] %v8402_v2  ;;  %519 = vst [vmem:[#allocation2 + $0xb8] sm:$0xff] %v8402_v2  ;;  %7963 = vmatprep.subr.bf16.mxu0 %v8162_v3  ;;  %v8173_v17 = vld [vmem:[%s10705_s4 + $0x28] sm:$0xff]   ;;  %v600_v18 = vld [vmem:[%s8515_s29 + $0x10] sm:$0xff] }
  0x13   : > { %520 = vst [vmem:[#allocation2 + $0xc0] sm:$0xff] %v8402_v2  ;;  %523 = vst [vmem:[#allocation2 + $0xd8] sm:$0xff] %v8402_v2  ;;  %7975 = vmatprep.mubr.bf16.mxu0 %v630_v7  ;;  %v601_v19 = vld [vmem:[%s8515_s29 + $0x18] sm:$0xff]  ;;  %v602_v20 = vld [vmem:[%s8515_s29 + $0x20] sm:$0xff] }
  0x14   : > { %524 = vst [vmem:[#allocation2 + $0xe0] sm:$0xff] %v8402_v2  ;;  %527 = vst [vmem:[#allocation2 + $0xf8] sm:$0xff] %v8402_v2  ;;  %v603_v21 = vld [vmem:[%s8515_s29 + $0x28] sm:$0xff]  ;;  %7122 = vmatpush3.bf16.msra.mxu1 %v8171_v15  ;;  %v631_v22 = vpack.c.bf16 %v601_v19, %v600_v18  ;;  %v604_v24 = vld [vmem:[%s8515_s29 + $0x30] sm:$0xff] }
  0x15   : > { %528 = vst [vmem:[#allocation2 + $0x100] sm:$0xff] %v8402_v2  ;;  %531 = vst [vmem:[#allocation2 + $0x118] sm:$0xff] %v8402_v2  ;;  %7964 = vmatpush3.bf16.msra.mxu0 %v8162_v3  ;;  %7123 = vmatprep.subr.bf16.mxu1 %v8172_v16  ;;  %v632_v23 = vpack.c.bf16 %v603_v21, %v602_v20  ;;  %v605_v25 = vld [vmem:[%s8515_s29 + $0x38] sm:$0xff]  ;;  %v606_v26 = vld [vmem:[%s8515_s29 + $0x40] sm:$0xff] }
  0x16   : > { %532 = vst [vmem:[#allocation2 + $0x120] sm:$0xff] %v8402_v2  ;;  %535 = vst [vmem:[#allocation2 + $0x138] sm:$0xff] %v8402_v2  ;;  %7965 = vmatprep.subr.bf16.mxu0 %v8163_v4  ;;  %v607_v27 = vld [vmem:[%s8515_s29 + $0x48] sm:$0xff]  ;;  %v633_v28 = vpack.c.bf16 %v605_v25, %v604_v24  ;;  %v608_v30 = vld [vmem:[%s8515_s29 + $0x50] sm:$0xff] }
  0x17   : > { %536 = vst [vmem:[#allocation2 + $0x140] sm:$0xff] %v8402_v2  ;;  %539 = vst [vmem:[#allocation2 + $0x158] sm:$0xff] %v8402_v2  ;;  %v634_v29 = vpack.c.bf16 %v607_v27, %v606_v26  ;;  %v609_v31 = vld [vmem:[%s8515_s29 + $0x58] sm:$0xff]  ;;  %v610_v32 = vld [vmem:[%s8515_s29 + $0x60] sm:$0xff] }
  0x18   : > { %540 = vst [vmem:[#allocation2 + $0x160] sm:$0xff] %v8402_v2  ;;  %543 = vst [vmem:[#allocation2 + $0x178] sm:$0xff] %v8402_v2  ;;  %7124 = vmatpush3.bf16.msra.mxu1 %v8173_v17  ;;  %v611_v33 = vld [vmem:[%s8515_s29 + $0x68] sm:$0xff]  ;;  %v635_v34 = vpack.c.bf16 %v609_v31, %v608_v30  ;;  %v612_v36 = vld [vmem:[%s8515_s29 + $0x70] sm:$0xff] }
  0x19   : > { %544 = vst [vmem:[#allocation2 + $0x180] sm:$0xff] %v8402_v2  ;;  %547 = vst [vmem:[#allocation2 + $0x198] sm:$0xff] %v8402_v2  ;;  %7966 = vmatpush3.bf16.msra.mxu0 %v8163_v4  ;;  %v636_v35 = vpack.c.bf16 %v611_v33, %v610_v32  ;;  %v613_v37 = vld [vmem:[%s8515_s29 + $0x78] sm:$0xff]  ;;  %v614_v38 = vld [vmem:[%s8515_s29 + $0x80] sm:$0xff] }
  0x1a   : > { %548 = vst [vmem:[#allocation2 + $0x1a0] sm:$0xff] %v8402_v2  ;;  %551 = vst [vmem:[#allocation2 + $0x1b8] sm:$0xff] %v8402_v2  ;;  %7967 = vmatprep.subr.bf16.mxu0 %v8164_v8  ;;  %v615_v39 = vld [vmem:[%s8515_s29 + $0x88] sm:$0xff]  ;;  %v637_v40 = vpack.c.bf16 %v613_v37, %v612_v36  ;;  %v616_v42 = vld [vmem:[%s8515_s29 + $0x90] sm:$0xff] }
  0x1b   : > { %552 = vst [vmem:[#allocation2 + $0x1c0] sm:$0xff] %v8402_v2  ;;  %555 = vst [vmem:[#allocation2 + $0x1d8] sm:$0xff] %v8402_v2  ;;  %v638_v41 = vpack.c.bf16 %v615_v39, %v614_v38  ;;  %v617_v43 = vld [vmem:[%s8515_s29 + $0x98] sm:$0xff]  ;;  %v618_v44 = vld [vmem:[%s8515_s29 + $0xa0] sm:$0xff] }
  0x1c   : > { %556 = vst [vmem:[#allocation2 + $0x1e0] sm:$0xff] %v8402_v2  ;;  %559 = vst [vmem:[#allocation2 + $0x1f8] sm:$0xff] %v8402_v2  ;;  %v619_v45 = vld [vmem:[%s8515_s29 + $0xa8] sm:$0xff]  ;;  %v639_v46 = vpack.c.bf16 %v617_v43, %v616_v42  ;;  %v620_v48 = vld [vmem:[%s8515_s29 + $0xb0] sm:$0xff] }
  0x1d   : > { %560 = vst [vmem:[#allocation2 + $0x200] sm:$0xff] %v8402_v2  ;;  %563 = vst [vmem:[#allocation2 + $0x218] sm:$0xff] %v8402_v2  ;;  %7968 = vmatpush3.bf16.msra.mxu0 %v8164_v8  ;;  %v640_v47 = vpack.c.bf16 %v619_v45, %v618_v44  ;;  %v621_v49 = vld [vmem:[%s8515_s29 + $0xb8] sm:$0xff]  ;;  %v622_v50 = vld [vmem:[%s8515_s29 + $0xc0] sm:$0xff] }
  0x1e   : > { %564 = vst [vmem:[#allocation2 + $0x220] sm:$0xff] %v8402_v2  ;;  %565 = vst [vmem:[#allocation2 + $0x228] sm:$0xff] %v8402_v2  ;;  %7969 = vmatprep.subr.bf16.mxu0 %v8165_v9  ;;  %v623_v51 = vld [vmem:[%s8515_s29 + $0xc8] sm:$0xff]  ;;  %v641_v52 = vpack.c.bf16 %v621_v49, %v620_v48  ;;  %v624_v54 = vld [vmem:[%s8515_s29 + $0xd0] sm:$0xff] }
  0x1f   : > { %566 = vst [vmem:[#allocation2 + $0x230] sm:$0xff] %v8402_v2  ;;  %567 = vst [vmem:[#allocation2 + $0x238] sm:$0xff] %v8402_v2  ;;  %v642_v53 = vpack.c.bf16 %v623_v51, %v622_v50  ;;  %v625_v55 = vld [vmem:[%s8515_s29 + $0xd8] sm:$0xff]  ;;  %v626_v56 = vld [vmem:[%s8515_s29 + $0xe0] sm:$0xff] }
  0x20   : > { %568 = vst [vmem:[#allocation3] sm:$0xff] %v8402_v2  ;;  %569 = vst [vmem:[#allocation3 + $0x8] sm:$0xff] %v8402_v2  ;;  %v627_v57 = vld [vmem:[%s8515_s29 + $0xe8] sm:$0xff]  ;;  %v643_v58 = vpack.c.bf16 %v625_v55, %v624_v54  ;;  %v628_v60 = vld [vmem:[%s8515_s29 + $0xf0] sm:$0xff] }
  0x21   : > { %570 = vst [vmem:[#allocation3 + $0x10] sm:$0xff] %v8402_v2  ;;  %571 = vst [vmem:[#allocation3 + $0x18] sm:$0xff] %v8402_v2  ;;  %7970 = vmatpush3.bf16.msra.mxu0 %v8165_v9  ;;  %v644_v59 = vpack.c.bf16 %v627_v57, %v626_v56  ;;  %v629_v61 = vld [vmem:[%s8515_s29 + $0xf8] sm:$0xff]  ;;  %v8176_v1 = vld [vmem:[%s10705_s4 + $0x60] sm:$0xff]  }
  0x22   : > { %573 = vst [vmem:[#allocation3 + $0x28] sm:$0xff] %v8402_v2  ;;  %574 = vst [vmem:[#allocation3 + $0x30] sm:$0xff] %v8402_v2  ;;  %7971 = vmatprep.subr.bf16.mxu0 %v8166_v10  ;;  %v645_v62 = vpack.c.bf16 %v629_v61, %v628_v60  ;;  %v8174_v63 = vld [vmem:[%s10705_s4 + $0x178] sm:$0xff]   ;;  %7125 = vmatprep.subr.bf16.mxu1 %v8176_v1  ;;  %v8178_v3 = vld [vmem:[%s10705_s4 + $0x170] sm:$0xff]  }
  0x23   : > { %576 = vst [vmem:[#allocation3 + $0x40] sm:$0xff] %v8402_v2  ;;  %577 = vst [vmem:[#allocation3 + $0x48] sm:$0xff] %v8402_v2  ;;  %v8175_v0 = vld [vmem:[%s10705_s4 + $0x138] sm:$0xff]   ;;  %v8179_v4 = vld [vmem:[%s10705_s4 + $0x130] sm:$0xff]  }
  0x24   : > { %579 = vst [vmem:[#allocation3 + $0x58] sm:$0xff] %v8402_v2  ;;  %580 = vst [vmem:[#allocation3 + $0x60] sm:$0xff] %v8402_v2  ;;  %v8180_v5 = vld [vmem:[%s10705_s4 + $0x58] sm:$0xff]   ;;  %v8182_v7 = vld [vmem:[%s10705_s4 + $0x168] sm:$0xff]  }
  0x25   : > { %582 = vst [vmem:[#allocation3 + $0x70] sm:$0xff] %v8402_v2  ;;  %583 = vst [vmem:[#allocation3 + $0x78] sm:$0xff] %v8402_v2  ;;  %7972 = vmatpush3.bf16.msra.mxu0 %v8166_v10  ;;  %v8181_v6 = vld [vmem:[%s10705_s4 + $0x18] sm:$0xff]   ;;  %v8183_v8 = vld [vmem:[%s10705_s4 + $0x128] sm:$0xff]  }
  0x26   : > { %585 = vst [vmem:[#allocation3 + $0x88] sm:$0xff] %v8402_v2  ;;  %586 = vst [vmem:[#allocation3 + $0x90] sm:$0xff] %v8402_v2  ;;  %7973 = vmatprep.subr.bf16.mxu0 %v8167_v14  ;;  %v8184_v9 = vld [vmem:[%s10705_s4 + $0x50] sm:$0xff]   ;;  %v8186_v11 = vld [vmem:[%s10705_s4 + $0x160] sm:$0xff]  }
  0x27   : > { %588 = vst [vmem:[#allocation3 + $0xa0] sm:$0xff] %v8402_v2  ;;  %589 = vst [vmem:[#allocation3 + $0xa8] sm:$0xff] %v8402_v2  ;;  %v8185_v10 = vld [vmem:[%s10705_s4 + $0x10] sm:$0xff]   ;;  %v8187_v12 = vld [vmem:[%s10705_s4 + $0x120] sm:$0xff]  }
  0x28   : > { %591 = vst [vmem:[#allocation3 + $0xb8] sm:$0xff] %v8402_v2  ;;  %592 = vst [vmem:[#allocation3 + $0xc0] sm:$0xff] %v8402_v2  ;;  %v8188_v13 = vld [vmem:[%s10705_s4 + $0x48] sm:$0xff]   ;;  %v8190_v15 = vld [vmem:[%s10705_s4 + $0x158] sm:$0xff]  }
  0x29   : > { %594 = vst [vmem:[#allocation3 + $0xd0] sm:$0xff] %v8402_v2  ;;  %595 = vst [vmem:[#allocation3 + $0xd8] sm:$0xff] %v8402_v2  ;;  %7974 = vmatpush3.bf16.msra.mxu0 %v8167_v14  ;;  %v8189_v14 = vld [vmem:[%s10705_s4 + $0x8] sm:$0xff]   ;;  %v8191_v16 = vld [vmem:[%s10705_s4 + $0x118] sm:$0xff]  }
  0x2a   : > { %596 = vst [vmem:[#allocation3 + $0xe0] sm:$0xff] %v8402_v2  ;;  %597 = vst [vmem:[#allocation3 + $0xe8] sm:$0xff] %v8402_v2  ;;  %7199 = vmatprep.subr.bf16.mxu0 %v8174_v63  ;;  %v8177_v2 = vld [vmem:[%s10705_s4 + $0x20] sm:$0xff]   ;;  %v8194_v19 = vld [vmem:[%s10705_s4 + $0x150] sm:$0xff]  }
  0x2b   : > { %7126 = vmatpush3.bf16.msra.mxu1 %v8177_v2  ;;  %v8192_v17 = vld [vmem:[%s10705_s4 + $0x40] sm:$0xff]   ;;  %v8195_v20 = vld [vmem:[%s10705_s4 + $0x110] sm:$0xff]   ;;  %v8196_v21 = vld [vmem:[%s10705_s4 + $0x148] sm:$0xff]  }
  0x2c   : > { %7976 = vmatmul.mubr.bf16.vlgmr.msra.gmra.mxu0 %v631_v22  ;;  %7127 = vmatprep.subr.bf16.mxu1 %v8180_v5  ;;  %v8193_v18 = vld [vmem:[%s10705_s4] sm:$0xff]   ;;  %v8197_v22 = vld [vmem:[%s10705_s4 + $0x108] sm:$0xff]   ;;  %v8200_v25 = vld [vmem:[%s10705_s4 + $0xf8] sm:$0xff]  }
  0x2d   : > { %7979 = vmatprep.mubr.bf16.mxu0 %v632_v23  ;;  %7200 = vmatpush3.bf16.msra.mxu0 %v8175_v0  ;;  %v8198_v23 = vld [vmem:[%s10705_s4 + $0x140] sm:$0xff]   ;;  %v8667_v26 = vld [vmem:[%s10705_s4 + $0x238] sm:$0xff]  }
  0x2e   : > { %7201 = vmatprep.subr.bf16.mxu0 %v8178_v3  ;;  %v8199_v24 = vld [vmem:[%s10705_s4 + $0x100] sm:$0xff]  }
  0x2f   : > { %7128 = vmatpush3.bf16.msra.mxu1 %v8181_v6  ;;  %v8673_v27 = vld [vmem:[%s10703_s2] ss:$0 sm:$0xff]  ;;  %v1047_v63 = vld [vmem:[#allocation2 + $0x7] ss:$2 sm:$0xff] }
  0x30   : > { %7129 = vmatprep.subr.bf16.mxu1 %v8184_v9 }
  0x31   : > { %7202 = vmatpush3.bf16.msra.mxu0 %v8179_v4 }
  0x32   : > { %7203 = vmatprep.subr.bf16.mxu0 %v8182_v7  ;;  %v8201_v7 = vld [vmem:[%s10705_s4 + $0xb8] sm:$0xff]  }
  0x33   : > { %7130 = vmatpush3.bf16.msra.mxu1 %v8185_v10  ;;  %v8202_v10 = vld [vmem:[%s10705_s4 + $0xf0] sm:$0xff]  }
  0x34   : > { %7980 = vmatmul.mubr.bf16.gmra.mxu0 %v633_v28  ;;  %7131 = vmatprep.subr.bf16.mxu1 %v8188_v13 }
  0x35   : > { %7983 = vmatprep.mubr.bf16.mxu0 %v634_v29  ;;  %7204 = vmatpush3.bf16.msra.mxu0 %v8183_v8  ;;  %v8678_v29 = vld [vmem:[%s10704_s3] ss:$0 sm:$0xff] }
  0x36   : > { %7205 = vmatprep.subr.bf16.mxu0 %v8186_v11 }
  0x37   : > { %7132 = vmatpush3.bf16.msra.mxu1 %v8189_v14 }
  0x38   : > { %7133 = vmatprep.subr.bf16.mxu1 %v8192_v17 }
  0x39   : > { %7206 = vmatpush3.bf16.msra.mxu0 %v8187_v12 }
  0x3a   : > { %7207 = vmatprep.subr.bf16.mxu0 %v8190_v15 }
  0x3b   : > { %7134 = vmatpush3.bf16.msra.mxu1 %v8193_v18  ;;  %v8203_v18 = vld [vmem:[%s10705_s4 + $0xb0] sm:$0xff]  }
  0x3c   : > { %7984 = vmatmul.mubr.bf16.gmra.mxu0 %v635_v34  ;;  %7159 = vmatprep.subr.bf16.mxu1 %v8200_v25 }
  0x3d   : > { %7987 = vmatprep.mubr.bf16.mxu0 %v636_v35  ;;  %7208 = vmatpush3.bf16.msra.mxu0 %v8191_v16 }
  0x3e   : > { %7209 = vmatprep.subr.bf16.mxu0 %v8194_v19 }
  0x41   : > { %7210 = vmatpush3.bf16.msra.mxu0 %v8195_v20  ;;  %v8204_v20 = vld [vmem:[%s10705_s4 + $0xe8] sm:$0xff]  }
  0x42   : > { %7211 = vmatprep.subr.bf16.mxu0 %v8196_v21 }
  0x44   : > { %7988 = vmatmul.mubr.bf16.gmra.mxu0 %v637_v40 }
  0x45   : > { %7991 = vmatprep.mubr.bf16.mxu0 %v638_v41  ;;  %7212 = vmatpush3.bf16.msra.mxu0 %v8197_v22 }
  0x46   : > { %7213 = vmatprep.subr.bf16.mxu0 %v8198_v23 }
  0x49   : > { %7214 = vmatpush3.bf16.msra.mxu0 %v8199_v24 }
  0x4a   : > { %8007 = vmatprep.subr.bf16.mxu0 %v8667_v26 }
  0x4c   : > { %7992 = vmatmul.mubr.bf16.gmra.mxu0 %v639_v46 }
  0x4d   : > { %7995 = vmatprep.mubr.bf16.mxu0 %v640_v47 }
  0x54   : > { %7996 = vmatmul.mubr.bf16.gmra.mxu0 %v641_v52 }
  0x55   : > { %7999 = vmatprep.mubr.bf16.mxu0 %v642_v53 }
  0x5c   : > { %8000 = vmatmul.mubr.bf16.gmra.mxu0 %v643_v58 }
  0x5d   : > { %8003 = vmatprep.mubr.bf16.mxu0 %v644_v59  ;;  %v1071_v59 = vld [vmem:[#allocation2 + $0x8] ss:$2 sm:$0xff] }
  0x64   : > { %8004 = vmatmul.mubr.bf16.gmra.mxu0 %v645_v62 }
  0xec   : > { %v7977_v28 = vpop.f32.mrf.mxu0 }
  0xed   : > { %v880_v30 = vmul.f32 %v7977_v28, %v8673_v27 }
  0xee   : > { %v744_v31 = vpop.f32.mrf.mxu0 }
  0xef   : > { %v8682_v32 = vadd.f32 %v8678_v29, %v880_v30  ;;  %v878_v33 = vmul.f32 %v8673_v27, %v744_v31  ;;  %v8205_v31 = vld [vmem:[%s10705_s4 + $0xa8] sm:$0xff]  }
  0xf0   : > { %v7978_v34 = vpop.f32.mrf.mxu0 }
  0xf1   : > { %10786 = vst [vmem:[#allocation7_spill] sm:$0xff] %v8682_v32  ;;  %v10748_v35 = vmax.f32 %v8682_v32, 0.0  ;;  %v8687_v36 = vadd.f32 %v8678_v29, %v878_v33  ;;  %v881_v37 = vmul.f32 %v7978_v34, %v8673_v27  ;;  %v8207_v33 = vld [vmem:[%s10705_s4 + $0xe0] sm:$0xff]  }
  0xf2   : > { %v747_v38 = vpop.f32.mrf.mxu0 }
  0xf3   : > { %10787 = vst [vmem:[#allocation8_spill] sm:$0xff] %v8687_v36  ;;  %1016 = vst [vmem:[#allocation2 + $0x48] sm:$0xff] %v10748_v35  ;;  %v10746_v39 = vmax.f32 %v8687_v36, 0.0  ;;  %v8694_v40 = vadd.f32 %v8678_v29, %v881_v37  ;;  %v879_v41 = vmul.f32 %v8673_v27, %v747_v38 }
  0xf4   : > { %v7981_v42 = vpop.f32.mrf.mxu0 }
  0xf5   : > { %10788 = vst [vmem:[#allocation9_spill] sm:$0xff] %v8694_v40  ;;  %1014 = vst [vmem:[#allocation2 + $0x28] sm:$0xff] %v10746_v39  ;;  %v10747_v43 = vmax.f32 %v8694_v40, 0.0  ;;  %v8701_v44 = vadd.f32 %v8678_v29, %v879_v41  ;;  %v884_v45 = vmul.f32 %v7981_v42, %v8673_v27 }
  0xf6   : > { %v760_v46 = vpop.f32.mrf.mxu0 }
  0xf7   : > { %10789 = vst [vmem:[#allocation10_spill] sm:$0xff] %v8701_v44  ;;  %1017 = vst [vmem:[#allocation2 + $0x50] sm:$0xff] %v10747_v43  ;;  %v10745_v47 = vmax.f32 %v8701_v44, 0.0  ;;  %v8708_v48 = vadd.f32 %v8678_v29, %v884_v45  ;;  %v882_v49 = vmul.f32 %v8673_v27, %v760_v46 }
  0xf8   : > { %v7982_v50 = vpop.f32.mrf.mxu0 }
  0xf9   : > { %10790 = vst [vmem:[#allocation11_spill] sm:$0xff] %v8708_v48  ;;  %1015 = vst [vmem:[#allocation2 + $0x30] sm:$0xff] %v10745_v47  ;;  %v10743_v51 = vmax.f32 %v8708_v48, 0.0  ;;  %v8715_v52 = vadd.f32 %v8678_v29, %v882_v49  ;;  %v885_v53 = vmul.f32 %v7982_v50, %v8673_v27 }
  0xfa   : > { %v763_v54 = vpop.f32.mrf.mxu0 }
  0xfb   : > { %10791 = vst [vmem:[#allocation12_spill] sm:$0xff] %v8715_v52  ;;  %1020 = vst [vmem:[#allocation2 + $0x88] sm:$0xff] %v10743_v51  ;;  %v10741_v55 = vmax.f32 %v8715_v52, 0.0  ;;  %v8722_v56 = vadd.f32 %v8678_v29, %v885_v53  ;;  %v883_v57 = vmul.f32 %v8673_v27, %v763_v54 }
  0xfc   : > { %v7985_v58 = vpop.f32.mrf.mxu0 }
  0xfd   : > { %10792 = vst [vmem:[#allocation13_spill] sm:$0xff] %v8722_v56  ;;  %1018 = vst [vmem:[#allocation2 + $0x68] sm:$0xff] %v10741_v55  ;;  %v10744_v60 = vmax.f32 %v8722_v56, 0.0  ;;  %v8729_v61 = vadd.f32 %v8678_v29, %v883_v57  ;;  %v888_v62 = vmul.f32 %v7985_v58, %v8673_v27  ;;  %v8209_v57 = vld [vmem:[%s10705_s4 + $0x230] sm:$0xff]  }
  0xfe   : > { %v776_v0 = vpop.f32.mrf.mxu0  ;;  %v1073_v1 = vld [vmem:[#allocation2 + $0x48] ss:$2 sm:$0xff]  ;;  %v1049_v2 = vld [vmem:[#allocation2 + $0x47] ss:$2 sm:$0xff] }
  0xff   : > { %10793 = vst [vmem:[#allocation14_spill] sm:$0xff] %v8729_v61  ;;  %1021 = vst [vmem:[#allocation2 + $0x90] sm:$0xff] %v10744_v60  ;;  %v10742_v3 = vmax.f32 %v8729_v61, 0.0  ;;  %v8736_v4 = vadd.f32 %v8678_v29, %v888_v62  ;;  %v886_v5 = vmul.f32 %v8673_v27, %v776_v0  ;;  %v1336_v6 = vpack.c.bf16 %v1073_v1, %v1071_v59  ;;  %v8210_v1 = vld [vmem:[%s10705_s4 + $0xd8] sm:$0xff]  }
 0x100   : > { %v7986_v8 = vpop.f32.mrf.mxu0  ;;  %v1335_v9 = vpack.c.bf16 %v1049_v2, %v1047_v63  ;;  %v1167_v37 = vld [vmem:[#allocation2 + $0x29] ss:$2 sm:$0xff]  ;;  %v1143_v50 = vld [vmem:[#allocation2 + $0x28] ss:$2 sm:$0xff]  ;;  %v8208_v63 = vld [vmem:[%s10705_s4 + $0xa0] sm:$0xff]  }
 0x101   : > { %10794 = vst [vmem:[#allocation15_spill] sm:$0xff] %v8736_v4  ;;  %1019 = vst [vmem:[#allocation2 + $0x70] sm:$0xff] %v10742_v3  ;;  %v10740_v11 = vmax.f32 %v8736_v4, 0.0  ;;  %v8749_v12 = vadd.f32 %v8678_v29, %v886_v5  ;;  %v889_v13 = vmul.f32 %v7986_v8, %v8673_v27  ;;  %1979 = vmatprep.mubr.bf16.mxu1 %v1336_v6 }
 0x102   : > { %v779_v14 = vpop.f32.mrf.mxu0  ;;  %1980 = vmatmul.mubr.bf16.vlgmr.msra.gmra.mxu1 %v1335_v9 }
 0x103   : > { %10795 = vst [vmem:[#allocation16_spill] sm:$0xff] %v8749_v12  ;;  %1024 = vst [vmem:[#allocation2 + $0xc8] sm:$0xff] %v10740_v11  ;;  %v10738_v15 = vmax.f32 %v8749_v12, 0.0  ;;  %v8756_v16 = vadd.f32 %v8678_v29, %v889_v13  ;;  %v887_v17 = vmul.f32 %v8673_v27, %v779_v14  ;;  %7160 = vmatpush3.bf16.msra.mxu1 %v8201_v7  ;;  %v8212_v7 = vld [vmem:[%s10705_s4 + $0x228] sm:$0xff]  }
 0x104   : > { %v7989_v19 = vpop.f32.mrf.mxu0  ;;  %7161 = vmatprep.subr.bf16.mxu1 %v8202_v10 }
 0x105   : > { %10796 = vst [vmem:[#allocation17_spill] sm:$0xff] %v8756_v16  ;;  %1022 = vst [vmem:[#allocation2 + $0xa8] sm:$0xff] %v10738_v15  ;;  %v10739_v21 = vmax.f32 %v8756_v16, 0.0  ;;  %v8769_v22 = vadd.f32 %v8678_v29, %v887_v17  ;;  %v892_v23 = vmul.f32 %v7989_v19, %v8673_v27 }
 0x106   : > { %v792_v24 = vpop.f32.mrf.mxu0  ;;  %v1075_v9 = vld [vmem:[#allocation2 + $0x88] ss:$2 sm:$0xff]  ;;  %v1051_v19 = vld [vmem:[#allocation2 + $0x87] ss:$2 sm:$0xff] }
 0x107   : > { %10797 = vst [vmem:[#allocation18_spill] sm:$0xff] %v8769_v22  ;;  %1025 = vst [vmem:[#allocation2 + $0xd0] sm:$0xff] %v10739_v21  ;;  %v10737_v25 = vmax.f32 %v8769_v22, 0.0  ;;  %v8776_v28 = vadd.f32 %v8678_v29, %v892_v23  ;;  %v890_v30 = vmul.f32 %v8673_v27, %v792_v24  ;;  %7162 = vmatpush3.bf16.msra.mxu1 %v8203_v18 }
 0x108   : > { %v7990_v34 = vpop.f32.mrf.mxu0  ;;  %v1169_v38 = vld [vmem:[#allocation2 + $0x69] ss:$2 sm:$0xff]  ;;  %v1145_v41 = vld [vmem:[#allocation2 + $0x68] ss:$2 sm:$0xff]  ;;  %7163 = vmatprep.subr.bf16.mxu1 %v8204_v20  ;;  %v8211_v20 = vld [vmem:[%s10705_s4 + $0x98] sm:$0xff]  }
 0x109   : > { %10798 = vst [vmem:[#allocation19_spill] sm:$0xff] %v8776_v28  ;;  %1023 = vst [vmem:[#allocation2 + $0xb0] sm:$0xff] %v10737_v25  ;;  %v10735_v42 = vmax.f32 %v8776_v28, 0.0  ;;  %v8789_v45 = vadd.f32 %v8678_v29, %v890_v30  ;;  %v893_v46 = vmul.f32 %v7990_v34, %v8673_v27  ;;  %v1340_v49 = vpack.c.bf16 %v1169_v38, %v1167_v37  ;;  %v8213_v30 = vld [vmem:[%s10705_s4 + $0xd0] sm:$0xff]   ;;  %v8215_v38 = vld [vmem:[%s10705_s4 + $0x220] sm:$0xff]  }
 0x10a   : > { %v795_v53 = vpop.f32.mrf.mxu0  ;;  %v1339_v54 = vpack.c.bf16 %v1145_v41, %v1143_v50  ;;  %v8214_v50 = vld [vmem:[%s10705_s4 + $0x90] sm:$0xff]  }
 0x10b   : > { %10799 = vst [vmem:[#allocation20_spill] sm:$0xff] %v8789_v45  ;;  %1028 = vst [vmem:[#allocation2 + $0x108] sm:$0xff] %v10735_v42  ;;  %v10733_v58 = vmax.f32 %v8789_v45, 0.0  ;;  %v8799_v59 = vadd.f32 %v8678_v29, %v893_v46  ;;  %v891_v62 = vmul.f32 %v8673_v27, %v795_v53  ;;  %2109 = vmatprep.mubr.bf16.mxu0 %v1340_v49  ;;  %7164 = vmatpush3.bf16.msra.mxu1 %v8205_v31 }
 0x10c   : > { %v7993_v0 = vpop.f32.mrf.mxu0  ;;  %2110 = vmatmul.mubr.bf16.vlgmr.msra.gmra.mxu0 %v1339_v54  ;;  %7165 = vmatprep.subr.bf16.mxu1 %v8207_v33  ;;  %v8216_v54 = vld [vmem:[%s10705_s4 + $0xc8] sm:$0xff]  }
 0x10d   : > { %10800 = vst [vmem:[#allocation21_spill] sm:$0xff] %v8799_v59  ;;  %1026 = vst [vmem:[#allocation2 + $0xe8] sm:$0xff] %v10733_v58  ;;  %v10736_v2 = vmax.f32 %v8799_v59, 0.0  ;;  %v8812_v5 = vadd.f32 %v8678_v29, %v891_v62  ;;  %v896_v6 = vmul.f32 %v7993_v0, %v8673_v27  ;;  %8008 = vmatpush3.bf16.msra.mxu0 %v8667_v26  ;;  %v8226_v58 = vld [vmem:[%s10705_s4 + $0x1b0] sm:$0xff]  }
 0x10e   : > { %v808_v8 = vpop.f32.mrf.mxu0  ;;  %v1077_v10 = vld [vmem:[#allocation2 + $0xc8] ss:$2 sm:$0xff]  ;;  %v1053_v13 = vld [vmem:[#allocation2 + $0xc7] ss:$2 sm:$0xff]  ;;  %8009 = vmatprep.subr.bf16.mxu0 %v8209_v57 }
 0x10f   : > { %10801 = vst [vmem:[#allocation22_spill] sm:$0xff] %v8812_v5  ;;  %1029 = vst [vmem:[#allocation2 + $0x110] sm:$0xff] %v10736_v2  ;;  %v10734_v14 = vmax.f32 %v8812_v5, 0.0  ;;  %v8823_v17 = vadd.f32 %v8678_v29, %v896_v6  ;;  %v894_v18 = vmul.f32 %v8673_v27, %v808_v8  ;;  %v1345_v26 = vpack.c.bf16 %v1077_v10, %v1075_v9  ;;  %v8219_v10 = vld [vmem:[%s10705_s4 + $0xc0] sm:$0xff]  }
 0x110   : > { %7166 = vmatpush3.bf16.msra.mxu1 %v8208_v63  ;;  %v7994_v23 = vpop.f32.mrf.mxu0  ;;  %v1344_v24 = vpack.c.bf16 %v1053_v13, %v1051_v19 }
 0x111   : > { %10802 = vst [vmem:[#allocation23_spill] sm:$0xff] %v8823_v17  ;;  %7167 = vmatprep.subr.bf16.mxu1 %v8210_v1  ;;  %1027 = vst [vmem:[#allocation2 + $0xf0] sm:$0xff] %v10734_v14  ;;  %v10726_v31 = vmax.f32 %v8823_v17, 0.0  ;;  %v8836_v33 = vadd.f32 %v8678_v29, %v894_v18  ;;  %v897_v34 = vmul.f32 %v7994_v23, %v8673_v27  ;;  %1987 = vmatprep.mubr.bf16.mxu1 %v1345_v26  ;;  %v8218_v1 = vld [vmem:[%s10705_s4 + $0x218] sm:$0xff]   ;;  %v1171_v18 = vld [vmem:[#allocation2 + $0xa9] ss:$2 sm:$0xff] }
 0x112   : > { %8010 = vmatpush3.bf16.msra.mxu0 %v8209_v57  ;;  %v811_v37 = vpop.f32.mrf.mxu0  ;;  %1988 = vmatmul.mubr.bf16.gmra.mxu1 %v1344_v24 }
 0x113   : > { %10803 = vst [vmem:[#allocation24_spill] sm:$0xff] %v8836_v33  ;;  %8011 = vmatprep.subr.bf16.mxu0 %v8212_v7  ;;  %1032 = vst [vmem:[#allocation2 + $0x148] sm:$0xff] %v10726_v31  ;;  %v10720_v41 = vmax.f32 %v8836_v33, 0.0  ;;  %v8846_v46 = vadd.f32 %v8678_v29, %v897_v34  ;;  %v895_v49 = vmul.f32 %v8673_v27, %v811_v37  ;;  %v1147_v34 = vld [vmem:[#allocation2 + $0xa8] ss:$2 sm:$0xff] }
 0x114   : > { %7168 = vmatpush3.bf16.msra.mxu1 %v8211_v20  ;;  %v7997_v53 = vpop.f32.mrf.mxu0 }
 0x115   : > { %10804 = vst [vmem:[#allocation25_spill] sm:$0xff] %v8846_v46  ;;  %7169 = vmatprep.subr.bf16.mxu1 %v8213_v30  ;;  %1030 = vst [vmem:[#allocation2 + $0x128] sm:$0xff] %v10720_v41  ;;  %v10731_v57 = vmax.f32 %v8846_v46, 0.0  ;;  %v8859_v62 = vadd.f32 %v8678_v29, %v895_v49  ;;  %v900_v63 = vmul.f32 %v7997_v53, %v8673_v27 }
 0x116   : > { %8012 = vmatpush3.bf16.msra.mxu0 %v8212_v7  ;;  %v824_v0 = vpop.f32.mrf.mxu0  ;;  %v8217_v7 = vld [vmem:[%s10705_s4 + $0x88] sm:$0xff]  }
 0x117   : > { %10805 = vst [vmem:[#allocation26_spill] sm:$0xff] %v8859_v62  ;;  %8013 = vmatprep.subr.bf16.mxu0 %v8215_v38  ;;  %1033 = vst [vmem:[#allocation2 + $0x150] sm:$0xff] %v10731_v57  ;;  %v10725_v6 = vmax.f32 %v8859_v62, 0.0  ;;  %v8869_v8 = vadd.f32 %v8678_v29, %v900_v63  ;;  %v898_v9 = vmul.f32 %v8673_v27, %v824_v0 }
 0x118   : > { %7170 = vmatpush3.bf16.msra.mxu1 %v8214_v50  ;;  %v7998_v13 = vpop.f32.mrf.mxu0  ;;  %v1173_v26 = vld [vmem:[#allocation2 + $0xe9] ss:$2 sm:$0xff]  ;;  %v1149_v19 = vld [vmem:[#allocation2 + $0xe8] ss:$2 sm:$0xff] }
 0x119   : > { %10806 = vst [vmem:[#allocation27_spill] sm:$0xff] %v8869_v8  ;;  %7171 = vmatprep.subr.bf16.mxu1 %v8216_v54  ;;  %1031 = vst [vmem:[#allocation2 + $0x130] sm:$0xff] %v10725_v6  ;;  %v10718_v20 = vmax.f32 %v8869_v8, 0.0  ;;  %v8882_v23 = vadd.f32 %v8678_v29, %v898_v9  ;;  %v901_v24 = vmul.f32 %v7998_v13, %v8673_v27  ;;  %v8221_v50 = vld [vmem:[%s10705_s4 + $0x210] sm:$0xff]   ;;  %v8222_v9 = vld [vmem:[%s10705_s4 + $0x1f8] sm:$0xff]  }
 0x11a   : > { %v1349_v30 = vpack.c.bf16 %v1173_v26, %v1171_v18  ;;  %8014 = vmatpush3.bf16.msra.mxu0 %v8215_v38  ;;  %v827_v37 = vpop.f32.mrf.mxu0  ;;  %v1348_v49 = vpack.c.bf16 %v1149_v19, %v1147_v34  ;;  %v8220_v38 = vld [vmem:[%s10705_s4 + $0x80] sm:$0xff]   ;;  %v8224_v26 = vld [vmem:[%s10705_s4 + $0x208] sm:$0xff]  }
 0x11b   : > { %10807 = vst [vmem:[#allocation28_spill] sm:$0xff] %v8882_v23  ;;  %8015 = vmatprep.subr.bf16.mxu0 %v8218_v1  ;;  %1036 = vst [vmem:[#allocation2 + $0x188] sm:$0xff] %v10718_v20  ;;  %v10717_v53 = vmax.f32 %v8882_v23, 0.0  ;;  %v8892_v54 = vadd.f32 %v8678_v29, %v901_v24  ;;  %v899_v63 = vmul.f32 %v8673_v27, %v827_v37  ;;  %v1079_v19 = vld [vmem:[#allocation2 + $0x108] ss:$2 sm:$0xff] }
 0x11c   : > { %2117 = vmatprep.mubr.bf16.mxu0 %v1349_v30  ;;  %7172 = vmatpush3.bf16.msra.mxu1 %v8217_v7  ;;  %v8001_v0 = vpop.f32.mrf.mxu0 }
 0x11d   : > { %10808 = vst [vmem:[#allocation29_spill] sm:$0xff] %v8892_v54  ;;  %2118 = vmatmul.mubr.bf16.gmra.mxu0 %v1348_v49  ;;  %7173 = vmatprep.subr.bf16.mxu1 %v8219_v10  ;;  %1034 = vst [vmem:[#allocation2 + $0x168] sm:$0xff] %v10717_v53  ;;  %v10719_v13 = vmax.f32 %v8892_v54, 0.0  ;;  %v8905_v18 = vadd.f32 %v8678_v29, %v899_v63  ;;  %v904_v7 = vmul.f32 %v8001_v0, %v8673_v27  ;;  %v1055_v63 = vld [vmem:[#allocation2 + $0x107] ss:$2 sm:$0xff] }
 0x11e   : > { %8016 = vmatpush3.bf16.msra.mxu0 %v8218_v1  ;;  %v840_v10 = vpop.f32.mrf.mxu0  ;;  %v1081_v24 = vld [vmem:[#allocation2 + $0x148] ss:$2 sm:$0xff]  ;;  %v1057_v30 = vld [vmem:[#allocation2 + $0x147] ss:$2 sm:$0xff] }
 0x11f   : > { %10809 = vst [vmem:[#allocation30_spill] sm:$0xff] %v8905_v18  ;;  %8017 = vmatprep.subr.bf16.mxu0 %v8221_v50  ;;  %1037 = vst [vmem:[#allocation2 + $0x190] sm:$0xff] %v10719_v13  ;;  %v10724_v34 = vmax.f32 %v8905_v18, 0.0  ;;  %v8915_v37 = vadd.f32 %v8678_v29, %v904_v7  ;;  %v902_v49 = vmul.f32 %v8673_v27, %v840_v10 }
 0x120   : > { %v1354_v1 = vpack.c.bf16 %v1081_v24, %v1079_v19  ;;  %7174 = vmatpush3.bf16.msra.mxu1 %v8220_v38  ;;  %v8002_v0 = vpop.f32.mrf.mxu0  ;;  %v1353_v53 = vpack.c.bf16 %v1057_v30, %v1055_v63  ;;  %v8227_v38 = vld [vmem:[%s10705_s4 + $0x200] sm:$0xff]  }
 0x121   : > { %10810 = vst [vmem:[#allocation31_spill] sm:$0xff] %v8915_v37  ;;  %7239 = vmatprep.subr.bf16.mxu1 %v8222_v9  ;;  %1035 = vst [vmem:[#allocation2 + $0x170] sm:$0xff] %v10724_v34  ;;  %v10722_v20 = vmax.f32 %v8915_v37, 0.0  ;;  %v8922_v13 = vadd.f32 %v8678_v29, %v902_v49  ;;  %v905_v41 = vmul.f32 %v8002_v0, %v8673_v27  ;;  %v1151_v34 = vld [vmem:[#allocation2 + $0x128] ss:$2 sm:$0xff] }
 0x122   : > { %1995 = vmatprep.mubr.bf16.mxu1 %v1354_v1  ;;  %8018 = vmatpush3.bf16.msra.mxu0 %v8221_v50  ;;  %v843_v7 = vpop.f32.mrf.mxu0 }
 0x123   : > { %10811 = vst [vmem:[#allocation32_spill] sm:$0xff] %v8922_v13  ;;  %1996 = vmatmul.mubr.bf16.gmra.mxu1 %v1353_v53  ;;  %8019 = vmatprep.subr.bf16.mxu0 %v8224_v26  ;;  %1040 = vst [vmem:[#allocation2 + $0x1c8] sm:$0xff] %v10722_v20  ;;  %v10721_v9 = vmax.f32 %v8922_v13, 0.0  ;;  %v8932_v10 = vadd.f32 %v8678_v29, %v905_v41  ;;  %v903_v19 = vmul.f32 %v8673_v27, %v843_v7  ;;  %v1175_v7 = vld [vmem:[#allocation2 + $0x129] ss:$2 sm:$0xff] }
 0x124   : > { %v8005_v24 = vpop.f32.mrf.mxu0 }
 0x125   : > { %10812 = vst [vmem:[#allocation33_spill] sm:$0xff] %v8932_v10  ;;  %1038 = vst [vmem:[#allocation2 + $0x1a8] sm:$0xff] %v10721_v9  ;;  %v10723_v50 = vmax.f32 %v8932_v10, 0.0  ;;  %v8939_v53 = vadd.f32 %v8678_v29, %v903_v19  ;;  %v908_v30 = vmul.f32 %v8005_v24, %v8673_v27 }
 0x126   : > { %8020 = vmatpush3.bf16.msra.mxu0 %v8224_v26  ;;  %v856_v49 = vpop.f32.mrf.mxu0 }
 0x127   : > { %10813 = vst [vmem:[#allocation34_spill] sm:$0xff] %v8939_v53  ;;  %8021 = vmatprep.subr.bf16.mxu0 %v8227_v38  ;;  %1041 = vst [vmem:[#allocation2 + $0x1d0] sm:$0xff] %v10723_v50  ;;  %v10727_v41 = vmax.f32 %v8939_v53, 0.0  ;;  %v8946_v1 = vadd.f32 %v8678_v29, %v908_v30  ;;  %v906_v63 = vmul.f32 %v8673_v27, %v856_v49 }
 0x128   : > { %v8006_v0 = vpop.f32.mrf.mxu0  ;;  %v1177_v9 = vld [vmem:[#allocation2 + $0x169] ss:$2 sm:$0xff]  ;;  %v1153_v19 = vld [vmem:[#allocation2 + $0x168] ss:$2 sm:$0xff] }
 0x129   : > { %10814 = vst [vmem:[#allocation35_spill] sm:$0xff] %v8946_v1  ;;  %1039 = vst [vmem:[#allocation2 + $0x1b0] sm:$0xff] %v10727_v41  ;;  %v10729_v26 = vmax.f32 %v8946_v1, 0.0  ;;  %v8953_v24 = vadd.f32 %v8678_v29, %v906_v63  ;;  %v909_v20 = vmul.f32 %v8006_v0, %v8673_v27  ;;  %v1358_v50 = vpack.c.bf16 %v1177_v9, %v1175_v7  ;;  %v1121_v63 = vld [vmem:[#allocation2 + $0x67] ss:$2 sm:$0xff] }
 0x12a   : > { %8022 = vmatpush3.bf16.msra.mxu0 %v8227_v38  ;;  %v859_v30 = vpop.f32.mrf.mxu0  ;;  %v1357_v6 = vpack.c.bf16 %v1153_v19, %v1151_v34  ;;  %v1083_v34 = vld [vmem:[#allocation2 + $0x188] ss:$2 sm:$0xff]  ;;  %v1059_v7 = vld [vmem:[#allocation2 + $0x187] ss:$2 sm:$0xff] }
 0x12b   : > { %10815 = vst [vmem:[#allocation36_spill] sm:$0xff] %v8953_v24  ;;  %1044 = vst [vmem:[#allocation2 + $0x208] sm:$0xff] %v10729_v26  ;;  %v10728_v49 = vmax.f32 %v8953_v24, 0.0  ;;  %v8960_v31 = vadd.f32 %v8678_v29, %v909_v20  ;;  %v907_v41 = vmul.f32 %v8673_v27, %v859_v30  ;;  %2125 = vmatprep.mubr.bf16.mxu0 %v1358_v50  ;;  %v1119_v50 = vld [vmem:[#allocation2 + $0x27] ss:$2 sm:$0xff] }
 0x12c   : > { %2126 = vmatmul.mubr.bf16.gmra.mxu0 %v1357_v6  ;;  %v1338_v30 = vpack.c.bf16 %v1121_v63, %v1119_v50  ;;  %v1125_v26 = vld [vmem:[#allocation2 + $0xe7] ss:$2 sm:$0xff] }
 0x12d   : > { %10816 = vst [vmem:[#allocation37_spill] sm:$0xff] %v8960_v31  ;;  %1042 = vst [vmem:[#allocation2 + $0x1e8] sm:$0xff] %v10728_v49  ;;  %v10730_v9 = vmax.f32 %v8960_v31, 0.0  ;;  %v8967_v38 = vadd.f32 %v8678_v29, %v907_v41  ;;  %v1095_v29 = vld [vmem:[#allocation2 + $0x9] ss:$2 sm:$0xff]  ;;  %v8223_v49 = vld [vmem:[%s10705_s4 + $0x1b8] sm:$0xff]  }
 0x12e   : > { %v1085_v0 = vld [vmem:[#allocation2 + $0x1c8] ss:$2 sm:$0xff]  ;;  %v1061_v19 = vld [vmem:[#allocation2 + $0x1c7] ss:$2 sm:$0xff] }
 0x12f   : > { %10817 = vst [vmem:[#allocation38_spill] sm:$0xff] %v8967_v38  ;;  %1045 = vst [vmem:[#allocation2 + $0x210] sm:$0xff] %v10730_v9  ;;  %v10732_v27 = vmax.f32 %v8967_v38, 0.0  ;;  %v1363_v20 = vpack.c.bf16 %v1085_v0, %v1083_v34  ;;  %v1362_v6 = vpack.c.bf16 %v1061_v19, %v1059_v7  ;;  %v1097_v41 = vld [vmem:[#allocation2 + $0x49] ss:$2 sm:$0xff] }
 0x130   : > { %v1123_v9 = vld [vmem:[#allocation2 + $0xa7] ss:$2 sm:$0xff]  ;;  %v1337_v0 = vpack.c.bf16 %v1097_v41, %v1095_v29  ;;  %v1155_v19 = vld [vmem:[#allocation2 + $0x1a8] ss:$2 sm:$0xff] }
 0x131   : > { %1043 = vst [vmem:[#allocation2 + $0x1f0] sm:$0xff] %v10732_v27  ;;  %2003 = vmatprep.mubr.bf16.mxu1 %v1363_v20  ;;  %v1179_v57 = vld [vmem:[#allocation2 + $0x1a9] ss:$2 sm:$0xff]  ;;  %v1347_v63 = vpack.c.bf16 %v1125_v26, %v1123_v9 }
 0x132   : > { %2004 = vmatmul.mubr.bf16.gmra.mxu1 %v1362_v6  ;;  %v8225_v34 = vld [vmem:[%s10705_s4 + $0x1f0] sm:$0xff]   ;;  %v8228_v29 = vld [vmem:[%s10705_s4 + $0x1e8] sm:$0xff]  }
 0x133   : > { %2044 = vmatprep.mubr.bf16.mxu1 %v1338_v30  ;;  %v1242_v30 = vld [vmem:[#allocation2 + $0x89] ss:$2 sm:$0xff] }
 0x134   : > { %v1240_v27 = vld [vmem:[#allocation2 + $0x49] ss:$2 sm:$0xff] }
 0x135   : > { %v1343_v14 = vpack.c.bf16 %v1242_v30, %v1240_v27  ;;  %v1101_v26 = vld [vmem:[#allocation2 + $0xc9] ss:$2 sm:$0xff]  ;;  %v8230_v27 = vld [vmem:[%s10705_s4 + $0x1e0] sm:$0xff]  }
 0x136   : > { %v1099_v9 = vld [vmem:[#allocation2 + $0x89] ss:$2 sm:$0xff] }
 0x137   : > { %v1346_v41 = vpack.c.bf16 %v1101_v26, %v1099_v9  ;;  %v1105_v30 = vld [vmem:[#allocation2 + $0x149] ss:$2 sm:$0xff] }
 0x138   : > { %v1181_v7 = vld [vmem:[#allocation2 + $0x1e9] ss:$2 sm:$0xff]  ;;  %v1157_v20 = vld [vmem:[#allocation2 + $0x1e8] ss:$2 sm:$0xff] }
 0x139   : > { %v1367_v6 = vpack.c.bf16 %v1181_v7, %v1179_v57  ;;  %v1366_v50 = vpack.c.bf16 %v1157_v20, %v1155_v19  ;;  %v1129_v57 = vld [vmem:[#allocation2 + $0x167] ss:$2 sm:$0xff] }
 0x13a   : > { %2045 = vmatmul.mubr.bf16.vlgmr.msra.gmra.mxu1 %v1337_v0  ;;  %v1127_v0 = vld [vmem:[#allocation2 + $0x127] ss:$2 sm:$0xff] }
 0x13b   : > { %7240 = vmatpush3.bf16.msra.mxu1 %v8223_v49  ;;  %2052 = vmatprep.mubr.bf16.mxu1 %v1347_v63  ;;  %v8229_v49 = vld [vmem:[%s10705_s4 + $0x1a8] sm:$0xff]   ;;  %v8231_v63 = vld [vmem:[%s10705_s4 + $0x1a0] sm:$0xff]  }
 0x13c   : > { %2133 = vmatprep.mubr.bf16.mxu0 %v1367_v6  ;;  %7241 = vmatprep.subr.bf16.mxu1 %v8225_v34  ;;  %v1246_v7 = vld [vmem:[#allocation2 + $0x109] ss:$2 sm:$0xff]  ;;  %v1356_v34 = vpack.c.bf16 %v1129_v57, %v1127_v0  ;;  %v8233_v57 = vld [vmem:[%s10705_s4 + $0x198] sm:$0xff]  }
 0x13d   : > { %2134 = vmatmul.mubr.bf16.gmra.mxu0 %v1366_v50  ;;  %v1250_v19 = vld [vmem:[#allocation2 + $0x189] ss:$2 sm:$0xff]  ;;  %v8232_v50 = vld [vmem:[%s10705_s4 + $0x1d8] sm:$0xff]  }
 0x13e   : > { %8023 = vmatprep.mubr.bf16.mxu0 %v1343_v14  ;;  %v1244_v20 = vld [vmem:[#allocation2 + $0xc9] ss:$2 sm:$0xff] }
 0x13f   : > { %7242 = vmatpush3.bf16.msra.mxu1 %v8226_v58  ;;  %v1352_v58 = vpack.c.bf16 %v1246_v7, %v1244_v20  ;;  %v1248_v14 = vld [vmem:[#allocation2 + $0x149] ss:$2 sm:$0xff] }
 0x140   : > { %7243 = vmatprep.subr.bf16.mxu1 %v8228_v29  ;;  %v1361_v6 = vpack.c.bf16 %v1250_v19, %v1248_v14  ;;  %v1133_v29 = vld [vmem:[#allocation2 + $0x1e7] ss:$2 sm:$0xff]  ;;  %v1218_v14 = vld [vmem:[#allocation2 + $0x88] ss:$2 sm:$0xff] }
 0x141   : > { %v1103_v26 = vld [vmem:[#allocation2 + $0x109] ss:$2 sm:$0xff] }
 0x142   : > { %2053 = vmatmul.mubr.bf16.gmra.mxu1 %v1346_v41  ;;  %v1355_v9 = vpack.c.bf16 %v1105_v30, %v1103_v26  ;;  %v1254_v41 = vld [vmem:[#allocation2 + $0x209] ss:$2 sm:$0xff]  ;;  %v1216_v30 = vld [vmem:[#allocation2 + $0x48] ss:$2 sm:$0xff] }
 0x143   : > { %7244 = vmatpush3.bf16.msra.mxu1 %v8229_v49  ;;  %2060 = vmatprep.mubr.bf16.mxu1 %v1356_v34  ;;  %v1131_v49 = vld [vmem:[#allocation2 + $0x1a7] ss:$2 sm:$0xff]  ;;  %v1342_v26 = vpack.c.bf16 %v1218_v14, %v1216_v30  ;;  %v1224_v14 = vld [vmem:[#allocation2 + $0x148] ss:$2 sm:$0xff] }
 0x144   : > { %7245 = vmatprep.subr.bf16.mxu1 %v8230_v27  ;;  %v8234_v0 = vld [vmem:[%s10705_s4 + $0x1d0] sm:$0xff]   ;;  %v1365_v7 = vpack.c.bf16 %v1133_v29, %v1131_v49  ;;  %v8236_v20 = vld [vmem:[%s10705_s4 + $0x1c8] sm:$0xff]   ;;  %v8238_v29 = vld [vmem:[%s10705_s4 + $0x1c0] sm:$0xff]  }
 0x145   : > { %8024 = vmatmul.mubr.bf16.vlgmr.msra.gmra.mxu0 %v1352_v58  ;;  %v1252_v27 = vld [vmem:[#allocation2 + $0x1c9] ss:$2 sm:$0xff]  ;;  %v1222_v49 = vld [vmem:[#allocation2 + $0x108] ss:$2 sm:$0xff] }
 0x146   : > { %8027 = vmatprep.mubr.bf16.mxu0 %v1361_v6  ;;  %v1370_v34 = vpack.c.bf16 %v1254_v41, %v1252_v27  ;;  %v8235_v19 = vld [vmem:[%s10705_s4 + $0x190] sm:$0xff]   ;;  %v8237_v6 = vld [vmem:[%s10705_s4 + $0x188] sm:$0xff]  }
 0x147   : > { %7246 = vmatpush3.bf16.msra.mxu1 %v8231_v63  ;;  %v1109_v58 = vld [vmem:[#allocation2 + $0x1c9] ss:$2 sm:$0xff] }
 0x148   : > { %7247 = vmatprep.subr.bf16.mxu1 %v8232_v50  ;;  %v1107_v63 = vld [vmem:[#allocation2 + $0x189] ss:$2 sm:$0xff] }
 0x149   : > { %v1364_v50 = vpack.c.bf16 %v1109_v58, %v1107_v63  ;;  %v1192_v41 = vld [vmem:[#allocation2 + $0x47] ss:$2 sm:$0xff] }
 0x14a   : > { %2061 = vmatmul.mubr.bf16.gmra.mxu1 %v1355_v9  ;;  %v1194_v9 = vld [vmem:[#allocation2 + $0x87] ss:$2 sm:$0xff] }
 0x14b   : > { %7248 = vmatpush3.bf16.msra.mxu1 %v8233_v57  ;;  %2068 = vmatprep.mubr.bf16.mxu1 %v1365_v7  ;;  %v8239_v57 = vld [vmem:[%s10705_s4 + $0x180] sm:$0xff]   ;;  %v1220_v7 = vld [vmem:[#allocation2 + $0xc8] ss:$2 sm:$0xff] }
 0x14c   : > { %7249 = vmatprep.subr.bf16.mxu1 %v8234_v0  ;;  %v1341_v0 = vpack.c.bf16 %v1194_v9, %v1192_v41  ;;  %v1351_v27 = vpack.c.bf16 %v1222_v49, %v1220_v7  ;;  %v1200_v30 = vld [vmem:[#allocation2 + $0x147] ss:$2 sm:$0xff]  ;;  %v8241_v7 = vld [vmem:[%s10708_s7 + $0x38] sm:$0xff]  }
 0x14d   : > { %8028 = vmatmul.mubr.bf16.gmra.mxu0 %v1370_v34  ;;  %v1198_v34 = vld [vmem:[#allocation2 + $0x107] ss:$2 sm:$0xff] }
 0x14e   : > { %v1206_v9 = vld [vmem:[#allocation2 + $0x207] ss:$2 sm:$0xff] }
 0x14f   : > { %7250 = vmatpush3.bf16.msra.mxu1 %v8235_v19  ;;  %v1226_v19 = vld [vmem:[#allocation2 + $0x188] ss:$2 sm:$0xff]  ;;  %v1204_v49 = vld [vmem:[#allocation2 + $0x1c7] ss:$2 sm:$0xff] }
 0x150   : > { %7251 = vmatprep.subr.bf16.mxu1 %v8236_v20  ;;  %v1196_v20 = vld [vmem:[#allocation2 + $0xc7] ss:$2 sm:$0xff]  ;;  %v1360_v63 = vpack.c.bf16 %v1226_v19, %v1224_v14  ;;  %v1368_v41 = vpack.c.bf16 %v1206_v9, %v1204_v49  ;;  %v8244_v19 = vld [vmem:[%s10708_s7 + $0xf8] sm:$0xff]  }
 0x151   : > { %v1350_v58 = vpack.c.bf16 %v1198_v34, %v1196_v20  ;;  %v8243_v34 = vld [vmem:[%s10708_s7 + $0x30] sm:$0xff]   ;;  %v8245_v20 = vld [vmem:[%s10708_s7 + $0xb8] sm:$0xff]   ;;  %7331 = vmatprep.subr.bf16.mxu0 %v8244_v19  ;;  %v8247_v14 = vld [vmem:[%s10708_s7 + $0x28] sm:$0xff]  }
 0x152   : > { %2069 = vmatmul.mubr.bf16.gmra.mxu1 %v1364_v50  ;;  %v1230_v50 = vld [vmem:[#allocation2 + $0x208] ss:$2 sm:$0xff]  ;;  %7332 = vmatpush3.bf16.msra.mxu0 %v8245_v20  ;;  %v8255_v9 = vld [vmem:[%s10708_s7 + $0x18] sm:$0xff]   ;;  %v8256_v49 = vld [vmem:[%s10708_s7 + $0xe0] sm:$0xff]  }
 0x153   : > { %7252 = vmatpush3.bf16.msra.mxu1 %v8237_v6  ;;  %2174 = vmatprep.mubr.bf16.mxu1 %v1342_v26  ;;  %v1202_v6 = vld [vmem:[#allocation2 + $0x187] ss:$2 sm:$0xff]  ;;  %v1228_v26 = vld [vmem:[#allocation2 + $0x1c8] ss:$2 sm:$0xff] }
 0x154   : > { %7253 = vmatprep.subr.bf16.mxu1 %v8238_v29  ;;  %v1359_v29 = vpack.c.bf16 %v1202_v6, %v1200_v30  ;;  %v8249_v6 = vld [vmem:[%s10708_s7 + $0xb0] sm:$0xff]   ;;  %v8251_v30 = vld [vmem:[%s10708_s7 + $0x20] sm:$0xff]   ;;  %v8262_v19 = vld [vmem:[%s10708_s7 + $0x48] sm:$0xff]  }
 0x155   : > { %v8263_v20 = vld [vmem:[%s10708_s7 + $0x8] sm:$0xff]  }
 0x157   : > { %7254 = vmatpush3.bf16.msra.mxu1 %v8239_v57  ;;  %v1369_v57 = vpack.c.bf16 %v1230_v50, %v1228_v26  ;;  %v8250_v50 = vld [vmem:[%s10708_s7 + $0x60] sm:$0xff]   ;;  %v8253_v26 = vld [vmem:[%s10708_s7 + $0xa8] sm:$0xff]  }
 0x15a   : > { %2175 = vmatmul.mubr.bf16.vlgmr.msra.gmra.mxu1 %v1341_v0  ;;  %v8240_v0 = vld [vmem:[%s10708_s7 + $0x78] sm:$0xff]  }
 0x15b   : > { %2182 = vmatprep.mubr.bf16.mxu1 %v1351_v27  ;;  %7291 = vmatprep.subr.bf16.mxu1 %v8240_v0  ;;  %v8242_v27 = vld [vmem:[%s10708_s7 + $0x70] sm:$0xff]  }
 0x15c   : > { %7292 = vmatpush3.bf16.msra.mxu1 %v8241_v7  ;;  %v8258_v0 = vld [vmem:[%s10708_s7 + $0x50] sm:$0xff]  }
 0x15d   : > { %7293 = vmatprep.subr.bf16.mxu1 %v8242_v27  ;;  %v8259_v7 = vld [vmem:[%s10708_s7 + $0x10] sm:$0xff]   ;;  %v8260_v27 = vld [vmem:[%s10708_s7 + $0xd8] sm:$0xff]  }
 0x160   : > { %7294 = vmatpush3.bf16.msra.mxu1 %v8243_v34  ;;  %v8261_v34 = vld [vmem:[%s10708_s7 + $0x98] sm:$0xff]  }
 0x162   : > { %2183 = vmatmul.mubr.bf16.gmra.mxu1 %v1350_v58  ;;  %v8246_v58 = vld [vmem:[%s10708_s7 + $0x68] sm:$0xff]  }
 0x163   : > { %2190 = vmatprep.mubr.bf16.mxu1 %v1360_v63  ;;  %7295 = vmatprep.subr.bf16.mxu1 %v8246_v58  ;;  %v8248_v63 = vld [vmem:[%s10708_s7 + $0xf0] sm:$0xff]  }
 0x164   : > { %7296 = vmatpush3.bf16.msra.mxu1 %v8247_v14  ;;  %7333 = vmatprep.subr.bf16.mxu0 %v8248_v63  ;;  %v8264_v58 = vld [vmem:[%s10708_s7 + $0xd0] sm:$0xff]   ;;  %v8266_v63 = vld [vmem:[%s10708_s7 + $0x40] sm:$0xff]  }
 0x165   : > { %7334 = vmatpush3.bf16.msra.mxu0 %v8249_v6  ;;  %7297 = vmatprep.subr.bf16.mxu1 %v8250_v50  ;;  %v8265_v14 = vld [vmem:[%s10708_s7 + $0x90] sm:$0xff]   ;;  %v8267_v6 = vld [vmem:[%s10708_s7] sm:$0xff]   ;;  %v8268_v50 = vld [vmem:[%s10708_s7 + $0xc8] sm:$0xff]  }
 0x168   : > { %7298 = vmatpush3.bf16.msra.mxu1 %v8251_v30  ;;  %v8269_v30 = vld [vmem:[%s10708_s7 + $0x88] sm:$0xff]  }
 0x16a   : > { %2191 = vmatmul.mubr.bf16.gmra.mxu1 %v1359_v29  ;;  %v8252_v29 = vld [vmem:[%s10708_s7 + $0xe8] sm:$0xff]  }
 0x16b   : > { %2198 = vmatprep.mubr.bf16.mxu1 %v1369_v57  ;;  %7335 = vmatprep.subr.bf16.mxu0 %v8252_v29  ;;  %v8254_v57 = vld [vmem:[%s10708_s7 + $0x58] sm:$0xff]  }
 0x16c   : > { %7336 = vmatpush3.bf16.msra.mxu0 %v8253_v26  ;;  %7299 = vmatprep.subr.bf16.mxu1 %v8254_v57  ;;  %v8270_v29 = vld [vmem:[%s10708_s7 + $0x178] sm:$0xff]   ;;  %v8271_v26 = vld [vmem:[%s10708_s7 + $0xc0] sm:$0xff]  }
 0x16d   : > { %7300 = vmatpush3.bf16.msra.mxu1 %v8255_v9  ;;  %7337 = vmatprep.subr.bf16.mxu0 %v8256_v49  ;;  %v8273_v57 = vld [vmem:[%s10708_s7 + $0x80] sm:$0xff]   ;;  %v8276_v9 = vld [vmem:[%s10708_s7 + $0x1f8] sm:$0xff]  }
 0x16e   : > { %7301 = vmatprep.subr.bf16.mxu1 %v8258_v0 }
 0x171   : > { %7302 = vmatpush3.bf16.msra.mxu1 %v8259_v7 }
 0x172   : > { %2199 = vmatmul.mubr.bf16.gmra.mxu1 %v1368_v41  ;;  %v8257_v41 = vld [vmem:[%s10708_s7 + $0xa0] sm:$0xff]   ;;  %7303 = vmatprep.subr.bf16.mxu1 %v8262_v19 }
 0x173   : > { %7338 = vmatpush3.bf16.msra.mxu0 %v8257_v41 }
 0x174   : > { %7339 = vmatprep.subr.bf16.mxu0 %v8260_v27 }
 0x175   : > { %7304 = vmatpush3.bf16.msra.mxu1 %v8263_v20 }
 0x176   : > { %7305 = vmatprep.subr.bf16.mxu1 %v8266_v63 }
 0x177   : > { %7340 = vmatpush3.bf16.msra.mxu0 %v8261_v34 }
 0x178   : > { %7341 = vmatprep.subr.bf16.mxu0 %v8264_v58 }
 0x179   : > { %7306 = vmatpush3.bf16.msra.mxu1 %v8267_v6 }
 0x17a   : > { %7371 = vmatprep.subr.bf16.mxu1 %v8270_v29 }
 0x17b   : > { %7342 = vmatpush3.bf16.msra.mxu0 %v8265_v14 }
 0x17c   : > { %7343 = vmatprep.subr.bf16.mxu0 %v8268_v50 }
 0x17f   : > { %7344 = vmatpush3.bf16.msra.mxu0 %v8269_v30 }
 0x180   : > { %7345 = vmatprep.subr.bf16.mxu0 %v8271_v26 }
 0x183   : > { %7346 = vmatpush3.bf16.msra.mxu0 %v8273_v57 }
 0x184   : > { %7411 = vmatprep.subr.bf16.mxu0 %v8276_v9 }
 0x1c2   : > { %v7135_v49 = vpop.f32.mrf.mxu1 }
 0x1c4   : > { %v7136_v41 = vpop.f32.mrf.mxu1 }
 0x1c5   : > { %v7137_v45 = vadd.f32 %v7136_v41, %v7135_v49 }
 0x1c6   : > { %v7138_v0 = vpop.f32.mrf.mxu1 }
 0x1c8   : > { %v7139_v7 = vpop.f32.mrf.mxu1 }
 0x1c9   : > { %v7140_v16 = vadd.f32 %v7139_v7, %v7138_v0 }
 0x1cc   : > { %v7215_v19 = vpop.f32.mrf.mxu0 }
 0x1ce   : > { %v7216_v58 = vpop.f32.mrf.mxu0 }
 0x1cf   : > { %v7217_v4 = vadd.f32 %v7216_v58, %v7215_v19 }
 0x1d0   : > { %v7218_v6 = vpop.f32.mrf.mxu0 }
 0x1d2   : > { %v7141_v27 = vpop.f32.mrf.mxu1  ;;  %v7219_v30 = vpop.f32.mrf.mxu0 }
 0x1d3   : > { %v7220_v32 = vadd.f32 %v7219_v30, %v7218_v6 }
 0x1d4   : > { %v7142_v34 = vpop.f32.mrf.mxu1 }
 0x1d6   : > { %v9121_v20 = vpop.f32.mrf.mxu1 }
 0x1d8   : > { %v9123_v14 = vpop.f32.mrf.mxu1 }
 0x1dd   : > { %v9129_v29 = vpop.f32.mrf.mxu0 }
 0x1df   : > { %v7222_v57 = vpop.f32.mrf.mxu0 }
 0x1e1   : > { %v9137_v2 = vpop.f32.mrf.mxu0 }
 0x1e3   : > { %v9125_v63 = vpop.f32.mrf.mxu1  ;;  %v9143_v21 = vpop.f32.mrf.mxu0 }
 0x1e5   : > { %v9127_v50 = vpop.f32.mrf.mxu1 }
 0x1e7   : > { %v9131_v26 = vpop.f32.mrf.mxu1 }
 0x1e9   : > { %v9133_v9 = vpop.f32.mrf.mxu1 }
 0x1ea   : > { %v7152_v6 = vadd.f32 %v9133_v9, %v9131_v26 }
 0x1ec   : > { %v9147_v55 = vpop.f32.mrf.mxu0 }
 0x1ee   : > { %v9149_v60 = vpop.f32.mrf.mxu0 }
 0x1f0   : > { %v9151_v43 = vpop.f32.mrf.mxu0 }
 0x1f2   : > { %v9135_v42 = vpop.f32.mrf.mxu1  ;;  %v9153_v24 = vpop.f32.mrf.mxu0 }
 0x1f4   : > { %v9139_v25 = vpop.f32.mrf.mxu1 }
 0x1f6   : > { %v9141_v15 = vpop.f32.mrf.mxu1 }
 0x1f8   : > { %v9145_v11 = vpop.f32.mrf.mxu1 }
 0x1fa   : > { %v7175_v3 = vpop.f32.mrf.mxu1 }
 0x1fc   : > { %v7176_v51 = vpop.f32.mrf.mxu1 }
 0x1fd   : > { %v9155_v1 = vpop.f32.mrf.mxu0  ;;  %v7177_v17 = vadd.f32 %v7176_v51, %v7175_v3  ;;  %v7143_v51 = vadd.f32 %v7142_v34, %v7141_v27 }
 0x1fe   : > { %v7178_v47 = vpop.f32.mrf.mxu1 }
 0x1ff   : > { %v9157_v37 = vpop.f32.mrf.mxu0  ;;  %v2047_v59 = vadd.f32 %v7177_v17, %v7137_v45  ;;  %v9174_v45 = vld [vmem:[%s10706_s5] ss:$0 sm:$0xff] }
 0x200   : > { %v7179_v39 = vpop.f32.mrf.mxu1 }
 0x201   : > { %v9159_v23 = vpop.f32.mrf.mxu0  ;;  %v7180_v22 = vadd.f32 %v7179_v39, %v7178_v47  ;;  %v2112_v44 = vadd.f32 %v7217_v4, %v2047_v59 }
 0x202   : > { %v7181_v35 = vpop.f32.mrf.mxu1 }
 0x203   : > { %v9163_v33 = vpop.f32.mrf.mxu0  ;;  %v2050_v48 = vadd.f32 %v7180_v22, %v7140_v16 }
 0x204   : > { %v7182_v38 = vpop.f32.mrf.mxu1  ;;  %10818 = vst [vmem:[#allocation39_spill] sm:$0xff] %v9163_v33 }
 0x205   : > { %v8025_v5 = vpop.f32.mrf.mxu0  ;;  %v7183_v56 = vadd.f32 %v7182_v38, %v7181_v35  ;;  %v2115_v41 = vadd.f32 %v7220_v32, %v2050_v48  ;;  %v7146_v35 = vadd.f32 %v9123_v14, %v9121_v20  ;;  %v9197_v14 = vld [vmem:[#allocation2] sm:$0xff] }
 0x206   : > { %v7184_v31 = vpop.f32.mrf.mxu1 }
 0x207   : > { %v2241_v52 = vpop.f32.mrf.mxu0  ;;  %v2055_v47 = vadd.f32 %v7183_v56, %v7143_v51 }
 0x208   : > { %v7185_v53 = vpop.f32.mrf.mxu1 }
 0x209   : > { %v7186_v33 = vadd.f32 %v7185_v53, %v7184_v31  ;;  %v8026_v49 = vpop.f32.mrf.mxu0  ;;  %v7226_v31 = vadd.f32 %v9143_v21, %v9137_v2  ;;  %v7149_v53 = vadd.f32 %v9127_v50, %v9125_v63 }
 0x20a   : > { %v7187_v13 = vpop.f32.mrf.mxu1 }
 0x20b   : > { %v2058_v16 = vadd.f32 %v7186_v33, %v7146_v35  ;;  %v2244_v22 = vpop.f32.mrf.mxu0 }
 0x20c   : > { %v7188_v10 = vpop.f32.mrf.mxu1 }
 0x20d   : > { %v7189_v56 = vadd.f32 %v7188_v10, %v7187_v13  ;;  %v9193_v13 = vpop.f32.mrf.mxu0  ;;  %v2123_v19 = vadd.f32 %v7226_v31, %v2058_v16 }
 0x20e   : > { %v7190_v18 = vpop.f32.mrf.mxu1 }
 0x20f   : > { %v2063_v34 = vadd.f32 %v7189_v56, %v7149_v53 }
 0x210   : > { %v7191_v54 = vpop.f32.mrf.mxu1 }
 0x211   : > { %v7192_v10 = vadd.f32 %v7191_v54, %v7190_v18  ;;  %v7229_v54 = vadd.f32 %v9149_v60, %v9147_v55  ;;  %v7232_v55 = vadd.f32 %v9153_v24, %v9151_v43  ;;  %v7155_v60 = vadd.f32 %v9139_v25, %v9135_v42  ;;  %v8272_v43 = vld [vmem:[%s10708_s7 + $0x138] sm:$0xff]  }
 0x212   : > { %v9161_v8 = vpop.f32.mrf.mxu1 }
 0x214   : > { %v9165_v62 = vpop.f32.mrf.mxu1 }
 0x215   : > { %v7195_v51 = vadd.f32 %v9165_v62, %v9161_v8 }
 0x216   : > { %v9167_v46 = vpop.f32.mrf.mxu1 }
 0x218   : > { %v9169_v28 = vpop.f32.mrf.mxu1 }
 0x21a   : > { %v7255_v12 = vpop.f32.mrf.mxu1 }
 0x21c   : > { %v7256_v61 = vpop.f32.mrf.mxu1 }
 0x21d   : > { %v7257_v36 = vadd.f32 %v7256_v61, %v7255_v12  ;;  %v9181_v61 = vld [vmem:[%s10707_s6] ss:$0 sm:$0xff] }
 0x21e   : > { %v7258_v40 = vpop.f32.mrf.mxu1 }
 0x21f   : > { %v2177_v3 = vadd.f32 %v7257_v36, %v2112_v44  ;;  %v7223_v44 = vadd.f32 %v7222_v57, %v9129_v29  ;;  %v2066_v57 = vadd.f32 %v7192_v10, %v7152_v6  ;;  %v8280_v6 = vld [vmem:[%s10708_s7 + $0x1f0] sm:$0xff]  }
 0x220   : > { %v7259_v39 = vpop.f32.mrf.mxu1 }
 0x221   : > { %v2242_v17 = vadd.f32 %v2241_v52, %v2177_v3  ;;  %v7260_v0 = vadd.f32 %v7259_v39, %v7258_v40  ;;  %v2120_v48 = vadd.f32 %v7223_v44, %v2055_v47  ;;  %v2128_v39 = vadd.f32 %v7229_v54, %v2063_v34 }
 0x222   : > { %v7261_v36 = vpop.f32.mrf.mxu1  ;;  %v2131_v44 = vadd.f32 %v7232_v55, %v2066_v57 }
 0x223   : > { %v2279_v4 = vmul.f32 %v9174_v45, %v2242_v17  ;;  %v2180_v12 = vadd.f32 %v7260_v0, %v2115_v41  ;;  %v2319_v41 = vld [vmem:[#allocation3 + $0x7] sm:$0xff] }
 0x224   : > { %v7262_v52 = vpop.f32.mrf.mxu1 }
 0x225   : > { %v2294_v32 = vadd.f32 %v9181_v61, %v2279_v4  ;;  %v2245_v40 = vadd.f32 %v2244_v22, %v2180_v12  ;;  %v7263_v59 = vadd.f32 %v7262_v52, %v7261_v36  ;;  %v2071_v36 = vadd.f32 %v7195_v51, %v7155_v60  ;;  %v8274_v22 = vld [vmem:[%s10708_s7 + $0x170] sm:$0xff]  }
 0x226   : > { %v7264_v38 = vpop.f32.mrf.mxu1 }
 0x227   : > { %v9190_v7 = vmax.f32 %v2294_v32, 0.0  ;;  %v2280_v27 = vmul.f32 %v9174_v45, %v2245_v40  ;;  %v2185_v33 = vadd.f32 %v7263_v59, %v2120_v48  ;;  %v2351_v59 = vld [vmem:[#allocation3 + $0x9] sm:$0xff] }
 0x228   : > { %v7265_v20 = vpop.f32.mrf.mxu1 }
 0x229   : > { %2311 = vst [vmem:[#allocation3 + $0x20] sm:$0xff] %v9190_v7  ;;  %v2295_v58 = vadd.f32 %v9181_v61, %v2280_v27  ;;  %v2250_v21 = vadd.f32 %v8025_v5, %v2185_v33  ;;  %v7266_v2 = vadd.f32 %v7265_v20, %v7264_v38  ;;  %v2537_v63 = vpack.c.bf16 %v9190_v7, %v9197_v14  ;;  %v2257_v5 = vpop.f32.mrf.mxu0  ;;  %v8278_v20 = vld [vmem:[%s10708_s7 + $0x168] sm:$0xff]  }
 0x22a   : > { %v7267_v50 = vpop.f32.mrf.mxu1 }
 0x22b   : > { %v9205_v18 = vmax.f32 %v2295_v58, 0.0  ;;  %v2281_v30 = vmul.f32 %v9174_v45, %v2250_v21  ;;  %v2188_v29 = vadd.f32 %v7266_v2, %v2123_v19  ;;  %3180 = vmatprep.mubr.bf16.mxu1 %v2537_v63  ;;  %v9219_v35 = vpop.f32.mrf.mxu0  ;;  %v8277_v19 = vld [vmem:[%s10708_s7 + $0x1b8] sm:$0xff]   ;;  %v10819_v58 = vld [vmem:[#allocation39_spill] sm:$0xff] }
 0x22c   : > { %v7268_v3 = vpop.f32.mrf.mxu1  ;;  %v7238_v21 = vadd.f32 %v10819_v58, %v9159_v23  ;;  %v8297_v58 = vld [vmem:[%s10708_s7 + $0x190] sm:$0xff]  }
 0x22d   : > { %2312 = vst [vmem:[#allocation3 + $0x38] sm:$0xff] %v9205_v18  ;;  %v2296_v26 = vadd.f32 %v9181_v61, %v2281_v30  ;;  %v2253_v9 = vadd.f32 %v8026_v49, %v2188_v29  ;;  %v7269_v47 = vadd.f32 %v7268_v3, %v7267_v50  ;;  %v7198_v49 = vadd.f32 %v9169_v28, %v9167_v46  ;;  %v2260_v53 = vpop.f32.mrf.mxu0 }
 0x22e   : > { %v7270_v17 = vpop.f32.mrf.mxu1  ;;  %v7158_v28 = vadd.f32 %v9145_v11, %v9141_v15  ;;  %v7235_v46 = vadd.f32 %v9157_v37, %v9155_v1  ;;  %v8275_v1 = vld [vmem:[%s10708_s7 + $0x130] sm:$0xff]  }
 0x22f   : > { %v9216_v0 = vmax.f32 %v2296_v26, 0.0  ;;  %v2282_v62 = vmul.f32 %v9174_v45, %v2253_v9  ;;  %v2193_v8 = vadd.f32 %v7269_v47, %v2128_v39  ;;  %v8279_v26 = vld [vmem:[%s10708_s7 + $0x128] sm:$0xff]   ;;  %v8281_v9 = vld [vmem:[%s10708_s7 + $0x1b0] sm:$0xff]   ;;  %v8282_v47 = vld [vmem:[%s10708_s7 + $0x160] sm:$0xff]  }
 0x230   : > { %v7271_v4 = vpop.f32.mrf.mxu1  ;;  %v2320_v12 = vld [vmem:[#allocation3 + $0x1f] sm:$0xff]  ;;  %v2074_v38 = vadd.f32 %v7198_v49, %v7158_v28  ;;  %v2136_v11 = vadd.f32 %v7235_v46, %v2071_v36 }
 0x231   : > { %2313 = vst [vmem:[#allocation3 + $0x50] sm:$0xff] %v9216_v0  ;;  %v2297_v25 = vadd.f32 %v9181_v61, %v2282_v62  ;;  %v2258_v42 = vadd.f32 %v2257_v5, %v2193_v8  ;;  %v7272_v24 = vadd.f32 %v7271_v4, %v7270_v17  ;;  %v2536_v16 = vpack.c.bf16 %v2320_v12, %v2319_v41  ;;  %v9242_v31 = vld [vmem:[#allocation3 + $0x21] sm:$0xff] }
 0x232   : > { %v7273_v56 = vpop.f32.mrf.mxu1  ;;  %v9237_v52 = vpack.c.bf16 %v9216_v0, %v9205_v18  ;;  %v2538_v63 = vpack.c.bf16 %v9242_v31, %v2351_v59  ;;  %v2139_v29 = vadd.f32 %v7238_v21, %v2074_v38  ;;  %v8298_v21 = vld [vmem:[%s10708_s7 + $0x140] sm:$0xff]  }
 0x233   : > { %v9239_v32 = vmax.f32 %v2297_v25, 0.0  ;;  %v2283_v40 = vmul.f32 %v9174_v45, %v2258_v42  ;;  %v2196_v48 = vadd.f32 %v7272_v24, %v2131_v44  ;;  %3181 = vmatmul.mubr.bf16.vlgmr.msra.gmra.mxu1 %v2536_v16  ;;  %v8288_v42 = vld [vmem:[%s10708_s7 + $0x1e0] sm:$0xff]  }
 0x234   : > { %v7274_v15 = vpop.f32.mrf.mxu1  ;;  %7372 = vmatpush3.bf16.msra.mxu1 %v8272_v43  ;;  %v2368_v37 = vld [vmem:[#allocation3 + $0x37] sm:$0xff]  ;;  %3188 = vmatprep.mubr.bf16.mxu1 %v9237_v52  ;;  %v8285_v43 = vld [vmem:[%s10708_s7 + $0x1a8] sm:$0xff]  }
 0x235   : > { %2314 = vst [vmem:[#allocation3 + $0x68] sm:$0xff] %v9239_v32  ;;  %v2298_v27 = vadd.f32 %v9181_v61, %v2283_v40  ;;  %v2261_v33 = vadd.f32 %v2260_v53, %v2196_v48  ;;  %v7275_v34 = vadd.f32 %v7274_v15, %v7273_v56  ;;  %v2539_v10 = vpack.c.bf16 %v2368_v37, %v2320_v12  ;;  %v2353_v4 = vld [vmem:[#allocation3 + $0x39] sm:$0xff]  ;;  %v8290_v40 = vld [vmem:[%s10708_s7 + $0x150] sm:$0xff]  }
 0x236   : > { %7373 = vmatprep.subr.bf16.mxu1 %v8274_v22  ;;  %v7276_v2 = vpop.f32.mrf.mxu1  ;;  %v8283_v12 = vld [vmem:[%s10708_s7 + $0x120] sm:$0xff]   ;;  %v8287_v56 = vld [vmem:[%s10708_s7 + $0x118] sm:$0xff]  }
 0x237   : > { %v9262_v50 = vmax.f32 %v2298_v27, 0.0  ;;  %v2284_v54 = vmul.f32 %v9174_v45, %v2261_v33  ;;  %v2201_v30 = vadd.f32 %v7275_v34, %v2136_v11  ;;  %3245 = vmatprep.mubr.bf16.mxu0 %v2539_v10  ;;  %v8294_v33 = vld [vmem:[%s10708_s7 + $0x148] sm:$0xff]   ;;  %v8296_v34 = vld [vmem:[%s10708_s7 + $0x1d0] sm:$0xff]  }
 0x238   : > { %v7277_v5 = vpop.f32.mrf.mxu1  ;;  %3246 = vmatmul.mubr.bf16.vlgmr.msra.gmra.mxu0 %v2538_v63  ;;  %7374 = vmatpush3.bf16.msra.mxu1 %v8275_v1  ;;  %v2322_v57 = vld [vmem:[#allocation3 + $0x4f] sm:$0xff]  ;;  %v8293_v1 = vld [vmem:[%s10708_s7 + $0x198] sm:$0xff]  }
 0x239   : > { %2315 = vst [vmem:[#allocation3 + $0x80] sm:$0xff] %v9262_v50  ;;  %v2299_v23 = vadd.f32 %v9181_v61, %v2284_v54  ;;  %v2266_v51 = vadd.f32 %v9193_v13, %v2201_v30  ;;  %v7278_v3 = vadd.f32 %v7277_v5, %v7276_v2  ;;  %7412 = vmatpush3.bf16.msra.mxu0 %v8277_v19  ;;  %v8284_v13 = vld [vmem:[%s10708_s7 + $0x1e8] sm:$0xff]   ;;  %v9285_v41 = vld [vmem:[#allocation3 + $0x51] sm:$0xff]  ;;  %v8299_v5 = vld [vmem:[%s10708_s7 + $0x100] sm:$0xff]  }
 0x23a   : > { %7375 = vmatprep.subr.bf16.mxu1 %v8278_v20  ;;  %v9274_v39 = vpack.c.bf16 %v2322_v57, %v2368_v37  ;;  %7413 = vmatprep.subr.bf16.mxu0 %v8280_v6  ;;  %v9289_v62 = vpack.c.bf16 %v9262_v50, %v9239_v32  ;;  %v9302_v25 = vpack.c.bf16 %v9285_v41, %v2353_v4  ;;  %v8291_v37 = vld [vmem:[%s10708_s7 + $0x110] sm:$0xff]   ;;  %v8295_v20 = vld [vmem:[%s10708_s7 + $0x108] sm:$0xff]  }
 0x23b   : > { %v9282_v55 = vmax.f32 %v2299_v23, 0.0  ;;  %v2285_v60 = vmul.f32 %v9174_v45, %v2266_v51  ;;  %v2204_v17 = vadd.f32 %v7278_v3, %v2139_v29  ;;  %v2541_v2 = vpack.c.bf16 %v2353_v4, %v9242_v31  ;;  %v8300_v6 = vld [vmem:[%s10708_s7 + $0x1c8] sm:$0xff]   ;;  %v8302_v23 = vld [vmem:[%s10708_s7 + $0x238] sm:$0xff]   ;;  %v8303_v51 = vld [vmem:[%s10708_s7 + $0x1c0] sm:$0xff]  }
 0x23c   : > { %3189 = vmatmul.mubr.bf16.gmra.mxu1 %v9274_v39  ;;  %v2370_v8 = vld [vmem:[#allocation3 + $0x67] sm:$0xff]  ;;  %v2540_v3 = vpack.c.bf16 %v9205_v18, %v9190_v7  ;;  %v2549_v18 = vpack.c.bf16 %v9239_v32, %v9216_v0  ;;  %v8309_v32 = vld [vmem:[%s10708_s7 + $0x210] sm:$0xff]   ;;  %v8312_v4 = vld [vmem:[%s10711_s10 + $0x78] sm:$0xff]  }
 0x23d   : > { %2316 = vst [vmem:[#allocation3 + $0x98] sm:$0xff] %v9282_v55  ;;  %v2300_v36 = vadd.f32 %v9181_v61, %v2285_v60  ;;  %v2269_v49 = vadd.f32 %v9219_v35, %v2204_v17  ;;  %7376 = vmatpush3.bf16.msra.mxu1 %v8279_v26  ;;  %7414 = vmatpush3.bf16.msra.mxu0 %v8281_v9  ;;  %v8286_v35 = vld [vmem:[%s10708_s7 + $0x158] sm:$0xff]   ;;  %v2355_v15 = vld [vmem:[#allocation3 + $0x69] sm:$0xff]  ;;  %v8304_v26 = vld [vmem:[%s10708_s7 + $0x180] sm:$0xff]  }
 0x23e   : > { %v2548_v44 = vpack.c.bf16 %v2370_v8, %v2322_v57  ;;  %7377 = vmatprep.subr.bf16.mxu1 %v8282_v47  ;;  %7415 = vmatprep.subr.bf16.mxu0 %v8284_v13  ;;  %v8301_v57 = vld [vmem:[%s10708_s7 + $0x188] sm:$0xff]   ;;  %v8305_v9 = vld [vmem:[%s10708_s7 + $0x230] sm:$0xff]   ;;  %v2550_v47 = vpack.c.bf16 %v2355_v15, %v9285_v41  ;;  %v2558_v0 = vpack.c.bf16 %v9282_v55, %v9262_v50 }
 0x23f   : > { %v9310_v24 = vmax.f32 %v2300_v36, 0.0  ;;  %v2286_v16 = vmul.f32 %v9174_v45, %v2269_v49  ;;  %3196 = vmatprep.mubr.bf16.mxu1 %v9289_v62  ;;  %v8289_v45 = vld [vmem:[%s10708_s7 + $0x1a0] sm:$0xff]   ;;  %v8306_v7 = vld [vmem:[%s10708_s7 + $0x228] sm:$0xff]  }
 0x240   : > { %3253 = vmatprep.mubr.bf16.mxu0 %v2548_v44  ;;  %v2324_v22 = vld [vmem:[#allocation3 + $0x7f] sm:$0xff]  ;;  %v8310_v41 = vld [vmem:[%s10708_s7 + $0x208] sm:$0xff]  }
 0x241   : > { %3254 = vmatmul.mubr.bf16.gmra.mxu0 %v9302_v25  ;;  %2317 = vst [vmem:[#allocation3 + $0xb0] sm:$0xff] %v9310_v24  ;;  %v2301_v28 = vadd.f32 %v9181_v61, %v2286_v16  ;;  %7378 = vmatpush3.bf16.msra.mxu1 %v8283_v12  ;;  %v9317_v46 = vpack.c.bf16 %v2324_v22, %v2370_v8  ;;  %v8292_v61 = vld [vmem:[%s10708_s7 + $0x1d8] sm:$0xff]   ;;  %v9333_v59 = vld [vmem:[#allocation3 + $0x81] sm:$0xff] }
 0x242   : > { %7416 = vmatpush3.bf16.msra.mxu0 %v8285_v43  ;;  %7379 = vmatprep.subr.bf16.mxu1 %v8286_v35  ;;  %v9337_v53 = vpack.c.bf16 %v9310_v24, %v9282_v55  ;;  %v9348_v27 = vpack.c.bf16 %v9333_v59, %v2355_v15  ;;  %v8311_v55 = vld [vmem:[%s10708_s7 + $0x200] sm:$0xff]   ;;  %v8313_v12 = vld [vmem:[%s10711_s10 + $0x38] sm:$0xff]   ;;  %v8314_v43 = vld [vmem:[%s10711_s10 + $0x70] sm:$0xff]  }
 0x243   : > { %7417 = vmatprep.subr.bf16.mxu0 %v8288_v42  ;;  %v9331_v48 = vmax.f32 %v2301_v28, 0.0  ;;  %v2423_v8 = vld [vmem:[#allocation3 + $0xdf] sm:$0xff]  ;;  %v8316_v35 = vld [vmem:[%s10711_s10 + $0x68] sm:$0xff]  }
 0x244   : > { %3197 = vmatmul.mubr.bf16.gmra.mxu1 %v9317_v46  ;;  %v2372_v38 = vld [vmem:[#allocation3 + $0x97] sm:$0xff]  ;;  %v2455_v49 = vld [vmem:[#allocation3 + $0xe1] sm:$0xff] }
 0x245   : > { %2318 = vst [vmem:[#allocation3 + $0xc8] sm:$0xff] %v9331_v48  ;;  %7380 = vmatpush3.bf16.msra.mxu1 %v8287_v56  ;;  %v2557_v11 = vpack.c.bf16 %v2372_v38, %v2324_v22  ;;  %3204 = vmatprep.mubr.bf16.mxu1 %v9337_v53  ;;  %v2357_v29 = vld [vmem:[#allocation3 + $0x99] sm:$0xff]  ;;  %v2567_v50 = vpack.c.bf16 %v9331_v48, %v9310_v24  ;;  %v8317_v42 = vld [vmem:[%s10711_s10 + $0x28] sm:$0xff]  }
 0x246   : > { %7418 = vmatpush3.bf16.msra.mxu0 %v8289_v45  ;;  %7381 = vmatprep.subr.bf16.mxu1 %v8290_v40  ;;  %v2559_v13 = vpack.c.bf16 %v2357_v29, %v9333_v59  ;;  %v8318_v24 = vld [vmem:[%s10711_s10 + $0x60] sm:$0xff]   ;;  %v8320_v22 = vld [vmem:[%s10711_s10 + $0xf8] sm:$0xff]   ;;  %v8324_v45 = vld [vmem:[%s10711_s10 + $0xf0] sm:$0xff]  }
 0x247   : > { %7419 = vmatprep.subr.bf16.mxu0 %v8292_v61  ;;  %3261 = vmatprep.mubr.bf16.mxu0 %v2557_v11  ;;  %v8319_v16 = vld [vmem:[%s10711_s10 + $0x20] sm:$0xff]   ;;  %v8321_v28 = vld [vmem:[%s10711_s10 + $0xb8] sm:$0xff]   ;;  %v8325_v40 = vld [vmem:[%s10711_s10 + $0xb0] sm:$0xff]  }
 0x248   : > { %v2326_v10 = vld [vmem:[#allocation3 + $0xaf] sm:$0xff]  ;;  %v8323_v56 = vld [vmem:[%s10711_s10 + $0x18] sm:$0xff]   ;;  %v8332_v15 = vld [vmem:[%s10711_s10 + $0xe0] sm:$0xff]  }
 0x249   : > { %3262 = vmatmul.mubr.bf16.gmra.mxu0 %v9348_v27  ;;  %7382 = vmatpush3.bf16.msra.mxu1 %v8291_v37  ;;  %v9358_v19 = vpack.c.bf16 %v2326_v10, %v2372_v38  ;;  %v2358_v63 = vld [vmem:[#allocation3 + $0xb1] sm:$0xff]  ;;  %v8328_v59 = vld [vmem:[%s10711_s10 + $0xe8] sm:$0xff]   ;;  %v8333_v37 = vld [vmem:[%s10711_s10 + $0xa0] sm:$0xff]  }
 0x24a   : > { %7420 = vmatpush3.bf16.msra.mxu0 %v8293_v1  ;;  %7383 = vmatprep.subr.bf16.mxu1 %v8294_v33  ;;  %v2565_v31 = vpack.c.bf16 %v2358_v63, %v2357_v29  ;;  %v8326_v61 = vld [vmem:[%s10711_s10 + $0x50] sm:$0xff]   ;;  %v8330_v38 = vld [vmem:[%s10711_s10 + $0x48] sm:$0xff]   ;;  %v8334_v1 = vld [vmem:[%s10711_s10 + $0x40] sm:$0xff]  }
 0x24b   : > { %7421 = vmatprep.subr.bf16.mxu0 %v8296_v34  ;;  %v8331_v11 = vld [vmem:[%s10711_s10 + $0x8] sm:$0xff]   ;;  %v8336_v33 = vld [vmem:[%s10711_s10 + $0xd8] sm:$0xff]   ;;  %v4760_v34 = vpack.c.bf16 %v9197_v14, %v9197_v14 }
 0x24c   : > { %3205 = vmatmul.mubr.bf16.gmra.mxu1 %v9358_v19  ;;  %v9374_v54 = vld [vmem:[#allocation3 + $0xc7] sm:$0xff]  ;;  %v8342_v29 = vld [vmem:[%s10711_s10 + $0x138] sm:$0xff]  }
 0x24d   : > { %7384 = vmatpush3.bf16.msra.mxu1 %v8295_v20  ;;  %3310 = vmatprep.mubr.bf16.mxu1 %v2541_v2  ;;  %v2566_v30 = vpack.c.bf16 %v9374_v54, %v2326_v10  ;;  %v2406_v60 = vld [vmem:[#allocation3 + $0xc9] sm:$0xff]  ;;  %v2569_v36 = vpack.c.bf16 %v2423_v8, %v9374_v54  ;;  %v8337_v10 = vld [vmem:[%s10711_s10 + $0x98] sm:$0xff]   ;;  %v8345_v54 = vld [vmem:[%s10711_s10 + $0x80] sm:$0xff]  }
 0x24e   : > { %7422 = vmatpush3.bf16.msra.mxu0 %v8297_v58  ;;  %7385 = vmatprep.subr.bf16.mxu1 %v8298_v21  ;;  %v2568_v17 = vpack.c.bf16 %v2406_v60, %v2358_v63  ;;  %v2571_v44 = vpack.c.bf16 %v2455_v49, %v2406_v60  ;;  %v3896_v20 = vld [vmem:[#allocation2 + $0xf] sm:$0xff] }
 0x24f   : > { %3269 = vmatprep.mubr.bf16.mxu0 %v2566_v30  ;;  %7423 = vmatprep.subr.bf16.mxu0 %v8300_v6  ;;  %v8338_v21 = vld [vmem:[%s10711_s10 + $0xd0] sm:$0xff]   ;;  %v8343_v63 = vld [vmem:[%s10711_s10 + $0x88] sm:$0xff]   ;;  %v8344_v6 = vld [vmem:[%s10711_s10 + $0xc0] sm:$0xff]  }
 0x250   : > { %v8339_v2 = vld [vmem:[%s10711_s10 + $0x90] sm:$0xff]   ;;  %v8340_v30 = vld [vmem:[%s10711_s10 + $0x178] sm:$0xff]  }
 0x251   : > { %3270 = vmatmul.mubr.bf16.gmra.mxu0 %v2565_v31  ;;  %7386 = vmatpush3.bf16.msra.mxu1 %v8299_v5  ;;  %v8346_v5 = vld [vmem:[%s10711_s10 + $0x170] sm:$0xff]  }
 0x252   : > { %3375 = vmatprep.mubr.bf16.mxu0 %v9237_v52  ;;  %7424 = vmatpush3.bf16.msra.mxu0 %v8301_v57  ;;  %v8307_v52 = vld [vmem:[%s10708_s7 + $0x220] sm:$0xff]   ;;  %v8348_v57 = vld [vmem:[%s10711_s10 + $0x168] sm:$0xff]  }
 0x253   : > { %8031 = vmatprep.subr.bf16.mxu1 %v8302_v23  ;;  %7425 = vmatprep.subr.bf16.mxu0 %v8303_v51  ;;  %v8350_v51 = vld [vmem:[%s10711_s10 + $0x160] sm:$0xff]  }
 0x254   : > { %3311 = vmatmul.mubr.bf16.vlgmr.msra.gmra.mxu1 %v2540_v3 }
 0x255   : > { %8032 = vmatpush3.bf16.msra.mxu1 %v8302_v23  ;;  %3318 = vmatprep.mubr.bf16.mxu1 %v2550_v47  ;;  %v8349_v23 = vld [vmem:[%s10711_s10 + $0x128] sm:$0xff]  }
 0x256   : > { %7426 = vmatpush3.bf16.msra.mxu0 %v8304_v26  ;;  %8033 = vmatprep.subr.bf16.mxu1 %v8305_v9 }
 0x257   : > { %7463 = vmatprep.subr.bf16.mxu0 %v8312_v4 }
 0x259   : > { %3376 = vmatmul.mubr.bf16.vlgmr.msra.gmra.mxu0 %v9274_v39  ;;  %8034 = vmatpush3.bf16.msra.mxu1 %v8305_v9  ;;  %v8308_v39 = vld [vmem:[%s10708_s7 + $0x218] sm:$0xff]  }
 0x25a   : > { %3383 = vmatprep.mubr.bf16.mxu0 %v9289_v62  ;;  %8035 = vmatprep.subr.bf16.mxu1 %v8306_v7  ;;  %v2570_v62 = vpack.c.bf16 %v9197_v14, %v9331_v48  ;;  %v8327_v48 = vld [vmem:[%s10711_s10 + $0x10] sm:$0xff]   ;;  %v8341_v14 = vld [vmem:[%s10711_s10 + $0xc8] sm:$0xff]  }
 0x25b   : > { %7464 = vmatpush3.bf16.msra.mxu0 %v8313_v12 }
 0x25c   : > { %3319 = vmatmul.mubr.bf16.gmra.mxu1 %v2549_v18  ;;  %7465 = vmatprep.subr.bf16.mxu0 %v8314_v43  ;;  %v8351_v18 = vld [vmem:[%s10711_s10 + $0x120] sm:$0xff]   ;;  %v8355_v43 = vld [vmem:[%s10711_s10 + $0x118] sm:$0xff]  }
 0x25d   : > { %8036 = vmatpush3.bf16.msra.mxu1 %v8306_v7  ;;  %3326 = vmatprep.mubr.bf16.mxu1 %v2559_v13 }
 0x25e   : > { %8037 = vmatprep.subr.bf16.mxu1 %v8307_v52 }
 0x261   : > { %3384 = vmatmul.mubr.bf16.gmra.mxu0 %v9317_v46  ;;  %8038 = vmatpush3.bf16.msra.mxu1 %v8307_v52  ;;  %v8322_v46 = vld [vmem:[%s10711_s10 + $0x58] sm:$0xff]  }
 0x262   : > { %3391 = vmatprep.mubr.bf16.mxu0 %v9337_v53  ;;  %8039 = vmatprep.subr.bf16.mxu1 %v8308_v39  ;;  %v8329_v53 = vld [vmem:[%s10711_s10 + $0xa8] sm:$0xff]  }
 0x264   : > { %3327 = vmatmul.mubr.bf16.gmra.mxu1 %v2558_v0 }
 0x265   : > { %8040 = vmatpush3.bf16.msra.mxu1 %v8308_v39  ;;  %3334 = vmatprep.mubr.bf16.mxu1 %v2568_v17 }
 0x266   : > { %8041 = vmatprep.subr.bf16.mxu1 %v8309_v32 }
 0x269   : > { %3392 = vmatmul.mubr.bf16.gmra.mxu0 %v9358_v19  ;;  %8042 = vmatpush3.bf16.msra.mxu1 %v8309_v32  ;;  %v3895_v19 = vld [vmem:[#allocation2 + $0x7] sm:$0xff] }
 0x26a   : > { %3399 = vmatprep.mubr.bf16.mxu0 %v2570_v62  ;;  %8043 = vmatprep.subr.bf16.mxu1 %v8310_v41  ;;  %v4759_v58 = vpack.c.bf16 %v3896_v20, %v3895_v19 }
 0x26c   : > { %3335 = vmatmul.mubr.bf16.gmra.mxu1 %v2567_v50  ;;  %v8352_v50 = vld [vmem:[%s10711_s10 + $0x1f8] sm:$0xff]  }
 0x26d   : > { %8044 = vmatpush3.bf16.msra.mxu1 %v8310_v41  ;;  %8047 = vmatprep.mubr.bf16.mxu1 %v9302_v25  ;;  %v8315_v25 = vld [vmem:[%s10711_s10 + $0x30] sm:$0xff]  }
 0x26e   : > { %8045 = vmatprep.subr.bf16.mxu1 %v8311_v55  ;;  %7466 = vmatpush3.bf16.msra.mxu0 %v8315_v25 }
 0x26f   : > { %7467 = vmatprep.subr.bf16.mxu0 %v8316_v35 }
 0x271   : > { %3400 = vmatmul.mubr.bf16.gmra.mxu0 %v2569_v36  ;;  %8046 = vmatpush3.bf16.msra.mxu1 %v8311_v55  ;;  %v8354_v55 = vld [vmem:[%s10711_s10 + $0x158] sm:$0xff]  }
 0x272   : > { %7468 = vmatpush3.bf16.msra.mxu0 %v8317_v42  ;;  %7575 = vmatprep.subr.bf16.mxu1 %v8320_v22 }
 0x273   : > { %7469 = vmatprep.subr.bf16.mxu0 %v8318_v24  ;;  %5511 = vmatprep.mubr.bf16.mxu0 %v4760_v34 }
 0x274   : > { %8048 = vmatmul.mubr.bf16.vlgmr.msra.gmra.mxu1 %v9348_v27  ;;  %v8335_v27 = vld [vmem:[%s10711_s10] sm:$0xff]  }
 0x275   : > { %8051 = vmatprep.mubr.bf16.mxu1 %v2565_v31  ;;  %7576 = vmatpush3.bf16.msra.mxu1 %v8321_v28  ;;  %v8347_v31 = vld [vmem:[%s10711_s10 + $0x130] sm:$0xff]  }
 0x276   : > { %7470 = vmatpush3.bf16.msra.mxu0 %v8319_v16  ;;  %7577 = vmatprep.subr.bf16.mxu1 %v8324_v45 }
 0x277   : > { %7471 = vmatprep.subr.bf16.mxu0 %v8322_v46 }
 0x279   : > { %7578 = vmatpush3.bf16.msra.mxu1 %v8325_v40  ;;  %v8358_v40 = vld [vmem:[%s10711_s10 + $0x150] sm:$0xff]  }
 0x27a   : > { %7472 = vmatpush3.bf16.msra.mxu0 %v8323_v56  ;;  %7579 = vmatprep.subr.bf16.mxu1 %v8328_v59 }
 0x27b   : > { %7473 = vmatprep.subr.bf16.mxu0 %v8326_v61 }
 0x27c   : > { %8052 = vmatmul.mubr.bf16.gmra.mxu1 %v2571_v44 }
 0x27d   : > { %7580 = vmatpush3.bf16.msra.mxu1 %v8329_v53 }
 0x27e   : > { %7474 = vmatpush3.bf16.msra.mxu0 %v8327_v48  ;;  %7581 = vmatprep.subr.bf16.mxu1 %v8332_v15  ;;  %v8359_v15 = vld [vmem:[%s10711_s10 + $0x110] sm:$0xff]  }
 0x27f   : > { %7475 = vmatprep.subr.bf16.mxu0 %v8330_v38 }
 0x281   : > { %7582 = vmatpush3.bf16.msra.mxu1 %v8333_v37 }
 0x282   : > { %7476 = vmatpush3.bf16.msra.mxu0 %v8331_v11  ;;  %7583 = vmatprep.subr.bf16.mxu1 %v8336_v33 }
 0x283   : > { %7477 = vmatprep.subr.bf16.mxu0 %v8334_v1 }
 0x285   : > { %7584 = vmatpush3.bf16.msra.mxu1 %v8337_v10 }
 0x286   : > { %7478 = vmatpush3.bf16.msra.mxu0 %v8335_v27  ;;  %7585 = vmatprep.subr.bf16.mxu1 %v8338_v21  ;;  %v8362_v21 = vld [vmem:[%s10711_s10 + $0x148] sm:$0xff]  }
 0x287   : > { %7687 = vmatprep.subr.bf16.mxu0 %v8340_v30 }
 0x289   : > { %5512 = vmatmul.mubr.bf16.vlgmr.msra.gmra.mxu0 %v4759_v58  ;;  %7586 = vmatpush3.bf16.msra.mxu1 %v8339_v2 }
 0x28a   : > { %7587 = vmatprep.subr.bf16.mxu1 %v8341_v14  ;;  %7688 = vmatpush3.bf16.msra.mxu0 %v8342_v29  ;;  %v3511_v14 = vlaneseq }
 0x28b   : > { %7689 = vmatprep.subr.bf16.mxu0 %v8346_v5 }
 0x28c   : > { %v3512_v29 = vshrl.u32 %v3511_v14, 7 }
 0x28d   : > { %7588 = vmatpush3.bf16.msra.mxu1 %v8343_v63 }
 0x28e   : > { %7589 = vmatprep.subr.bf16.mxu1 %v8344_v6  ;;  %7690 = vmatpush3.bf16.msra.mxu0 %v8347_v31  ;;  %v9657_v14 = vsub.s32 4, %v3512_v29 }
 0x28f   : > { %7691 = vmatprep.subr.bf16.mxu0 %v8348_v57  ;;  %v8363_v57 = vld [vmem:[%s10711_s10 + $0x108] sm:$0xff]  }
 0x290   : > { %10824 = vst [vmem:[#allocation43_spill] sm:$0xff] %v9657_v14 }
 0x291   : > { %7590 = vmatpush3.bf16.msra.mxu1 %v8345_v54 }
 0x292   : > { %7692 = vmatpush3.bf16.msra.mxu0 %v8349_v23  ;;  %7799 = vmatprep.subr.bf16.mxu1 %v8352_v50  ;;  %v9647_v50 = vsub.s32 0, %v3512_v29 }
 0x293   : > { %7693 = vmatprep.subr.bf16.mxu0 %v8350_v51 }
 0x294   : > { %10821 = vst [vmem:[#allocation40_spill] sm:$0xff] %v9647_v50 }
 0x296   : > { %7694 = vmatpush3.bf16.msra.mxu0 %v8351_v18 }
 0x297   : > { %7695 = vmatprep.subr.bf16.mxu0 %v8354_v55  ;;  %v9649_v55 = vsub.s32 1, %v3512_v29 }
 0x299   : > { %10822 = vst [vmem:[#allocation41_spill] sm:$0xff] %v9649_v55 }
 0x29a   : > { %7696 = vmatpush3.bf16.msra.mxu0 %v8355_v43  ;;  %v9651_v43 = vsub.s32 2, %v3512_v29 }
 0x29b   : > { %7697 = vmatprep.subr.bf16.mxu0 %v8358_v40 }
 0x29e   : > { %7698 = vmatpush3.bf16.msra.mxu0 %v8359_v15 }
 0x29f   : > { %7699 = vmatprep.subr.bf16.mxu0 %v8362_v21  ;;  %v9655_v21 = vsub.s32 3, %v3512_v29 }
 0x2a1   : > { %10823 = vst [vmem:[#allocation42_spill] sm:$0xff] %v9655_v21  ;;  %v9674_v21 = vsub.s32 7, %v3512_v29 }
 0x2a2   : > { %7700 = vmatpush3.bf16.msra.mxu0 %v8363_v57  ;;  %v9667_v57 = vsub.s32 6, %v3512_v29 }
 0x2f3   : > { %v9553_v3 = vpop.f32.mrf.mxu1 }
 0x2f5   : > { %v9555_v26 = vpop.f32.mrf.mxu1 }
 0x2f7   : > { %v9557_v9 = vpop.f32.mrf.mxu1 }
 0x2f8   : > { %v9559_v47 = vpop.f32.mrf.mxu0 }
 0x2f9   : > { %v9561_v7 = vpop.f32.mrf.mxu1 }
 0x2fa   : > { %v9566_v52 = vpop.f32.mrf.mxu0 }
 0x2fb   : > { %v7349_v40 = vadd.f32 %v9566_v52, %v9559_v47  ;;  %v7309_v47 = vadd.f32 %v9555_v26, %v9553_v3 }
 0x2fc   : > { %v9568_v13 = vpop.f32.mrf.mxu1  ;;  %v9570_v39 = vpop.f32.mrf.mxu0 }
 0x2fe   : > { %v9572_v60 = vpop.f32.mrf.mxu1  ;;  %v9574_v0 = vpop.f32.mrf.mxu0 }
 0x300   : > { %v9576_v32 = vpop.f32.mrf.mxu1 }
 0x301   : > { %v7353_v17 = vpop.f32.mrf.mxu0 }
 0x302   : > { %v9578_v41 = vpop.f32.mrf.mxu1 }
 0x303   : > { %v7354_v62 = vpop.f32.mrf.mxu0  ;;  %v7318_v3 = vadd.f32 %v9578_v41, %v9576_v32 }
 0x304   : > { %v9586_v8 = vpop.f32.mrf.mxu1  ;;  %v7355_v51 = vadd.f32 %v7354_v62, %v7353_v17  ;;  %v7315_v17 = vadd.f32 %v9572_v60, %v9568_v13  ;;  %v7352_v62 = vadd.f32 %v9574_v0, %v9570_v39  ;;  %v7312_v13 = vadd.f32 %v9561_v7, %v9557_v9 }
 0x305   : > { %v9588_v36 = vpop.f32.mrf.mxu0 }
 0x306   : > { %v9590_v49 = vpop.f32.mrf.mxu1  ;;  %v3256_v39 = vadd.f32 %v7355_v51, %v7315_v17 }
 0x307   : > { %v9592_v44 = vpop.f32.mrf.mxu0  ;;  %v7321_v26 = vadd.f32 %v9590_v49, %v9586_v8  ;;  %v8366_v8 = vld [vmem:[%s10711_s10 + $0x140] sm:$0xff]  }
 0x308   : > { %v9594_v4 = vpop.f32.mrf.mxu1  ;;  %v7358_v52 = vadd.f32 %v9592_v44, %v9588_v36  ;;  %7701 = vmatprep.subr.bf16.mxu0 %v8366_v8 }
 0x309   : > { %v9596_v12 = vpop.f32.mrf.mxu0 }
 0x30a   : > { %v9601_v25 = vpop.f32.mrf.mxu1 }
 0x30b   : > { %v7360_v35 = vpop.f32.mrf.mxu0 }
 0x30c   : > { %v9603_v42 = vpop.f32.mrf.mxu1  ;;  %v7361_v14 = vadd.f32 %v7360_v35, %v9596_v12  ;;  %v3251_v12 = vadd.f32 %v7352_v62, %v7312_v13 }
 0x30d   : > { %v9605_v24 = vpop.f32.mrf.mxu0 }
 0x30e   : > { %v9607_v16 = vpop.f32.mrf.mxu1 }
 0x30f   : > { %v9609_v22 = vpop.f32.mrf.mxu0  ;;  %v7327_v32 = vadd.f32 %v9607_v16, %v9603_v42 }
 0x310   : > { %v9611_v28 = vpop.f32.mrf.mxu1  ;;  %v7364_v36 = vadd.f32 %v9609_v22, %v9605_v24 }
 0x311   : > { %v9613_v46 = vpop.f32.mrf.mxu0 }
 0x312   : > { %v9615_v56 = vpop.f32.mrf.mxu1 }
 0x313   : > { %v9617_v45 = vpop.f32.mrf.mxu0 }
 0x314   : > { %v7387_v48 = vpop.f32.mrf.mxu1 }
 0x315   : > { %v9622_v61 = vpop.f32.mrf.mxu0 }
 0x316   : > { %v7388_v53 = vpop.f32.mrf.mxu1 }
 0x317   : > { %v9624_v59 = vpop.f32.mrf.mxu0  ;;  %v7389_v60 = vadd.f32 %v7388_v53, %v7387_v48  ;;  %v3259_v48 = vadd.f32 %v7358_v52, %v7318_v3  ;;  %v7324_v53 = vadd.f32 %v9601_v25, %v9594_v4  ;;  %v7330_v4 = vadd.f32 %v9615_v56, %v9611_v28 }
 0x318   : > { %v9626_v38 = vpop.f32.mrf.mxu1  ;;  %v7367_v25 = vadd.f32 %v9617_v45, %v9613_v46  ;;  %v7370_v28 = vadd.f32 %v9624_v59, %v9622_v61 }
 0x319   : > { %v7427_v11 = vpop.f32.mrf.mxu0 }
 0x31a   : > { %v9631_v37 = vpop.f32.mrf.mxu1  ;;  %v3275_v52 = vadd.f32 %v7370_v28, %v7330_v4 }
 0x31b   : > { %v7428_v1 = vpop.f32.mrf.mxu0  ;;  %v7392_v24 = vadd.f32 %v9631_v37, %v9626_v38 }
 0x31c   : > { %v7393_v27 = vpop.f32.mrf.mxu1  ;;  %v7429_v35 = vadd.f32 %v7428_v1, %v7427_v11 }
 0x31d   : > { %v9633_v33 = vpop.f32.mrf.mxu0 }
 0x31e   : > { %v7394_v34 = vpop.f32.mrf.mxu1 }
 0x31f   : > { %v9635_v10 = vpop.f32.mrf.mxu0  ;;  %v7395_v55 = vadd.f32 %v7394_v34, %v7393_v27  ;;  %v3248_v34 = vadd.f32 %v7349_v40, %v7309_v47  ;;  %v8367_v47 = vld [vmem:[%s10711_s10 + $0x100] sm:$0xff]  }
 0x320   : > { %v7396_v19 = vpop.f32.mrf.mxu1  ;;  %v7432_v38 = vadd.f32 %v9635_v10, %v9633_v33  ;;  %7702 = vmatpush3.bf16.msra.mxu0 %v8367_v47 }
 0x321   : > { %v7433_v20 = vpop.f32.mrf.mxu0  ;;  %v3313_v49 = vadd.f32 %v7389_v60, %v3248_v34 }
 0x322   : > { %v7397_v58 = vpop.f32.mrf.mxu1 }
 0x323   : > { %v7434_v2 = vpop.f32.mrf.mxu0  ;;  %v7398_v9 = vadd.f32 %v7397_v58, %v7396_v19  ;;  %v3267_v19 = vadd.f32 %v7364_v36, %v7324_v53  ;;  %v9702_v58 = vld [vmem:[%s10709_s8] ss:$0 sm:$0xff] }
 0x324   : > { %v7399_v63 = vpop.f32.mrf.mxu1  ;;  %v7435_v0 = vadd.f32 %v7434_v2, %v7433_v20  ;;  %v3264_v20 = vadd.f32 %v7361_v14, %v7321_v26  ;;  %v3272_v14 = vadd.f32 %v7367_v25, %v7327_v32  ;;  %v10828_v53 = vld [vmem:[#allocation41_spill] sm:$0xff] }
 0x325   : > { %v7436_v6 = vpop.f32.mrf.mxu0  ;;  %v3324_v37 = vadd.f32 %v7398_v9, %v3259_v48 }
 0x326   : > { %v7400_v54 = vpop.f32.mrf.mxu1 }
 0x327   : > { %v7437_v30 = vpop.f32.mrf.mxu0  ;;  %v7401_v42 = vadd.f32 %v7400_v54, %v7399_v63  ;;  %v9713_v54 = vld [vmem:[%s10710_s9] ss:$0 sm:$0xff] }
 0x328   : > { %v9640_v5 = vpop.f32.mrf.mxu1  ;;  %v7438_v22 = vadd.f32 %v7437_v30, %v7436_v6  ;;  %v3378_v30 = vadd.f32 %v7429_v35, %v3313_v49  ;;  %v10830_v49 = vld [vmem:[#allocation43_spill] sm:$0xff] }
 0x329   : > { %v9642_v31 = vpop.f32.mrf.mxu0  ;;  %v3329_v17 = vadd.f32 %v7401_v42, %v3264_v20 }
 0x32a   : > { %10820 = vst [vmem:[#allocation39_spill] sm:$0xff] %v9642_v31  ;;  %v7403_v23 = vpop.f32.mrf.mxu1  ;;  %v9659_v31 = vsub.s32 5, %v3512_v29  ;;  %v3321_v29 = vadd.f32 %v7395_v55, %v3256_v39  ;;  %v3316_v55 = vadd.f32 %v7392_v24, %v3251_v12  ;;  %v3389_v40 = vadd.f32 %v7438_v22, %v3324_v37 }
 0x32b   : > { %v7440_v18 = vpop.f32.mrf.mxu0  ;;  %v7404_v46 = vadd.f32 %v7403_v23, %v9640_v5 }
 0x32c   : > { %v7405_v15 = vpop.f32.mrf.mxu1  ;;  %10825 = vst [vmem:[#allocation44_spill] sm:$0xff] %v9659_v31  ;;  %v3386_v1 = vadd.f32 %v7435_v0, %v3321_v29 }
 0x32d   : > { %v9665_v50 = vpop.f32.mrf.mxu0  ;;  %v3332_v13 = vadd.f32 %v7404_v46, %v3267_v19 }
 0x32e   : > { %v7406_v31 = vpop.f32.mrf.mxu1 }
 0x32f   : > { %v9678_v27 = vpop.f32.mrf.mxu0  ;;  %v7407_v63 = vadd.f32 %v7406_v31, %v7405_v15  ;;  %v3381_v15 = vadd.f32 %v7432_v38, %v3316_v55 }
 0x330   : > { %v7408_v44 = vpop.f32.mrf.mxu1 }
 0x331   : > { %v7445_v7 = vpop.f32.mrf.mxu0  ;;  %v10826_v56 = vld [vmem:[#allocation39_spill] sm:$0xff]  ;;  %v3337_v39 = vadd.f32 %v7407_v63, %v3272_v14 }
 0x332   : > { %v7409_v41 = vpop.f32.mrf.mxu1  ;;  %v7441_v45 = vadd.f32 %v7440_v18, %v10826_v56 }
 0x333   : > { %v7446_v11 = vpop.f32.mrf.mxu0  ;;  %v7410_v62 = vadd.f32 %v7409_v41, %v7408_v44  ;;  %v7444_v44 = vadd.f32 %v9678_v27, %v9665_v50  ;;  %v10829_v41 = vld [vmem:[#allocation42_spill] sm:$0xff]  ;;  %v10831_v22 = vld [vmem:[#allocation44_spill] sm:$0xff] }
 0x334   : > { %v8049_v16 = vpop.f32.mrf.mxu1  ;;  %v7447_v61 = vadd.f32 %v7446_v11, %v7445_v7  ;;  %v3394_v0 = vadd.f32 %v7441_v45, %v3329_v17  ;;  %v10827_v7 = vld [vmem:[#allocation40_spill] sm:$0xff] }
 0x335   : > { %v7448_v2 = vpop.f32.mrf.mxu0  ;;  %v3451_v6 = vadd.f32 %v8049_v16, %v3386_v1  ;;  %v3340_v12 = vadd.f32 %v7410_v62, %v3275_v52  ;;  %v9749_v17 = vld [vmem:[%s10711_s10 + $0x238] sm:$0xff]  }
 0x336   : > { %v3442_v51 = vpop.f32.mrf.mxu1  ;;  %v3402_v29 = vadd.f32 %v7447_v61, %v3337_v39  ;;  %8055 = vmatprep.subr.bf16.mxu0 %v9749_v17 }
 0x337   : > { %v3482_v33 = vmul.f32 %v9702_v58, %v3451_v6  ;;  %v3443_v10 = vadd.f32 %v3442_v51, %v3378_v30  ;;  %v7449_v23 = vpop.f32.mrf.mxu0 }
 0x338   : > { %v8050_v59 = vpop.f32.mrf.mxu1  ;;  %v7450_v35 = vadd.f32 %v7449_v23, %v7448_v2  ;;  %v3397_v2 = vadd.f32 %v7444_v44, %v3332_v13 }
 0x339   : > { %v3497_v5 = vadd.f32 %v9713_v54, %v3482_v33  ;;  %v3480_v31 = vmul.f32 %v9702_v58, %v3443_v10  ;;  %v3454_v18 = vadd.f32 %v8050_v59, %v3389_v40 }
 0x33a   : > { %v3445_v60 = vpop.f32.mrf.mxu1  ;;  %v3405_v38 = vadd.f32 %v7450_v35, %v3340_v12 }
 0x33b   : > { %v3505_v34 = vmax.f32 %v3497_v5, 0.0  ;;  %v3495_v3 = vadd.f32 %v9713_v54, %v3480_v31  ;;  %v3483_v26 = vmul.f32 %v9702_v58, %v3454_v18  ;;  %v3446_v36 = vadd.f32 %v3445_v60, %v3381_v15 }
 0x33c   : > { %v8053_v9 = vpop.f32.mrf.mxu1 }
 0x33d   : > { %v3522_v48 = vrot.slane %v3505_v34, %v10827_v7  ;;  %v3570_v20 = vrot.slane %v3505_v34, %v10828_v53  ;;  %v3618_v32 = vrot.slane %v3505_v34, %v9651_v43  ;;  %v3666_v8 = vrot.slane %v3505_v34, %v10829_v41 }
 0x33e   : > { %v3714_v24 = vrot.slane %v3505_v34, %v10830_v49  ;;  %v3762_v11 = vrot.slane %v3505_v34, %v10831_v22  ;;  %v3810_v1 = vrot.slane %v3505_v34, %v9667_v57  ;;  %v3858_v50 = vrot.slane %v3505_v34, %v9674_v21  ;;  %v3458_v27 = vpop.f32.mrf.mxu1 }
 0x33f   : > { %3547 = vst [vmem:[#allocation2 + $0xa8] sm:$0x3] %v3522_v48  ;;  %3548 = vst [vmem:[#allocation2 + $0xc8] sm:$0x3] %v3522_v48  ;;  %v3503_v19 = vmax.f32 %v3495_v3, 0.0  ;;  %v3498_v4 = vadd.f32 %v9713_v54, %v3483_v26  ;;  %v3481_v25 = vmul.f32 %v9702_v58, %v3446_v36  ;;  %v3467_v42 = vadd.f32 %v8053_v9, %v3402_v29  ;;  %v9764_v3 = vld [vmem:[#allocation2 + $0x9] sm:$0xff] }
 0x340   : > { %3595 = vst [vmem:[#allocation2 + $0xaa] sm:$0x3] %v3570_v20  ;;  %3596 = vst [vmem:[#allocation2 + $0xca] sm:$0x3] %v3570_v20  ;;  %v3459_v16 = vadd.f32 %v3458_v27, %v3394_v0  ;;  %v8054_v37 = vpop.f32.mrf.mxu1  ;;  %v9766_v26 = vld [vmem:[#allocation2 + $0x11] sm:$0xff] }
 0x341   : > { %3643 = vst [vmem:[#allocation2 + $0xac] sm:$0x3] %v3618_v32  ;;  %3644 = vst [vmem:[#allocation2 + $0xcc] sm:$0x3] %v3618_v32  ;;  %v3514_v6 = vrot.slane %v3503_v19, %v10827_v7  ;;  %v3562_v30 = vrot.slane %v3503_v19, %v10828_v53  ;;  %v3610_v28 = vrot.slane %v3503_v19, %v9651_v43  ;;  %v3506_v33 = vmax.f32 %v3498_v4, 0.0 }
 0x342   : > { %3691 = vst [vmem:[#allocation2 + $0xae] sm:$0x3] %v3666_v8  ;;  %3692 = vst [vmem:[#allocation2 + $0xce] sm:$0x3] %v3666_v8  ;;  %v3658_v46 = vrot.slane %v3503_v19, %v10829_v41  ;;  %v3706_v56 = vrot.slane %v3503_v19, %v10830_v49  ;;  %v3754_v45 = vrot.slane %v3503_v19, %v10831_v22  ;;  %v3461_v55 = vpop.f32.mrf.mxu1 }
 0x343   : > { %3739 = vst [vmem:[#allocation2 + $0xb0] sm:$0x3] %v3714_v24  ;;  %3740 = vst [vmem:[#allocation2 + $0xd0] sm:$0x3] %v3714_v24  ;;  %v3802_v63 = vrot.slane %v3503_v19, %v9667_v57  ;;  %v3850_v51 = vrot.slane %v3503_v19, %v9674_v21  ;;  %v3496_v10 = vadd.f32 %v9713_v54, %v3481_v25 }
 0x344   : > { %3787 = vst [vmem:[#allocation2 + $0xb2] sm:$0x3] %v3762_v11  ;;  %3788 = vst [vmem:[#allocation2 + $0xd2] sm:$0x3] %v3762_v11  ;;  %v3486_v40 = vmul.f32 %v9702_v58, %v3467_v42  ;;  %v3484_v14 = vmul.f32 %v9702_v58, %v3459_v16  ;;  %v3470_v62 = vadd.f32 %v8054_v37, %v3405_v38 }
 0x345   : > { %3835 = vst [vmem:[#allocation2 + $0xb4] sm:$0x3] %v3810_v1  ;;  %3836 = vst [vmem:[#allocation2 + $0xd4] sm:$0x3] %v3810_v1  ;;  %v3462_v61 = vadd.f32 %v3461_v55, %v3397_v2  ;;  %v3526_v59 = vrot.slane %v3506_v33, %v10827_v7  ;;  %v3574_v5 = vrot.slane %v3506_v33, %v10828_v53  ;;  %v3504_v13 = vmax.f32 %v3496_v10, 0.0 }
 0x346   : > { %3883 = vst [vmem:[#allocation2 + $0xb6] sm:$0x3] %v3858_v50  ;;  %3884 = vst [vmem:[#allocation2 + $0xd6] sm:$0x3] %v3858_v50  ;;  %v3622_v23 = vrot.slane %v3506_v33, %v9651_v43  ;;  %v3670_v31 = vrot.slane %v3506_v33, %v10829_v41  ;;  %v3718_v18 = vrot.slane %v3506_v33, %v10830_v49 }
 0x347   : > { %3543 = vst [vmem:[#allocation2 + $0x28] sm:$0x3] %v3514_v6  ;;  %3544 = vst [vmem:[#allocation2 + $0x48] sm:$0x3] %v3514_v6  ;;  %v3766_v15 = vrot.slane %v3506_v33, %v10831_v22  ;;  %v3814_v47 = vrot.slane %v3506_v33, %v9667_v57  ;;  %v3862_v52 = vrot.slane %v3506_v33, %v9674_v21 }
 0x348   : > { %3591 = vst [vmem:[#allocation2 + $0x2a] sm:$0x3] %v3562_v30  ;;  %3592 = vst [vmem:[#allocation2 + $0x4a] sm:$0x3] %v3562_v30  ;;  %v3501_v39 = vadd.f32 %v9713_v54, %v3486_v40  ;;  %v3499_v60 = vadd.f32 %v9713_v54, %v3484_v14  ;;  %v3487_v0 = vmul.f32 %v9702_v58, %v3470_v62 }
 0x349   : > { %3639 = vst [vmem:[#allocation2 + $0x2c] sm:$0x3] %v3610_v28  ;;  %3640 = vst [vmem:[#allocation2 + $0x4c] sm:$0x3] %v3610_v28  ;;  %v3485_v34 = vmul.f32 %v9702_v58, %v3462_v61  ;;  %v3518_v36 = vrot.slane %v3504_v13, %v10827_v7  ;;  %v3566_v44 = vrot.slane %v3504_v13, %v10828_v53 }
 0x34a   : > { %3687 = vst [vmem:[#allocation2 + $0x2e] sm:$0x3] %v3658_v46  ;;  %3688 = vst [vmem:[#allocation2 + $0x4e] sm:$0x3] %v3658_v46  ;;  %v3614_v12 = vrot.slane %v3504_v13, %v9651_v43  ;;  %v3662_v35 = vrot.slane %v3504_v13, %v10829_v41  ;;  %v3710_v29 = vrot.slane %v3504_v13, %v10830_v49  ;;  %v3509_v24 = vmax.f32 %v3501_v39, 0.0 }
 0x34b   : > { %3735 = vst [vmem:[#allocation2 + $0x30] sm:$0x3] %v3706_v56  ;;  %3736 = vst [vmem:[#allocation2 + $0x50] sm:$0x3] %v3706_v56  ;;  %v3758_v9 = vrot.slane %v3504_v13, %v10831_v22  ;;  %v3806_v48 = vrot.slane %v3504_v13, %v9667_v57  ;;  %v3854_v58 = vrot.slane %v3504_v13, %v9674_v21  ;;  %v3507_v11 = vmax.f32 %v3499_v60, 0.0 }
 0x34c   : > { %3783 = vst [vmem:[#allocation2 + $0x32] sm:$0x3] %v3754_v45  ;;  %3784 = vst [vmem:[#allocation2 + $0x52] sm:$0x3] %v3754_v45  ;;  %v9777_v1 = vadd.f32 %v9713_v54, %v3487_v0  ;;  %v4761_v19 = vpack.c.bf16 %v9766_v26, %v9764_v3  ;;  %v3500_v25 = vadd.f32 %v9713_v54, %v3485_v34  ;;  %v8360_v0 = vld [vmem:[%s10711_s10 + $0x1e8] sm:$0xff]  }
 0x34d   : > { %3831 = vst [vmem:[#allocation2 + $0x34] sm:$0x3] %v3802_v63  ;;  %3832 = vst [vmem:[#allocation2 + $0x54] sm:$0x3] %v3802_v63  ;;  %v3538_v37 = vrot.slane %v3509_v24, %v10827_v7  ;;  %v3586_v2 = vrot.slane %v3509_v24, %v10828_v53  ;;  %v3634_v6 = vrot.slane %v3509_v24, %v9651_v43 }
 0x34e   : > { %3879 = vst [vmem:[#allocation2 + $0x36] sm:$0x3] %v3850_v51  ;;  %3880 = vst [vmem:[#allocation2 + $0x56] sm:$0x3] %v3850_v51  ;;  %v3682_v30 = vrot.slane %v3509_v24, %v10829_v41  ;;  %v3730_v28 = vrot.slane %v3509_v24, %v10830_v49  ;;  %v3778_v46 = vrot.slane %v3509_v24, %v10831_v22  ;;  %v8353_v51 = vld [vmem:[%s10711_s10 + $0x1b8] sm:$0xff]  }
 0x34f   : > { %3549 = vst [vmem:[#allocation2 + $0xe8] sm:$0x3] %v3526_v59  ;;  %3550 = vst [vmem:[#allocation2 + $0x108] sm:$0x3] %v3526_v59  ;;  %v3826_v56 = vrot.slane %v3509_v24, %v9667_v57  ;;  %v3874_v54 = vrot.slane %v3509_v24, %v9674_v21  ;;  %v3530_v55 = vrot.slane %v3507_v11, %v10827_v7  ;;  %v8365_v24 = vld [vmem:[%s10711_s10 + $0x1a0] sm:$0xff]  }
 0x350   : > { %3597 = vst [vmem:[#allocation2 + $0xea] sm:$0x3] %v3574_v5  ;;  %3598 = vst [vmem:[#allocation2 + $0x10a] sm:$0x3] %v3574_v5  ;;  %v3578_v33 = vrot.slane %v3507_v11, %v10828_v53  ;;  %v3626_v10 = vrot.slane %v3507_v11, %v9651_v43  ;;  %v3674_v40 = vrot.slane %v3507_v11, %v10829_v41  ;;  %v8356_v5 = vld [vmem:[%s10711_s10 + $0x1f0] sm:$0xff]  }
 0x351   : > { %3645 = vst [vmem:[#allocation2 + $0xec] sm:$0x3] %v3622_v23  ;;  %3646 = vst [vmem:[#allocation2 + $0x10c] sm:$0x3] %v3622_v23  ;;  %v3961_v20 = vld [vmem:[#allocation2 + $0x28] sm:$0xff]  ;;  %v3722_v14 = vrot.slane %v3507_v11, %v10830_v49  ;;  %v3770_v62 = vrot.slane %v3507_v11, %v10831_v22  ;;  %v3818_v61 = vrot.slane %v3507_v11, %v9667_v57  ;;  %v3510_v23 = vmax.f32 %v9777_v1, 0.0 }
 0x352   : > { %3693 = vst [vmem:[#allocation2 + $0xee] sm:$0x3] %v3670_v31  ;;  %3694 = vst [vmem:[#allocation2 + $0x10e] sm:$0x3] %v3670_v31  ;;  %v4087_v32 = vld [vmem:[#allocation2 + $0x27] sm:$0xff]  ;;  %v3866_v59 = vrot.slane %v3507_v11, %v9674_v21  ;;  %v3508_v31 = vmax.f32 %v3500_v25, 0.0 }
 0x353   : > { %3741 = vst [vmem:[#allocation2 + $0xf0] sm:$0x3] %v3718_v18  ;;  %3742 = vst [vmem:[#allocation2 + $0x110] sm:$0x3] %v3718_v18  ;;  %v3963_v8 = vld [vmem:[#allocation2 + $0x48] sm:$0xff]  ;;  %v3638_v13 = vrot.slane %v3510_v23, %v9651_v43  ;;  %v3686_v39 = vrot.slane %v3510_v23, %v10829_v41  ;;  %v3734_v34 = vrot.slane %v3510_v23, %v10830_v49  ;;  %v8368_v1 = vld [vmem:[%s10711_s10 + $0x1d8] sm:$0xff]  }
 0x354   : > { %3789 = vst [vmem:[#allocation2 + $0xf2] sm:$0x3] %v3766_v15  ;;  %3790 = vst [vmem:[#allocation2 + $0x112] sm:$0x3] %v3766_v15  ;;  %v4089_v45 = vld [vmem:[#allocation2 + $0x47] sm:$0xff]  ;;  %v8357_v15 = vld [vmem:[%s10711_s10 + $0x1b0] sm:$0xff]   ;;  %v3782_v3 = vrot.slane %v3510_v23, %v10831_v22  ;;  %v3830_v26 = vrot.slane %v3510_v23, %v9667_v57 }
 0x355   : > { %3837 = vst [vmem:[#allocation2 + $0xf4] sm:$0x3] %v3814_v47  ;;  %3838 = vst [vmem:[#allocation2 + $0x114] sm:$0x3] %v3814_v47  ;;  %v3962_v50 = vld [vmem:[#allocation2 + $0x30] sm:$0xff]  ;;  %v3542_v47 = vrot.slane %v3510_v23, %v10827_v7 }
 0x356   : > { %3885 = vst [vmem:[#allocation2 + $0xf6] sm:$0x3] %v3862_v52  ;;  %3886 = vst [vmem:[#allocation2 + $0x116] sm:$0x3] %v3862_v52  ;;  %v4088_v27 = vld [vmem:[#allocation2 + $0x2f] sm:$0xff]  ;;  %v9782_v42 = vpack.c.bf16 %v3962_v50, %v3961_v20  ;;  %v3590_v52 = vrot.slane %v3510_v23, %v10828_v53 }
 0x357   : > { %3545 = vst [vmem:[#allocation2 + $0x68] sm:$0x3] %v3518_v36  ;;  %3546 = vst [vmem:[#allocation2 + $0x88] sm:$0x3] %v3518_v36  ;;  %v3964_v4 = vld [vmem:[#allocation2 + $0x50] sm:$0xff]  ;;  %v4762_v16 = vpack.c.bf16 %v4088_v27, %v4087_v32  ;;  %v3878_v36 = vrot.slane %v3510_v23, %v9674_v21 }
 0x358   : > { %3593 = vst [vmem:[#allocation2 + $0x6a] sm:$0x3] %v3566_v44  ;;  %3594 = vst [vmem:[#allocation2 + $0x8a] sm:$0x3] %v3566_v44  ;;  %v9784_v38 = vpack.c.bf16 %v3964_v4, %v3963_v8  ;;  %5519 = vmatprep.mubr.bf16.mxu0 %v9782_v42  ;;  %v4090_v63 = vld [vmem:[#allocation2 + $0x4f] sm:$0xff]  ;;  %v3726_v8 = vrot.slane %v3508_v31, %v10830_v49 }
 0x359   : > { %3641 = vst [vmem:[#allocation2 + $0x6c] sm:$0x3] %v3614_v12  ;;  %3642 = vst [vmem:[#allocation2 + $0x8c] sm:$0x3] %v3614_v12  ;;  %5672 = vmatprep.mubr.bf16.mxu1 %v4762_v16  ;;  %5520 = vmatmul.mubr.bf16.gmra.mxu0 %v4762_v16  ;;  %v9811_v18 = vpack.c.bf16 %v4090_v63, %v4089_v45  ;;  %v4025_v60 = vld [vmem:[#allocation2 + $0x29] sm:$0xff]  ;;  %v4026_v44 = vld [vmem:[#allocation2 + $0x31] sm:$0xff] }
 0x35a   : > { %3689 = vst [vmem:[#allocation2 + $0x6e] sm:$0x3] %v3662_v35  ;;  %3690 = vst [vmem:[#allocation2 + $0x8e] sm:$0x3] %v3662_v35  ;;  %5673 = vmatmul.mubr.bf16.vlgmr.msra.gmra.mxu1 %v4761_v19  ;;  %5527 = vmatprep.mubr.bf16.mxu0 %v9784_v38  ;;  %v9839_v49 = vpack.c.bf16 %v4026_v44, %v4025_v60  ;;  %v4027_v11 = vld [vmem:[#allocation2 + $0x49] sm:$0xff]  ;;  %v4028_v50 = vld [vmem:[#allocation2 + $0x51] sm:$0xff] }
 0x35b   : > { %3737 = vst [vmem:[#allocation2 + $0x70] sm:$0x3] %v3710_v29  ;;  %3738 = vst [vmem:[#allocation2 + $0x90] sm:$0x3] %v3710_v29  ;;  %7800 = vmatpush3.bf16.msra.mxu1 %v8353_v51  ;;  %5680 = vmatprep.mubr.bf16.mxu1 %v9811_v18  ;;  %v3534_v29 = vrot.slane %v3508_v31, %v10827_v7  ;;  %v3774_v7 = vrot.slane %v3508_v31, %v10831_v22  ;;  %v8369_v16 = vld [vmem:[%s10711_s10 + $0x198] sm:$0xff]   ;;  %v8373_v63 = vld [vmem:[%s10711_s10 + $0x1c8] sm:$0xff]  }
 0x35c   : > { %3785 = vst [vmem:[#allocation2 + $0x72] sm:$0x3] %v3758_v9  ;;  %3786 = vst [vmem:[#allocation2 + $0x92] sm:$0x3] %v3758_v9  ;;  %7801 = vmatprep.subr.bf16.mxu1 %v8356_v5  ;;  %v3582_v9 = vrot.slane %v3508_v31, %v10828_v53  ;;  %v3822_v53 = vrot.slane %v3508_v31, %v9667_v57  ;;  %v4095_v51 = vld [vmem:[#allocation2 + $0xa7] sm:$0xff] }
 0x35d   : > { %3833 = vst [vmem:[#allocation2 + $0x74] sm:$0x3] %v3806_v48  ;;  %3834 = vst [vmem:[#allocation2 + $0x94] sm:$0x3] %v3806_v48  ;;  %v3630_v48 = vrot.slane %v3508_v31, %v9651_v43  ;;  %v3870_v43 = vrot.slane %v3508_v31, %v9674_v21  ;;  %v8364_v21 = vld [vmem:[%s10711_s10 + $0x1e0] sm:$0xff]   ;;  %v4033_v60 = vld [vmem:[#allocation2 + $0xa9] sm:$0xff] }
 0x35e   : > { %3881 = vst [vmem:[#allocation2 + $0x76] sm:$0x3] %v3854_v58  ;;  %3882 = vst [vmem:[#allocation2 + $0x96] sm:$0x3] %v3854_v58  ;;  %v3678_v58 = vrot.slane %v3508_v31, %v10829_v41  ;;  %v8361_v41 = vld [vmem:[%s10711_s10 + $0x1a8] sm:$0xff]   ;;  %v3972_v31 = vld [vmem:[#allocation2 + $0xd0] sm:$0xff] }
 0x35f   : > { %3555 = vst [vmem:[#allocation2 + $0x1a8] sm:$0x3] %v3538_v37  ;;  %3556 = vst [vmem:[#allocation2 + $0x1c8] sm:$0x3] %v3538_v37  ;;  %7802 = vmatpush3.bf16.msra.mxu1 %v8357_v15  ;;  %v9861_v37 = vpack.c.bf16 %v4028_v50, %v4027_v11  ;;  %v4097_v15 = vld [vmem:[#allocation2 + $0xc7] sm:$0xff] }
 0x360   : > { %3603 = vst [vmem:[#allocation2 + $0x1aa] sm:$0x3] %v3586_v2  ;;  %3604 = vst [vmem:[#allocation2 + $0x1ca] sm:$0x3] %v3586_v2  ;;  %7803 = vmatprep.subr.bf16.mxu1 %v8360_v0  ;;  %v4034_v0 = vld [vmem:[#allocation2 + $0xb1] sm:$0xff] }
 0x361   : > { %3651 = vst [vmem:[#allocation2 + $0x1ac] sm:$0x3] %v3634_v6  ;;  %3652 = vst [vmem:[#allocation2 + $0x1cc] sm:$0x3] %v3634_v6  ;;  %v3965_v12 = vld [vmem:[#allocation2 + $0x68] sm:$0xff]  ;;  %5528 = vmatmul.mubr.bf16.gmra.mxu0 %v9811_v18  ;;  %v8370_v6 = vld [vmem:[%s10711_s10 + $0x1d0] sm:$0xff]   ;;  %v9909_v44 = vpack.c.bf16 %v4034_v0, %v4033_v60 }
 0x362   : > { %3699 = vst [vmem:[#allocation2 + $0x1ae] sm:$0x3] %v3682_v30  ;;  %3700 = vst [vmem:[#allocation2 + $0x1ce] sm:$0x3] %v3682_v30  ;;  %v4091_v20 = vld [vmem:[#allocation2 + $0x67] sm:$0xff]  ;;  %5681 = vmatmul.mubr.bf16.gmra.mxu1 %v9839_v49 }
 0x363   : > { %3747 = vst [vmem:[#allocation2 + $0x1b0] sm:$0x3] %v3730_v28  ;;  %3748 = vst [vmem:[#allocation2 + $0x1d0] sm:$0x3] %v3730_v28  ;;  %7804 = vmatpush3.bf16.msra.mxu1 %v8361_v41  ;;  %v3967_v27 = vld [vmem:[#allocation2 + $0x88] sm:$0xff]  ;;  %v8371_v28 = vld [vmem:[%s10711_s10 + $0x190] sm:$0xff]  }
 0x364   : > { %3795 = vst [vmem:[#allocation2 + $0x1b2] sm:$0x3] %v3778_v46  ;;  %3796 = vst [vmem:[#allocation2 + $0x1d2] sm:$0x3] %v3778_v46  ;;  %7805 = vmatprep.subr.bf16.mxu1 %v8364_v21  ;;  %v4093_v4 = vld [vmem:[#allocation2 + $0x87] sm:$0xff]  ;;  %v4038_v41 = vld [vmem:[#allocation2 + $0xf1] sm:$0xff] }
 0x365   : > { %3843 = vst [vmem:[#allocation2 + $0x1b4] sm:$0x3] %v3826_v56  ;;  %3844 = vst [vmem:[#allocation2 + $0x1d4] sm:$0x3] %v3826_v56  ;;  %v3966_v35 = vld [vmem:[#allocation2 + $0x70] sm:$0xff]  ;;  %v3969_v46 = vld [vmem:[#allocation2 + $0xa8] sm:$0xff] }
 0x366   : > { %3891 = vst [vmem:[#allocation2 + $0x1b6] sm:$0x3] %v3874_v54  ;;  %3892 = vst [vmem:[#allocation2 + $0x1d6] sm:$0x3] %v3874_v54  ;;  %v4092_v32 = vld [vmem:[#allocation2 + $0x6f] sm:$0xff]  ;;  %v9841_v22 = vpack.c.bf16 %v3966_v35, %v3965_v12 }
 0x367   : > { %3551 = vst [vmem:[#allocation2 + $0x128] sm:$0x3] %v3530_v55  ;;  %3552 = vst [vmem:[#allocation2 + $0x148] sm:$0x3] %v3530_v55  ;;  %v9847_v57 = vpack.c.bf16 %v4092_v32, %v4091_v20  ;;  %v3968_v19 = vld [vmem:[#allocation2 + $0x90] sm:$0xff]  ;;  %7806 = vmatpush3.bf16.msra.mxu1 %v8365_v24  ;;  %v4101_v20 = vld [vmem:[#allocation2 + $0x107] sm:$0xff] }
 0x368   : > { %3599 = vst [vmem:[#allocation2 + $0x12a] sm:$0x3] %v3578_v33  ;;  %3600 = vst [vmem:[#allocation2 + $0x14a] sm:$0x3] %v3578_v33  ;;  %5535 = vmatprep.mubr.bf16.mxu0 %v9841_v22  ;;  %v4094_v25 = vld [vmem:[#allocation2 + $0x8f] sm:$0xff]  ;;  %v9863_v2 = vpack.c.bf16 %v3968_v19, %v3967_v27  ;;  %7807 = vmatprep.subr.bf16.mxu1 %v8368_v1  ;;  %v7479_v19 = vpop.f32.mrf.mxu0 }
 0x369   : > { %3647 = vst [vmem:[#allocation2 + $0x12c] sm:$0x3] %v3626_v10  ;;  %3648 = vst [vmem:[#allocation2 + $0x14c] sm:$0x3] %v3626_v10  ;;  %5688 = vmatprep.mubr.bf16.mxu1 %v9847_v57  ;;  %5536 = vmatmul.mubr.bf16.gmra.mxu0 %v9847_v57  ;;  %v9869_v30 = vpack.c.bf16 %v4094_v25, %v4093_v4  ;;  %v3970_v56 = vld [vmem:[#allocation2 + $0xb0] sm:$0xff]  ;;  %v8374_v33 = vld [vmem:[%s10711_s10 + $0x188] sm:$0xff]  }
 0x36a   : > { %3695 = vst [vmem:[#allocation2 + $0x12e] sm:$0x3] %v3674_v40  ;;  %3696 = vst [vmem:[#allocation2 + $0x14e] sm:$0x3] %v3674_v40  ;;  %5689 = vmatmul.mubr.bf16.gmra.mxu1 %v9861_v37  ;;  %5543 = vmatprep.mubr.bf16.mxu0 %v9863_v2  ;;  %v4029_v54 = vld [vmem:[#allocation2 + $0x69] sm:$0xff]  ;;  %v4030_v45 = vld [vmem:[#allocation2 + $0x71] sm:$0xff]  ;;  %v9885_v40 = vpack.c.bf16 %v3970_v56, %v3969_v46  ;;  %v7480_v25 = vpop.f32.mrf.mxu0 }
 0x36b   : > { %3743 = vst [vmem:[#allocation2 + $0x130] sm:$0x3] %v3722_v14  ;;  %3744 = vst [vmem:[#allocation2 + $0x150] sm:$0x3] %v3722_v14  ;;  %5696 = vmatprep.mubr.bf16.mxu1 %v9869_v30  ;;  %7808 = vmatpush3.bf16.msra.mxu1 %v8369_v16  ;;  %v4096_v55 = vld [vmem:[#allocation2 + $0xaf] sm:$0xff]  ;;  %v9883_v10 = vpack.c.bf16 %v4030_v45, %v4029_v54  ;;  %v8375_v14 = vld [vmem:[%s10711_s10 + $0x1c0] sm:$0xff]   ;;  %v9939_v16 = vadd.f32 %v7480_v25, %v7479_v19 }
 0x36c   : > { %3791 = vst [vmem:[#allocation2 + $0x132] sm:$0x3] %v3770_v62  ;;  %3792 = vst [vmem:[#allocation2 + $0x152] sm:$0x3] %v3770_v62  ;;  %7809 = vmatprep.subr.bf16.mxu1 %v8370_v6  ;;  %v9891_v62 = vpack.c.bf16 %v4096_v55, %v4095_v51  ;;  %v4031_v5 = vld [vmem:[#allocation2 + $0x89] sm:$0xff]  ;;  %v4032_v23 = vld [vmem:[#allocation2 + $0x91] sm:$0xff] }
 0x36d   : > { %3839 = vst [vmem:[#allocation2 + $0x134] sm:$0x3] %v3818_v61  ;;  %3840 = vst [vmem:[#allocation2 + $0x154] sm:$0x3] %v3818_v61  ;;  %v8376_v61 = vld [vmem:[%s10711_s10 + $0x180] sm:$0xff]   ;;  %v4102_v32 = vld [vmem:[#allocation2 + $0x10f] sm:$0xff] }
 0x36e   : > { %3887 = vst [vmem:[#allocation2 + $0x136] sm:$0x3] %v3866_v59  ;;  %3888 = vst [vmem:[#allocation2 + $0x156] sm:$0x3] %v3866_v59  ;;  %v3971_v59 = vld [vmem:[#allocation2 + $0xc8] sm:$0xff] }
 0x36f   : > { %3557 = vst [vmem:[#allocation2 + $0x1e8] sm:$0x3] %v3542_v47  ;;  %3558 = vst [vmem:[#allocation2 + $0x208] sm:$0x3] %v3542_v47  ;;  %7810 = vmatpush3.bf16.msra.mxu1 %v8371_v28  ;;  %v4098_v47 = vld [vmem:[#allocation2 + $0xcf] sm:$0xff] }
 0x370   : > { %3605 = vst [vmem:[#allocation2 + $0x1ea] sm:$0x3] %v3590_v52  ;;  %3606 = vst [vmem:[#allocation2 + $0x20a] sm:$0x3] %v3590_v52  ;;  %7811 = vmatprep.subr.bf16.mxu1 %v8373_v63  ;;  %v9899_v52 = vpack.c.bf16 %v4032_v23, %v4031_v5  ;;  %v4039_v6 = vld [vmem:[#allocation2 + $0x109] sm:$0xff]  ;;  %v4040_v28 = vld [vmem:[#allocation2 + $0x111] sm:$0xff] }
 0x371   : > { %3653 = vst [vmem:[#allocation2 + $0x1ec] sm:$0x3] %v3638_v13  ;;  %3654 = vst [vmem:[#allocation2 + $0x20c] sm:$0x3] %v3638_v13  ;;  %5544 = vmatmul.mubr.bf16.gmra.mxu0 %v9869_v30  ;;  %v9901_v13 = vpack.c.bf16 %v3972_v31, %v3971_v59  ;;  %v3977_v21 = vld [vmem:[#allocation2 + $0x128] sm:$0xff]  ;;  %v9941_v63 = vpack.c.bf16 %v4040_v28, %v4039_v6  ;;  %v3988_v28 = vld [vmem:[#allocation2 + $0x1d0] sm:$0xff] }
 0x372   : > { %3701 = vst [vmem:[#allocation2 + $0x1ee] sm:$0x3] %v3686_v39  ;;  %3702 = vst [vmem:[#allocation2 + $0x20e] sm:$0x3] %v3686_v39  ;;  %5697 = vmatmul.mubr.bf16.gmra.mxu1 %v9883_v10  ;;  %5551 = vmatprep.mubr.bf16.mxu0 %v9885_v40  ;;  %v9904_v39 = vpack.c.bf16 %v4098_v47, %v4097_v15  ;;  %v4103_v11 = vld [vmem:[#allocation2 + $0x127] sm:$0xff] }
 0x373   : > { %3749 = vst [vmem:[#allocation2 + $0x1f0] sm:$0x3] %v3734_v34  ;;  %3750 = vst [vmem:[#allocation2 + $0x210] sm:$0x3] %v3734_v34  ;;  %5704 = vmatprep.mubr.bf16.mxu1 %v9891_v62  ;;  %7812 = vmatpush3.bf16.msra.mxu1 %v8374_v33  ;;  %v3973_v34 = vld [vmem:[#allocation2 + $0xe8] sm:$0xff] }
 0x374   : > { %3797 = vst [vmem:[#allocation2 + $0x1f2] sm:$0x3] %v3782_v3  ;;  %3798 = vst [vmem:[#allocation2 + $0x212] sm:$0x3] %v3782_v3  ;;  %7813 = vmatprep.subr.bf16.mxu1 %v8375_v14  ;;  %v3974_v3 = vld [vmem:[#allocation2 + $0xf0] sm:$0xff]  ;;  %v3979_v46 = vld [vmem:[#allocation2 + $0x148] sm:$0xff] }
 0x375   : > { %3845 = vst [vmem:[#allocation2 + $0x1f4] sm:$0x3] %v3830_v26  ;;  %3846 = vst [vmem:[#allocation2 + $0x214] sm:$0x3] %v3830_v26  ;;  %v4099_v26 = vld [vmem:[#allocation2 + $0xe7] sm:$0xff]  ;;  %v9911_v12 = vpack.c.bf16 %v3974_v3, %v3973_v34  ;;  %v3978_v24 = vld [vmem:[#allocation2 + $0x130] sm:$0xff] }
 0x376   : > { %3893 = vst [vmem:[#allocation2 + $0x1f6] sm:$0x3] %v3878_v36  ;;  %3894 = vst [vmem:[#allocation2 + $0x216] sm:$0x3] %v3878_v36  ;;  %v4100_v36 = vld [vmem:[#allocation2 + $0xef] sm:$0xff]  ;;  %v9931_v27 = vpack.c.bf16 %v3978_v24, %v3977_v21  ;;  %v4105_v54 = vld [vmem:[#allocation2 + $0x147] sm:$0xff] }
 0x377   : > { %3553 = vst [vmem:[#allocation2 + $0x168] sm:$0x3] %v3534_v29  ;;  %3554 = vst [vmem:[#allocation2 + $0x188] sm:$0x3] %v3534_v29  ;;  %7814 = vmatpush3.bf16.msra.mxu1 %v8376_v61  ;;  %v9914_v35 = vpack.c.bf16 %v4100_v36, %v4099_v26  ;;  %v4035_v29 = vld [vmem:[#allocation2 + $0xc9] sm:$0xff]  ;;  %v4042_v14 = vld [vmem:[#allocation2 + $0x131] sm:$0xff] }
 0x378   : > { %3601 = vst [vmem:[#allocation2 + $0x16a] sm:$0x3] %v3582_v9  ;;  %3602 = vst [vmem:[#allocation2 + $0x18a] sm:$0x3] %v3582_v9  ;;  %v4036_v9 = vld [vmem:[#allocation2 + $0xd1] sm:$0xff]  ;;  %v4041_v33 = vld [vmem:[#allocation2 + $0x129] sm:$0xff] }
 0x379   : > { %3649 = vst [vmem:[#allocation2 + $0x16c] sm:$0x3] %v3630_v48  ;;  %3650 = vst [vmem:[#allocation2 + $0x18c] sm:$0x3] %v3630_v48  ;;  %5552 = vmatmul.mubr.bf16.gmra.mxu0 %v9891_v62  ;;  %v3975_v48 = vld [vmem:[#allocation2 + $0x108] sm:$0xff]  ;;  %v3980_v56 = vld [vmem:[#allocation2 + $0x150] sm:$0xff]  ;;  %v9951_v31 = vpack.c.bf16 %v4042_v14, %v4041_v33 }
 0x37a   : > { %3697 = vst [vmem:[#allocation2 + $0x16e] sm:$0x3] %v3678_v58  ;;  %3698 = vst [vmem:[#allocation2 + $0x18e] sm:$0x3] %v3678_v58  ;;  %5705 = vmatmul.mubr.bf16.gmra.mxu1 %v9899_v52  ;;  %5559 = vmatprep.mubr.bf16.mxu0 %v9901_v13  ;;  %v3976_v58 = vld [vmem:[#allocation2 + $0x110] sm:$0xff]  ;;  %v9943_v51 = vpack.c.bf16 %v3980_v56, %v3979_v46  ;;  %v3987_v19 = vld [vmem:[#allocation2 + $0x1c8] sm:$0xff] }
 0x37b   : > { %3745 = vst [vmem:[#allocation2 + $0x170] sm:$0x3] %v3726_v8  ;;  %3746 = vst [vmem:[#allocation2 + $0x190] sm:$0x3] %v3726_v8  ;;  %5712 = vmatprep.mubr.bf16.mxu1 %v9904_v39  ;;  %v9919_v8 = vpack.c.bf16 %v4036_v9, %v4035_v29  ;;  %v4104_v1 = vld [vmem:[#allocation2 + $0x12f] sm:$0xff]  ;;  %v4113_v46 = vld [vmem:[#allocation2 + $0x1c7] sm:$0xff] }
 0x37c   : > { %3793 = vst [vmem:[#allocation2 + $0x172] sm:$0x3] %v3774_v7  ;;  %3794 = vst [vmem:[#allocation2 + $0x192] sm:$0x3] %v3774_v7  ;;  %v9921_v7 = vpack.c.bf16 %v3976_v58, %v3975_v48  ;;  %v9934_v4 = vpack.c.bf16 %v4104_v1, %v4103_v11  ;;  %v4106_v45 = vld [vmem:[#allocation2 + $0x14f] sm:$0xff] }
 0x37d   : > { %3841 = vst [vmem:[#allocation2 + $0x174] sm:$0x3] %v3822_v53  ;;  %3842 = vst [vmem:[#allocation2 + $0x194] sm:$0x3] %v3822_v53  ;;  %v9924_v53 = vpack.c.bf16 %v4102_v32, %v4101_v20  ;;  %v9946_v55 = vpack.c.bf16 %v4106_v45, %v4105_v54  ;;  %v4043_v60 = vld [vmem:[#allocation2 + $0x149] sm:$0xff]  ;;  %v4044_v0 = vld [vmem:[#allocation2 + $0x151] sm:$0xff]  ;;  %v9983_v45 = vpack.c.bf16 %v3988_v28, %v3987_v19 }
 0x37e   : > { %3889 = vst [vmem:[#allocation2 + $0x176] sm:$0x3] %v3870_v43  ;;  %3890 = vst [vmem:[#allocation2 + $0x196] sm:$0x3] %v3870_v43  ;;  %v4037_v43 = vld [vmem:[#allocation2 + $0xe9] sm:$0xff]  ;;  %v9961_v29 = vpack.c.bf16 %v4044_v0, %v4043_v60 }
 0x37f   : > { %v9929_v50 = vpack.c.bf16 %v4038_v41, %v4037_v43  ;;  %v3985_v58 = vld [vmem:[#allocation2 + $0x1a8] sm:$0xff]  ;;  %v3986_v43 = vld [vmem:[#allocation2 + $0x1b0] sm:$0xff] }
 0x380   : > { %v4111_v41 = vld [vmem:[#allocation2 + $0x1a7] sm:$0xff]  ;;  %v4112_v21 = vld [vmem:[#allocation2 + $0x1af] sm:$0xff]  ;;  %v9973_v11 = vpack.c.bf16 %v3986_v43, %v3985_v58 }
 0x381   : > { %5560 = vmatmul.mubr.bf16.gmra.mxu0 %v9904_v39  ;;  %v3981_v61 = vld [vmem:[#allocation2 + $0x168] sm:$0xff]  ;;  %v9976_v1 = vpack.c.bf16 %v4112_v21, %v4111_v41  ;;  %v4054_v21 = vld [vmem:[#allocation2 + $0x1f1] sm:$0xff] }
 0x382   : > { %5713 = vmatmul.mubr.bf16.gmra.mxu1 %v9909_v44  ;;  %5567 = vmatprep.mubr.bf16.mxu0 %v9911_v12  ;;  %v4107_v5 = vld [vmem:[#allocation2 + $0x167] sm:$0xff]  ;;  %v4114_v56 = vld [vmem:[#allocation2 + $0x1cf] sm:$0xff] }
 0x383   : > { %5720 = vmatprep.mubr.bf16.mxu1 %v9914_v35  ;;  %v3983_v34 = vld [vmem:[#allocation2 + $0x188] sm:$0xff]  ;;  %v9986_v33 = vpack.c.bf16 %v4114_v56, %v4113_v46 }
 0x384   : > { %v4109_v26 = vld [vmem:[#allocation2 + $0x187] sm:$0xff]  ;;  %v4116_v60 = vld [vmem:[#allocation2 + $0x1ef] sm:$0xff] }
 0x385   : > { %v3982_v59 = vld [vmem:[#allocation2 + $0x170] sm:$0xff]  ;;  %v4117_v58 = vld [vmem:[#allocation2 + $0x207] sm:$0xff] }
 0x386   : > { %v4108_v23 = vld [vmem:[#allocation2 + $0x16f] sm:$0xff]  ;;  %v9953_v15 = vpack.c.bf16 %v3982_v59, %v3981_v61 }
 0x387   : > { %v9956_v47 = vpack.c.bf16 %v4108_v23, %v4107_v5  ;;  %v3984_v3 = vld [vmem:[#allocation2 + $0x190] sm:$0xff]  ;;  %v3989_v59 = vld [vmem:[#allocation2 + $0x1e8] sm:$0xff] }
 0x388   : > { %v4110_v36 = vld [vmem:[#allocation2 + $0x18f] sm:$0xff]  ;;  %v9963_v9 = vpack.c.bf16 %v3984_v3, %v3983_v34  ;;  %v4115_v23 = vld [vmem:[#allocation2 + $0x1e7] sm:$0xff] }
 0x389   : > { %5568 = vmatmul.mubr.bf16.gmra.mxu0 %v9914_v35  ;;  %v9966_v48 = vpack.c.bf16 %v4110_v36, %v4109_v26  ;;  %v4045_v20 = vld [vmem:[#allocation2 + $0x169] sm:$0xff]  ;;  %v4046_v32 = vld [vmem:[#allocation2 + $0x171] sm:$0xff]  ;;  %v9996_v3 = vpack.c.bf16 %v4116_v60, %v4115_v23 }
 0x38a   : > { %5721 = vmatmul.mubr.bf16.gmra.mxu1 %v9919_v8  ;;  %5575 = vmatprep.mubr.bf16.mxu0 %v9921_v7  ;;  %v9971_v24 = vpack.c.bf16 %v4046_v32, %v4045_v20  ;;  %v4047_v25 = vld [vmem:[#allocation2 + $0x189] sm:$0xff]  ;;  %v4048_v6 = vld [vmem:[#allocation2 + $0x191] sm:$0xff] }
 0x38b   : > { %5728 = vmatprep.mubr.bf16.mxu1 %v9924_v53  ;;  %v9981_v54 = vpack.c.bf16 %v4048_v6, %v4047_v25  ;;  %v4049_v14 = vld [vmem:[#allocation2 + $0x1a9] sm:$0xff]  ;;  %v4050_v61 = vld [vmem:[#allocation2 + $0x1b1] sm:$0xff]  ;;  %v8379_v6 = vld [vmem:[%s10711_s10 + $0x220] sm:$0xff]  }
 0x38c   : > { %v3990_v5 = vld [vmem:[#allocation2 + $0x1f0] sm:$0xff]  ;;  %v9991_v0 = vpack.c.bf16 %v4050_v61, %v4049_v14 }
 0x38d   : > { %v9993_v34 = vpack.c.bf16 %v3990_v5, %v3989_v59  ;;  %v4051_v26 = vld [vmem:[#allocation2 + $0x1c9] sm:$0xff]  ;;  %v4052_v36 = vld [vmem:[#allocation2 + $0x1d1] sm:$0xff] }
 0x38e   : > { %v4118_v20 = vld [vmem:[#allocation2 + $0x20f] sm:$0xff]  ;;  %v10001_v32 = vpack.c.bf16 %v4052_v36, %v4051_v26 }
 0x38f   : > { %v10004_v43 = vpack.c.bf16 %v4118_v20, %v4117_v58  ;;  %v4053_v41 = vld [vmem:[#allocation2 + $0x1e9] sm:$0xff] }
 0x390   : > { %v10009_v19 = vpack.c.bf16 %v4054_v21, %v4053_v41  ;;  %v8377_v25 = vld [vmem:[%s10711_s10 + $0x230] sm:$0xff]  }
 0x391   : > { %5576 = vmatmul.mubr.bf16.gmra.mxu0 %v9924_v53 }
 0x392   : > { %5729 = vmatmul.mubr.bf16.gmra.mxu1 %v9929_v50  ;;  %5583 = vmatprep.mubr.bf16.mxu0 %v9931_v27 }
 0x393   : > { %5736 = vmatprep.mubr.bf16.mxu1 %v9934_v4 }
 0x399   : > { %5584 = vmatmul.mubr.bf16.gmra.mxu0 %v9934_v4 }
 0x39a   : > { %5737 = vmatmul.mubr.bf16.gmra.mxu1 %v9941_v63  ;;  %5591 = vmatprep.mubr.bf16.mxu0 %v9943_v51 }
 0x39b   : > { %5744 = vmatprep.mubr.bf16.mxu1 %v9946_v55 }
 0x3a1   : > { %5592 = vmatmul.mubr.bf16.gmra.mxu0 %v9946_v55 }
 0x3a2   : > { %5745 = vmatmul.mubr.bf16.gmra.mxu1 %v9951_v31  ;;  %5599 = vmatprep.mubr.bf16.mxu0 %v9953_v15 }
 0x3a3   : > { %5752 = vmatprep.mubr.bf16.mxu1 %v9956_v47 }
 0x3a9   : > { %5600 = vmatmul.mubr.bf16.gmra.mxu0 %v9956_v47 }
 0x3aa   : > { %5753 = vmatmul.mubr.bf16.gmra.mxu1 %v9961_v29  ;;  %5607 = vmatprep.mubr.bf16.mxu0 %v9963_v9 }
 0x3ab   : > { %5760 = vmatprep.mubr.bf16.mxu1 %v9966_v48 }
 0x3b1   : > { %5608 = vmatmul.mubr.bf16.gmra.mxu0 %v9966_v48 }
 0x3b2   : > { %5761 = vmatmul.mubr.bf16.gmra.mxu1 %v9971_v24  ;;  %5615 = vmatprep.mubr.bf16.mxu0 %v9973_v11 }
 0x3b3   : > { %5768 = vmatprep.mubr.bf16.mxu1 %v9976_v1 }
 0x3b9   : > { %5616 = vmatmul.mubr.bf16.gmra.mxu0 %v9976_v1 }
 0x3ba   : > { %5769 = vmatmul.mubr.bf16.gmra.mxu1 %v9981_v54  ;;  %5623 = vmatprep.mubr.bf16.mxu0 %v9983_v45 }
 0x3bb   : > { %5776 = vmatprep.mubr.bf16.mxu1 %v9986_v33 }
 0x3c1   : > { %5624 = vmatmul.mubr.bf16.gmra.mxu0 %v9986_v33 }
 0x3c2   : > { %5777 = vmatmul.mubr.bf16.gmra.mxu1 %v9991_v0  ;;  %5631 = vmatprep.mubr.bf16.mxu0 %v9993_v34 }
 0x3c3   : > { %5784 = vmatprep.mubr.bf16.mxu1 %v9996_v3 }
 0x3c9   : > { %5632 = vmatmul.mubr.bf16.gmra.mxu0 %v9996_v3 }
 0x3ca   : > { %5785 = vmatmul.mubr.bf16.gmra.mxu1 %v10001_v32  ;;  %5833 = vmatprep.mubr.bf16.mxu0 %v9839_v49  ;;  %v8378_v49 = vld [vmem:[%s10711_s10 + $0x228] sm:$0xff]  }
 0x3cb   : > { %5792 = vmatprep.mubr.bf16.mxu1 %v10004_v43 }
 0x3d1   : > { %5834 = vmatmul.mubr.bf16.vlgmr.msra.gmra.mxu0 %v9782_v42  ;;  %v8381_v42 = vld [vmem:[%s10711_s10 + $0x210] sm:$0xff]  }
 0x3d2   : > { %5793 = vmatmul.mubr.bf16.gmra.mxu1 %v10009_v19  ;;  %8056 = vmatpush3.bf16.msra.mxu0 %v9749_v17  ;;  %v8380_v17 = vld [vmem:[%s10711_s10 + $0x218] sm:$0xff]  }
 0x3d3   : > { %5841 = vmatprep.mubr.bf16.mxu0 %v9861_v37  ;;  %5994 = vmatprep.mubr.bf16.mxu1 %v9784_v38 }
 0x3d4   : > { %8057 = vmatprep.subr.bf16.mxu0 %v8377_v25 }
 0x3d6   : > { %8058 = vmatpush3.bf16.msra.mxu0 %v8377_v25 }
 0x3d7   : > { %8059 = vmatprep.subr.bf16.mxu0 %v8378_v49 }
 0x3d9   : > { %5842 = vmatmul.mubr.bf16.gmra.mxu0 %v9784_v38  ;;  %v8382_v38 = vld [vmem:[%s10711_s10 + $0x208] sm:$0xff]  }
 0x3da   : > { %5995 = vmatmul.mubr.bf16.vlgmr.msra.gmra.mxu1 %v9811_v18  ;;  %5849 = vmatprep.mubr.bf16.mxu0 %v9883_v10  ;;  %v8383_v18 = vld [vmem:[%s10711_s10 + $0x200] sm:$0xff]  }
 0x3db   : > { %6002 = vmatprep.mubr.bf16.mxu1 %v9841_v22  ;;  %8060 = vmatpush3.bf16.msra.mxu0 %v8378_v49 }
 0x3dc   : > { %8061 = vmatprep.subr.bf16.mxu0 %v8379_v6 }
 0x3df   : > { %8062 = vmatpush3.bf16.msra.mxu0 %v8379_v6 }
 0x3e0   : > { %8063 = vmatprep.subr.bf16.mxu0 %v8380_v17 }
 0x3e1   : > { %5850 = vmatmul.mubr.bf16.gmra.mxu0 %v9841_v22  ;;  %v7482_v22 = vpop.f32.mrf.mxu0 }
 0x3e2   : > { %6003 = vmatmul.mubr.bf16.gmra.mxu1 %v9847_v57  ;;  %5857 = vmatprep.mubr.bf16.mxu0 %v9899_v52 }
 0x3e3   : > { %6010 = vmatprep.mubr.bf16.mxu1 %v9863_v2  ;;  %8064 = vmatpush3.bf16.msra.mxu0 %v8380_v17  ;;  %v7483_v57 = vpop.f32.mrf.mxu0 }
 0x3e4   : > { %8065 = vmatprep.subr.bf16.mxu0 %v8381_v42 }
 0x3e7   : > { %8066 = vmatpush3.bf16.msra.mxu0 %v8381_v42 }
 0x3e8   : > { %8067 = vmatprep.subr.bf16.mxu0 %v8382_v38 }
 0x3e9   : > { %5858 = vmatmul.mubr.bf16.gmra.mxu0 %v9863_v2 }
 0x3ea   : > { %6011 = vmatmul.mubr.bf16.gmra.mxu1 %v9869_v30  ;;  %5865 = vmatprep.mubr.bf16.mxu0 %v9909_v44 }
 0x3eb   : > { %6018 = vmatprep.mubr.bf16.mxu1 %v9885_v40  ;;  %8068 = vmatpush3.bf16.msra.mxu0 %v8382_v38 }
 0x3ec   : > { %8069 = vmatprep.subr.bf16.mxu0 %v8383_v18 }
 0x3ef   : > { %8070 = vmatpush3.bf16.msra.mxu0 %v8383_v18  ;;  %v8385_v18 = vld [vmem:[%s10714_s13 + $0x30] sm:$0xff]  }
 0x3f1   : > { %5866 = vmatmul.mubr.bf16.gmra.mxu0 %v9885_v40 }
 0x3f2   : > { %6019 = vmatmul.mubr.bf16.gmra.mxu1 %v9891_v62  ;;  %5873 = vmatprep.mubr.bf16.mxu0 %v9919_v8  ;;  %v7484_v8 = vadd.f32 %v7483_v57, %v7482_v22 }
 0x3f3   : > { %6026 = vmatprep.mubr.bf16.mxu1 %v9901_v13 }
 0x3f9   : > { %5874 = vmatmul.mubr.bf16.gmra.mxu0 %v9901_v13 }
 0x3fa   : > { %6027 = vmatmul.mubr.bf16.gmra.mxu1 %v9904_v39  ;;  %5881 = vmatprep.mubr.bf16.mxu0 %v9929_v50 }
 0x3fb   : > { %6034 = vmatprep.mubr.bf16.mxu1 %v9911_v12 }
 0x401   : > { %5882 = vmatmul.mubr.bf16.gmra.mxu0 %v9911_v12 }
 0x402   : > { %6035 = vmatmul.mubr.bf16.gmra.mxu1 %v9914_v35  ;;  %5889 = vmatprep.mubr.bf16.mxu0 %v9941_v63 }
 0x403   : > { %6042 = vmatprep.mubr.bf16.mxu1 %v9921_v7 }
 0x409   : > { %5890 = vmatmul.mubr.bf16.gmra.mxu0 %v9921_v7 }
 0x40a   : > { %6043 = vmatmul.mubr.bf16.gmra.mxu1 %v9924_v53  ;;  %5897 = vmatprep.mubr.bf16.mxu0 %v9951_v31 }
 0x40b   : > { %6050 = vmatprep.mubr.bf16.mxu1 %v9931_v27 }
 0x411   : > { %5898 = vmatmul.mubr.bf16.gmra.mxu0 %v9931_v27 }
 0x412   : > { %6051 = vmatmul.mubr.bf16.gmra.mxu1 %v9934_v4  ;;  %5905 = vmatprep.mubr.bf16.mxu0 %v9961_v29  ;;  %v8384_v29 = vld [vmem:[%s10714_s13 + $0x38] sm:$0xff]  }
 0x413   : > { %6058 = vmatprep.mubr.bf16.mxu1 %v9943_v51  ;;  %8103 = vmatprep.subr.bf16.mxu1 %v8384_v29 }
 0x414   : > { %8104 = vmatpush3.bf16.msra.mxu1 %v8384_v29 }
 0x415   : > { %8105 = vmatprep.subr.bf16.mxu1 %v8385_v18 }
 0x418   : > { %8106 = vmatpush3.bf16.msra.mxu1 %v8385_v18 }
 0x419   : > { %v7485_v37 = vpop.f32.mrf.mxu0  ;;  %5906 = vmatmul.mubr.bf16.gmra.mxu0 %v9943_v51 }
 0x41a   : > { %v7591_v2 = vpop.f32.mrf.mxu1  ;;  %6059 = vmatmul.mubr.bf16.gmra.mxu1 %v9946_v55  ;;  %5913 = vmatprep.mubr.bf16.mxu0 %v9971_v24 }
 0x41b   : > { %6066 = vmatprep.mubr.bf16.mxu1 %v9953_v15  ;;  %v7486_v30 = vpop.f32.mrf.mxu0 }
 0x41c   : > { %v7487_v10 = vadd.f32 %v7486_v30, %v7485_v37  ;;  %v7592_v40 = vpop.f32.mrf.mxu1 }
 0x41d   : > { %v7593_v62 = vadd.f32 %v7592_v40, %v7591_v2  ;;  %v7488_v52 = vpop.f32.mrf.mxu0 }
 0x41e   : > { %v7594_v13 = vpop.f32.mrf.mxu1 }
 0x41f   : > { %v10074_v39 = vadd.f32 %v7593_v62, %v9939_v16  ;;  %v7489_v44 = vpop.f32.mrf.mxu0 }
 0x420   : > { %v7490_v12 = vadd.f32 %v7489_v44, %v7488_v52  ;;  %v7595_v35 = vpop.f32.mrf.mxu1  ;;  %v4245_v44 = vld [vmem:[#allocation2 + $0x209] sm:$0xff] }
 0x421   : > { %v7596_v7 = vadd.f32 %v7595_v35, %v7594_v13  ;;  %v7491_v53 = vpop.f32.mrf.mxu0  ;;  %5914 = vmatmul.mubr.bf16.gmra.mxu0 %v9953_v15 }
 0x422   : > { %v7597_v50 = vpop.f32.mrf.mxu1  ;;  %6067 = vmatmul.mubr.bf16.gmra.mxu1 %v9956_v47  ;;  %5921 = vmatprep.mubr.bf16.mxu0 %v9981_v54 }
 0x423   : > { %v10079_v27 = vadd.f32 %v7596_v7, %v7484_v8  ;;  %6074 = vmatprep.mubr.bf16.mxu1 %v9963_v9  ;;  %v7492_v4 = vpop.f32.mrf.mxu0  ;;  %v4371_v8 = vld [vmem:[#allocation2 + $0x208] sm:$0xff] }
 0x424   : > { %v7493_v16 = vadd.f32 %v7492_v4, %v7491_v53  ;;  %v7598_v63 = vpop.f32.mrf.mxu1 }
 0x425   : > { %v7599_v51 = vadd.f32 %v7598_v63, %v7597_v50  ;;  %v7494_v55 = vpop.f32.mrf.mxu0 }
 0x426   : > { %v7600_v31 = vpop.f32.mrf.mxu1 }
 0x427   : > { %v10085_v15 = vadd.f32 %v7599_v51, %v7487_v10  ;;  %v7495_v24 = vpop.f32.mrf.mxu0 }
 0x428   : > { %v7496_v47 = vadd.f32 %v7495_v24, %v7494_v55  ;;  %v7601_v28 = vpop.f32.mrf.mxu1 }
 0x429   : > { %v7602_v46 = vadd.f32 %v7601_v28, %v7600_v31  ;;  %v7497_v56 = vpop.f32.mrf.mxu0  ;;  %5922 = vmatmul.mubr.bf16.gmra.mxu0 %v9963_v9 }
 0x42a   : > { %v7603_v54 = vpop.f32.mrf.mxu1  ;;  %6075 = vmatmul.mubr.bf16.gmra.mxu1 %v9966_v48  ;;  %5929 = vmatprep.mubr.bf16.mxu0 %v9991_v0 }
 0x42b   : > { %v10090_v14 = vadd.f32 %v7602_v46, %v7490_v12  ;;  %6082 = vmatprep.mubr.bf16.mxu1 %v9973_v11  ;;  %v7498_v61 = vpop.f32.mrf.mxu0  ;;  %v4246_v12 = vld [vmem:[#allocation2 + $0x211] sm:$0xff]  ;;  %v4407_v46 = vld [vmem:[#allocation2 + $0x49] sm:$0xff] }
 0x42c   : > { %v7499_v59 = vadd.f32 %v7498_v61, %v7497_v56  ;;  %v7604_v5 = vpop.f32.mrf.mxu1  ;;  %v4408_v56 = vld [vmem:[#allocation2 + $0x51] sm:$0xff] }
 0x42d   : > { %v7605_v23 = vadd.f32 %v7604_v5, %v7603_v54  ;;  %v7500_v60 = vpop.f32.mrf.mxu0 }
 0x42e   : > { %v7606_v26 = vpop.f32.mrf.mxu1 }
 0x42f   : > { %v10093_v36 = vadd.f32 %v7605_v23, %v7493_v16  ;;  %v7501_v58 = vpop.f32.mrf.mxu0 }
 0x430   : > { %v7502_v9 = vadd.f32 %v7501_v58, %v7500_v60  ;;  %v7607_v20 = vpop.f32.mrf.mxu1 }
 0x431   : > { %v7608_v41 = vadd.f32 %v7607_v20, %v7606_v26  ;;  %v7503_v21 = vpop.f32.mrf.mxu0  ;;  %5930 = vmatmul.mubr.bf16.gmra.mxu0 %v9973_v11  ;;  %v4767_v26 = vpack.c.bf16 %v4408_v56, %v4407_v46 }
 0x432   : > { %v7609_v48 = vpop.f32.mrf.mxu1  ;;  %6083 = vmatmul.mubr.bf16.gmra.mxu1 %v9976_v1  ;;  %5937 = vmatprep.mubr.bf16.mxu0 %v10001_v32 }
 0x433   : > { %v10098_v0 = vadd.f32 %v7608_v41, %v7496_v47  ;;  %6090 = vmatprep.mubr.bf16.mxu1 %v9983_v45  ;;  %v7504_v25 = vpop.f32.mrf.mxu0 }
 0x434   : > { %v7505_v49 = vadd.f32 %v7504_v25, %v7503_v21  ;;  %v7610_v6 = vpop.f32.mrf.mxu1  ;;  %v4310_v25 = vld [vmem:[#allocation2 + $0x22f] sm:$0xff] }
 0x435   : > { %v7611_v17 = vadd.f32 %v7610_v6, %v7609_v48  ;;  %v7506_v42 = vpop.f32.mrf.mxu0  ;;  %v4309_v48 = vld [vmem:[#allocation2 + $0x227] sm:$0xff] }
 0x436   : > { %v7612_v38 = vpop.f32.mrf.mxu1 }
 0x437   : > { %v10104_v11 = vadd.f32 %v7611_v17, %v7499_v59  ;;  %v7507_v22 = vpop.f32.mrf.mxu0  ;;  %v8393_v59 = vld [vmem:[#allocation2] sm:$0xff]  ;;  %v4409_v17 = vld [vmem:[#allocation2 + $0x69] sm:$0xff] }
 0x438   : > { %v7508_v1 = vadd.f32 %v7507_v22, %v7506_v42  ;;  %v7613_v57 = vpop.f32.mrf.mxu1  ;;  %v4901_v5 = vpack.c.bf16 %v8393_v59, %v8393_v59  ;;  %v4410_v42 = vld [vmem:[#allocation2 + $0x71] sm:$0xff]  ;;  %v4411_v22 = vld [vmem:[#allocation2 + $0x89] sm:$0xff] }
 0x439   : > { %v7614_v32 = vadd.f32 %v7613_v57, %v7612_v38  ;;  %v7509_v37 = vpop.f32.mrf.mxu0  ;;  %5938 = vmatmul.mubr.bf16.gmra.mxu0 %v9983_v45  ;;  %v4372_v45 = vld [vmem:[#allocation2 + $0x210] sm:$0xff] }
 0x43a   : > { %v7615_v2 = vpop.f32.mrf.mxu1  ;;  %6091 = vmatmul.mubr.bf16.gmra.mxu1 %v9986_v33  ;;  %5945 = vmatprep.mubr.bf16.mxu0 %v10009_v19  ;;  %v10114_v19 = vpack.c.bf16 %v4246_v12, %v4245_v44  ;;  %v4892_v63 = vpack.c.bf16 %v4372_v45, %v4371_v8 }
 0x43b   : > { %v10109_v30 = vadd.f32 %v7614_v32, %v7502_v9  ;;  %6098 = vmatprep.mubr.bf16.mxu1 %v9993_v34  ;;  %v7510_v10 = vpop.f32.mrf.mxu0  ;;  %v4900_v32 = vpack.c.bf16 %v4310_v25, %v4309_v48  ;;  %v4420_v48 = vld [vmem:[#allocation2 + $0x111] sm:$0xff] }
 0x43c   : > { %v7511_v40 = vadd.f32 %v7510_v10, %v7509_v37  ;;  %v7616_v62 = vpop.f32.mrf.mxu1 }
 0x43d   : > { %v7617_v52 = vadd.f32 %v7616_v62, %v7615_v2  ;;  %v7512_v13 = vpop.f32.mrf.mxu0  ;;  %v4776_v2 = vpack.c.bf16 %v4410_v42, %v4409_v17 }
 0x43e   : > { %v7618_v35 = vpop.f32.mrf.mxu1 }
 0x43f   : > { %v10112_v7 = vadd.f32 %v7617_v52, %v7505_v49  ;;  %v7513_v53 = vpop.f32.mrf.mxu0 }
 0x440   : > { %v7514_v33 = vadd.f32 %v7513_v53, %v7512_v13  ;;  %v7619_v50 = vpop.f32.mrf.mxu1  ;;  %v4413_v53 = vld [vmem:[#allocation2 + $0xa9] sm:$0xff] }
 0x441   : > { %v7620_v4 = vadd.f32 %v7619_v50, %v7618_v35  ;;  %v7515_v16 = vpop.f32.mrf.mxu0  ;;  %5946 = vmatmul.mubr.bf16.gmra.mxu0 %v9993_v34  ;;  %v8386_v34 = vld [vmem:[%s10714_s13 + $0x28] sm:$0xff]  }
 0x442   : > { %v7621_v51 = vpop.f32.mrf.mxu1  ;;  %6099 = vmatmul.mubr.bf16.gmra.mxu1 %v9996_v3  ;;  %5953 = vmatprep.mubr.bf16.mxu0 %v10114_v19 }
 0x443   : > { %v10119_v55 = vadd.f32 %v7620_v4, %v7508_v1  ;;  %6106 = vmatprep.mubr.bf16.mxu1 %v4892_v63  ;;  %v7516_v31 = vpop.f32.mrf.mxu0  ;;  %8107 = vmatprep.subr.bf16.mxu1 %v8386_v34  ;;  %v4412_v1 = vld [vmem:[#allocation2 + $0x91] sm:$0xff] }
 0x444   : > { %v7517_v29 = vadd.f32 %v7516_v31, %v7515_v16  ;;  %v7622_v24 = vpop.f32.mrf.mxu1  ;;  %8108 = vmatpush3.bf16.msra.mxu1 %v8386_v34  ;;  %v4785_v62 = vpack.c.bf16 %v4412_v1, %v4411_v22  ;;  %v4415_v16 = vld [vmem:[#allocation2 + $0xc9] sm:$0xff]  ;;  %v8387_v31 = vld [vmem:[%s10714_s13 + $0x20] sm:$0xff]  }
 0x445   : > { %v7623_v47 = vadd.f32 %v7622_v24, %v7621_v51  ;;  %v7518_v28 = vpop.f32.mrf.mxu0  ;;  %8109 = vmatprep.subr.bf16.mxu1 %v8387_v31 }
 0x446   : > { %v7624_v54 = vpop.f32.mrf.mxu1 }
 0x447   : > { %v10124_v61 = vadd.f32 %v7623_v47, %v7511_v40  ;;  %v7519_v3 = vpop.f32.mrf.mxu0 }
 0x448   : > { %v7520_v23 = vadd.f32 %v7519_v3, %v7518_v28  ;;  %v7625_v60 = vpop.f32.mrf.mxu1  ;;  %8110 = vmatpush3.bf16.msra.mxu1 %v8387_v31 }
 0x449   : > { %v7626_v58 = vadd.f32 %v7625_v60, %v7624_v54  ;;  %v7521_v9 = vpop.f32.mrf.mxu0  ;;  %5954 = vmatmul.mubr.bf16.gmra.mxu0 %v4892_v63  ;;  %v4416_v63 = vld [vmem:[#allocation2 + $0xd1] sm:$0xff] }
 0x44a   : > { %v7627_v20 = vpop.f32.mrf.mxu1  ;;  %6107 = vmatmul.mubr.bf16.gmra.mxu1 %v10004_v43  ;;  %8071 = vmatprep.mubr.bf16.mxu0 %v4767_v26  ;;  %v4803_v56 = vpack.c.bf16 %v4416_v63, %v4415_v16  ;;  %v4417_v26 = vld [vmem:[#allocation2 + $0xe9] sm:$0xff] }
 0x44b   : > { %v10127_v41 = vadd.f32 %v7626_v58, %v7514_v33  ;;  %v7522_v21 = vpop.f32.mrf.mxu0  ;;  %6114 = vmatprep.mubr.bf16.mxu1 %v4901_v5  ;;  %v4414_v33 = vld [vmem:[#allocation2 + $0xb1] sm:$0xff] }
 0x44c   : > { %v7523_v49 = vadd.f32 %v7522_v21, %v7521_v9  ;;  %v7628_v6 = vpop.f32.mrf.mxu1  ;;  %v4794_v47 = vpack.c.bf16 %v4414_v33, %v4413_v53  ;;  %v4418_v58 = vld [vmem:[#allocation2 + $0xf1] sm:$0xff]  ;;  %v4419_v21 = vld [vmem:[#allocation2 + $0x109] sm:$0xff] }
 0x44d   : > { %v7629_v38 = vadd.f32 %v7628_v6, %v7627_v20  ;;  %v7524_v18 = vpop.f32.mrf.mxu0  ;;  %v4812_v17 = vpack.c.bf16 %v4418_v58, %v4417_v26 }
 0x44e   : > { %v7630_v57 = vpop.f32.mrf.mxu1 }
 0x44f   : > { %v10129_v37 = vadd.f32 %v7629_v38, %v7517_v29  ;;  %v7525_v43 = vpop.f32.mrf.mxu0 }
 0x450   : > { %v7526_v10 = vadd.f32 %v7525_v43, %v7524_v18  ;;  %v7631_v40 = vpop.f32.mrf.mxu1  ;;  %v4821_v18 = vpack.c.bf16 %v4420_v48, %v4419_v21 }
 0x451   : > { %v7632_v52 = vadd.f32 %v7631_v40, %v7630_v57  ;;  %v7527_v13 = vpop.f32.mrf.mxu0  ;;  %8072 = vmatmul.mubr.bf16.vlgmr.msra.gmra.mxu0 %v4776_v2  ;;  %v4421_v40 = vld [vmem:[#allocation2 + $0x129] sm:$0xff] }
 0x452   : > { %v7633_v44 = vpop.f32.mrf.mxu1  ;;  %6115 = vmatmul.mubr.bf16.gmra.mxu1 %v4900_v32  ;;  %8075 = vmatprep.mubr.bf16.mxu0 %v4785_v62  ;;  %v4422_v62 = vld [vmem:[#allocation2 + $0x131] sm:$0xff] }
 0x453   : > { %v10131_v12 = vadd.f32 %v7632_v52, %v7520_v23  ;;  %v7528_v35 = vpop.f32.mrf.mxu0 }
 0x454   : > { %v7529_v8 = vadd.f32 %v7528_v35, %v7527_v13  ;;  %v7634_v45 = vpop.f32.mrf.mxu1  ;;  %v4424_v35 = vld [vmem:[#allocation2 + $0x151] sm:$0xff] }
 0x455   : > { %v7635_v50 = vadd.f32 %v7634_v45, %v7633_v44  ;;  %v7530_v4 = vpop.f32.mrf.mxu0  ;;  %v4423_v44 = vld [vmem:[#allocation2 + $0x149] sm:$0xff]  ;;  %v8388_v45 = vld [vmem:[%s10714_s13 + $0x18] sm:$0xff]  }
 0x456   : > { %v7636_v51 = vpop.f32.mrf.mxu1  ;;  %v4839_v63 = vpack.c.bf16 %v4424_v35, %v4423_v44  ;;  %8111 = vmatprep.subr.bf16.mxu1 %v8388_v45 }
 0x457   : > { %v10136_v29 = vadd.f32 %v7635_v50, %v7523_v49  ;;  %v7531_v24 = vpop.f32.mrf.mxu0  ;;  %v4830_v50 = vpack.c.bf16 %v4422_v62, %v4421_v40  ;;  %8112 = vmatpush3.bf16.msra.mxu1 %v8388_v45  ;;  %v4431_v40 = vld [vmem:[#allocation2 + $0x1c9] sm:$0xff]  ;;  %v4432_v62 = vld [vmem:[#allocation2 + $0x1d1] sm:$0xff] }
 0x458   : > { %v7532_v28 = vadd.f32 %v7531_v24, %v7530_v4  ;;  %v7637_v46 = vpop.f32.mrf.mxu1 }
 0x459   : > { %v7638_v54 = vadd.f32 %v7637_v46, %v7636_v51  ;;  %v7533_v34 = vpop.f32.mrf.mxu0  ;;  %8076 = vmatmul.mubr.bf16.gmra.mxu0 %v4794_v47 }
 0x45a   : > { %v7639_v3 = vpop.f32.mrf.mxu1  ;;  %8079 = vmatprep.mubr.bf16.mxu0 %v4803_v56 }
 0x45b   : > { %v10138_v59 = vadd.f32 %v7638_v54, %v7526_v10  ;;  %v7534_v5 = vpop.f32.mrf.mxu0  ;;  %v4425_v54 = vld [vmem:[#allocation2 + $0x169] sm:$0xff] }
 0x45c   : > { %v7535_v23 = vadd.f32 %v7534_v5, %v7533_v34  ;;  %v7640_v60 = vpop.f32.mrf.mxu1  ;;  %v4426_v34 = vld [vmem:[#allocation2 + $0x171] sm:$0xff] }
 0x45d   : > { %v7641_v9 = vadd.f32 %v7640_v60, %v7639_v3  ;;  %v7536_v20 = vpop.f32.mrf.mxu0  ;;  %v4428_v60 = vld [vmem:[#allocation2 + $0x191] sm:$0xff] }
 0x45e   : > { %v7642_v25 = vpop.f32.mrf.mxu1 }
 0x45f   : > { %v10140_v49 = vadd.f32 %v7641_v9, %v7529_v8  ;;  %v7537_v6 = vpop.f32.mrf.mxu0 }
 0x460   : > { %v7538_v42 = vadd.f32 %v7537_v6, %v7536_v20  ;;  %v7643_v38 = vpop.f32.mrf.mxu1  ;;  %v4848_v20 = vpack.c.bf16 %v4426_v34, %v4425_v54 }
 0x461   : > { %v7644_v22 = vadd.f32 %v7643_v38, %v7642_v25  ;;  %v7539_v1 = vpop.f32.mrf.mxu0  ;;  %8080 = vmatmul.mubr.bf16.gmra.mxu0 %v4812_v17 }
 0x462   : > { %v7645_v57 = vpop.f32.mrf.mxu1  ;;  %8083 = vmatprep.mubr.bf16.mxu0 %v4821_v18 }
 0x463   : > { %v10142_v32 = vadd.f32 %v7644_v22, %v7532_v28  ;;  %v7540_v43 = vpop.f32.mrf.mxu0 }
 0x464   : > { %v7541_v2 = vadd.f32 %v7540_v43, %v7539_v1  ;;  %v7646_v10 = vpop.f32.mrf.mxu1  ;;  %v4430_v43 = vld [vmem:[#allocation2 + $0x1b1] sm:$0xff] }
 0x465   : > { %v7647_v52 = vadd.f32 %v7646_v10, %v7645_v57  ;;  %v7542_v13 = vpop.f32.mrf.mxu0  ;;  %v4429_v57 = vld [vmem:[#allocation2 + $0x1a9] sm:$0xff] }
 0x466   : > { %v7648_v8 = vpop.f32.mrf.mxu1 }
 0x467   : > { %v10147_v53 = vadd.f32 %v7647_v52, %v7535_v23  ;;  %v7543_v33 = vpop.f32.mrf.mxu0  ;;  %v4427_v23 = vld [vmem:[#allocation2 + $0x189] sm:$0xff] }
 0x468   : > { %v7544_v4 = vadd.f32 %v7543_v33, %v7542_v13  ;;  %v7649_v16 = vpop.f32.mrf.mxu1  ;;  %v4857_v25 = vpack.c.bf16 %v4428_v60, %v4427_v23  ;;  %v8389_v13 = vld [vmem:[%s10714_s13 + $0x10] sm:$0xff]  }
 0x469   : > { %v7650_v51 = vadd.f32 %v7649_v16, %v7648_v8  ;;  %v7545_v31 = vpop.f32.mrf.mxu0  ;;  %8084 = vmatmul.mubr.bf16.gmra.mxu0 %v4830_v50  ;;  %v4866_v8 = vpack.c.bf16 %v4430_v43, %v4429_v57  ;;  %v4875_v50 = vpack.c.bf16 %v4432_v62, %v4431_v40  ;;  %8113 = vmatprep.subr.bf16.mxu1 %v8389_v13 }
 0x46a   : > { %v7651_v24 = vpop.f32.mrf.mxu1  ;;  %8087 = vmatprep.mubr.bf16.mxu0 %v4839_v63  ;;  %8114 = vmatpush3.bf16.msra.mxu1 %v8389_v13 }
 0x46b   : > { %v10149_v47 = vadd.f32 %v7650_v51, %v7538_v42  ;;  %v7546_v28 = vpop.f32.mrf.mxu0 }
 0x46c   : > { %v7547_v46 = vadd.f32 %v7546_v28, %v7545_v31  ;;  %v7652_v56 = vpop.f32.mrf.mxu1 }
 0x46d   : > { %v7653_v3 = vadd.f32 %v7652_v56, %v7651_v24  ;;  %v7548_v5 = vpop.f32.mrf.mxu0  ;;  %v4433_v56 = vld [vmem:[#allocation2 + $0x1e9] sm:$0xff] }
 0x46e   : > { %v7654_v26 = vpop.f32.mrf.mxu1 }
 0x46f   : > { %v10151_v58 = vadd.f32 %v7653_v3, %v7541_v2  ;;  %v7549_v9 = vpop.f32.mrf.mxu0 }
 0x470   : > { %v7550_v21 = vadd.f32 %v7549_v9, %v7548_v5  ;;  %v7655_v48 = vpop.f32.mrf.mxu1 }
 0x471   : > { %v7656_v6 = vadd.f32 %v7655_v48, %v7654_v26  ;;  %v7551_v17 = vpop.f32.mrf.mxu0  ;;  %8088 = vmatmul.mubr.bf16.gmra.mxu0 %v4848_v20 }
 0x472   : > { %v7657_v42 = vpop.f32.mrf.mxu1  ;;  %8091 = vmatprep.mubr.bf16.mxu0 %v4857_v25 }
 0x473   : > { %v10153_v38 = vadd.f32 %v7656_v6, %v7544_v4  ;;  %v7552_v18 = vpop.f32.mrf.mxu0  ;;  %v4438_v6 = vld [vmem:[#allocation2 + $0x231] sm:$0xff] }
 0x474   : > { %v7553_v22 = vadd.f32 %v7552_v18, %v7551_v17  ;;  %v7658_v1 = vpop.f32.mrf.mxu1 }
 0x475   : > { %v7659_v10 = vadd.f32 %v7658_v1, %v7657_v42  ;;  %v7554_v2 = vpop.f32.mrf.mxu0 }
 0x476   : > { %v7660_v52 = vpop.f32.mrf.mxu1 }
 0x477   : > { %v10158_v44 = vadd.f32 %v7659_v10, %v7547_v46  ;;  %v7555_v35 = vpop.f32.mrf.mxu0  ;;  %v4434_v46 = vld [vmem:[#allocation2 + $0x1f1] sm:$0xff] }
 0x478   : > { %v7556_v45 = vadd.f32 %v7555_v35, %v7554_v2  ;;  %v7661_v33 = vpop.f32.mrf.mxu1  ;;  %v4884_v60 = vpack.c.bf16 %v4434_v46, %v4433_v56  ;;  %v8390_v2 = vld [vmem:[%s10714_s13 + $0x8] sm:$0xff]  }
 0x479   : > { %v7662_v4 = vadd.f32 %v7661_v33, %v7660_v52  ;;  %v7557_v16 = vpop.f32.mrf.mxu0  ;;  %8092 = vmatmul.mubr.bf16.gmra.mxu0 %v4866_v8  ;;  %8115 = vmatprep.subr.bf16.mxu1 %v8390_v2 }
 0x47a   : > { %v7663_v63 = vpop.f32.mrf.mxu1  ;;  %8095 = vmatprep.mubr.bf16.mxu0 %v4875_v50  ;;  %8116 = vmatpush3.bf16.msra.mxu1 %v8390_v2  ;;  %v8391_v2 = vld [vmem:[%s10714_s13] sm:$0xff]  }
 0x47b   : > { %v10160_v51 = vadd.f32 %v7662_v4, %v7550_v21  ;;  %v7558_v31 = vpop.f32.mrf.mxu0  ;;  %v4437_v21 = vld [vmem:[#allocation2 + $0x229] sm:$0xff]  ;;  %8117 = vmatprep.subr.bf16.mxu1 %v8391_v2 }
 0x47c   : > { %v7559_v24 = vadd.f32 %v7558_v31, %v7557_v16  ;;  %v7664_v28 = vpop.f32.mrf.mxu1  ;;  %v4902_v43 = vpack.c.bf16 %v4438_v6, %v4437_v21 }
 0x47d   : > { %v7665_v54 = vadd.f32 %v7664_v28, %v7663_v63  ;;  %v7560_v34 = vpop.f32.mrf.mxu0 }
 0x47e   : > { %v7666_v3 = vpop.f32.mrf.mxu1  ;;  %8118 = vmatpush3.bf16.msra.mxu1 %v8391_v2 }
 0x47f   : > { %v10162_v5 = vadd.f32 %v7665_v54, %v7553_v22  ;;  %v7561_v23 = vpop.f32.mrf.mxu0 }
 0x480   : > { %v7562_v26 = vadd.f32 %v7561_v23, %v7560_v34  ;;  %v7667_v9 = vpop.f32.mrf.mxu1 }
 0x481   : > { %v7668_v20 = vadd.f32 %v7667_v9, %v7666_v3  ;;  %v7563_v48 = vpop.f32.mrf.mxu0  ;;  %8096 = vmatmul.mubr.bf16.gmra.mxu0 %v4884_v60 }
 0x482   : > { %v7669_v25 = vpop.f32.mrf.mxu1  ;;  %8099 = vmatprep.mubr.bf16.mxu0 %v10114_v19 }
 0x483   : > { %v10165_v17 = vadd.f32 %v7668_v20, %v7556_v45  ;;  %v7564_v42 = vpop.f32.mrf.mxu0 }
 0x484   : > { %v7565_v18 = vadd.f32 %v7564_v42, %v7563_v48  ;;  %v7670_v1 = vpop.f32.mrf.mxu1 }
 0x485   : > { %v7671_v57 = vadd.f32 %v7670_v1, %v7669_v25  ;;  %v7566_v22 = vpop.f32.mrf.mxu0 }
 0x486   : > { %v7672_v10 = vpop.f32.mrf.mxu1 }
 0x487   : > { %v10170_v40 = vadd.f32 %v7671_v57, %v7559_v24  ;;  %v7567_v62 = vpop.f32.mrf.mxu0 }
 0x488   : > { %v7568_v52 = vadd.f32 %v7567_v62, %v7566_v22  ;;  %v7673_v19 = vpop.f32.mrf.mxu1 }
 0x489   : > { %v7674_v13 = vadd.f32 %v7673_v19, %v7672_v10  ;;  %v7569_v35 = vpop.f32.mrf.mxu0  ;;  %8100 = vmatmul.mubr.bf16.gmra.mxu0 %v4902_v43 }
 0x48a   : > { %v7675_v8 = vpop.f32.mrf.mxu1 }
 0x48b   : > { %v10172_v45 = vadd.f32 %v7674_v13, %v7562_v26  ;;  %v7570_v33 = vpop.f32.mrf.mxu0 }
 0x48c   : > { %v7571_v50 = vadd.f32 %v7570_v33, %v7569_v35  ;;  %v7676_v4 = vpop.f32.mrf.mxu1 }
 0x48d   : > { %v7677_v16 = vadd.f32 %v7676_v4, %v7675_v8  ;;  %v7572_v63 = vpop.f32.mrf.mxu0 }
 0x48e   : > { %v7678_v31 = vpop.f32.mrf.mxu1 }
 0x48f   : > { %v10174_v28 = vadd.f32 %v7677_v16, %v7565_v18  ;;  %v7573_v24 = vpop.f32.mrf.mxu0 }
 0x490   : > { %v7574_v56 = vadd.f32 %v7573_v24, %v7572_v63  ;;  %v7679_v46 = vpop.f32.mrf.mxu1 }
 0x491   : > { %v7680_v54 = vadd.f32 %v7679_v46, %v7678_v31  ;;  %v7703_v34 = vpop.f32.mrf.mxu0 }
 0x492   : > { %v7681_v3 = vpop.f32.mrf.mxu1 }
 0x493   : > { %v10176_v23 = vadd.f32 %v7680_v54, %v7568_v52  ;;  %v7704_v60 = vpop.f32.mrf.mxu0 }
 0x494   : > { %v7682_v9 = vpop.f32.mrf.mxu1  ;;  %v7705_v26 = vadd.f32 %v7704_v60, %v7703_v34 }
 0x495   : > { %v7683_v20 = vadd.f32 %v7682_v9, %v7681_v3  ;;  %v7706_v48 = vpop.f32.mrf.mxu0 }
 0x496   : > { %v5836_v25 = vadd.f32 %v7705_v26, %v10074_v39  ;;  %v7684_v21 = vpop.f32.mrf.mxu1 }
 0x497   : > { %v10179_v6 = vadd.f32 %v7683_v20, %v7571_v50  ;;  %v7707_v42 = vpop.f32.mrf.mxu0 }
 0x498   : > { %v7685_v18 = vpop.f32.mrf.mxu1  ;;  %v7708_v1 = vadd.f32 %v7707_v42, %v7706_v48 }
 0x499   : > { %v7686_v57 = vadd.f32 %v7685_v18, %v7684_v21  ;;  %v7709_v22 = vpop.f32.mrf.mxu0 }
 0x49a   : > { %v5839_v43 = vadd.f32 %v7708_v1, %v10079_v27  ;;  %v7815_v10 = vpop.f32.mrf.mxu1 }
 0x49b   : > { %v10185_v62 = vadd.f32 %v7686_v57, %v7574_v56  ;;  %v7710_v52 = vpop.f32.mrf.mxu0 }
 0x49c   : > { %v7711_v19 = vadd.f32 %v7710_v52, %v7709_v22  ;;  %v7816_v39 = vpop.f32.mrf.mxu1 }
 0x49d   : > { %10832 = vst [vmem:[#allocation39_spill] sm:$0xff] %v10185_v62  ;;  %v7817_v13 = vadd.f32 %v7816_v39, %v7815_v10  ;;  %v7712_v35 = vpop.f32.mrf.mxu0 }
 0x49e   : > { %v10188_v8 = vadd.f32 %v7711_v19, %v10085_v15  ;;  %v7818_v33 = vpop.f32.mrf.mxu1 }
 0x49f   : > { %v7713_v50 = vpop.f32.mrf.mxu0  ;;  %v10190_v27 = vadd.f32 %v7817_v13, %v5836_v25 }
 0x4a0   : > { %v7714_v4 = vadd.f32 %v7713_v50, %v7712_v35  ;;  %v7819_v16 = vpop.f32.mrf.mxu1 }
 0x4a1   : > { %v7820_v63 = vadd.f32 %v7819_v16, %v7818_v33  ;;  %v7715_v31 = vpop.f32.mrf.mxu0 }
 0x4a2   : > { %v10193_v24 = vadd.f32 %v7714_v4, %v10090_v14  ;;  %v10195_v56 = vpop.f32.mrf.mxu1 }
 0x4a3   : > { %v7716_v46 = vpop.f32.mrf.mxu0  ;;  %v10197_v54 = vadd.f32 %v7820_v63, %v5839_v43 }
 0x4a4   : > { %v7717_v34 = vadd.f32 %v7716_v46, %v7715_v31  ;;  %v10199_v3 = vpop.f32.mrf.mxu1 }
 0x4a5   : > { %v7718_v15 = vpop.f32.mrf.mxu0 }
 0x4a6   : > { %v10202_v60 = vadd.f32 %v7717_v34, %v10093_v36  ;;  %v10204_v9 = vpop.f32.mrf.mxu1 }
 0x4a7   : > { %v7719_v26 = vpop.f32.mrf.mxu0 }
 0x4a8   : > { %v7720_v20 = vadd.f32 %v7719_v26, %v7718_v15  ;;  %v10206_v48 = vpop.f32.mrf.mxu1 }
 0x4a9   : > { %v7721_v14 = vpop.f32.mrf.mxu0 }
 0x4aa   : > { %v10209_v25 = vadd.f32 %v7720_v20, %v10098_v0  ;;  %v10211_v21 = vpop.f32.mrf.mxu1 }
 0x4ab   : > { %v7722_v42 = vpop.f32.mrf.mxu0 }
 0x4ac   : > { %v7723_v18 = vadd.f32 %v7722_v42, %v7721_v14  ;;  %v10213_v1 = vpop.f32.mrf.mxu1 }
 0x4ad   : > { %v7724_v57 = vpop.f32.mrf.mxu0 }
 0x4ae   : > { %v10216_v36 = vadd.f32 %v7723_v18, %v10104_v11  ;;  %v10218_v22 = vpop.f32.mrf.mxu1 }
 0x4af   : > { %v7725_v43 = vpop.f32.mrf.mxu0 }
 0x4b0   : > { %v7726_v10 = vadd.f32 %v7725_v43, %v7724_v57  ;;  %v10220_v2 = vpop.f32.mrf.mxu1 }
 0x4b1   : > { %v7727_v52 = vpop.f32.mrf.mxu0 }
 0x4b2   : > { %v10223_v0 = vadd.f32 %v7726_v10, %v10109_v30  ;;  %v10225_v19 = vpop.f32.mrf.mxu1 }
 0x4b3   : > { %v7728_v39 = vpop.f32.mrf.mxu0 }
 0x4b4   : > { %v7729_v13 = vadd.f32 %v7728_v39, %v7727_v52  ;;  %v10227_v35 = vpop.f32.mrf.mxu1 }
 0x4b5   : > { %v7730_v33 = vpop.f32.mrf.mxu0 }
 0x4b6   : > { %v10230_v11 = vadd.f32 %v7729_v13, %v10112_v7  ;;  %v10232_v50 = vpop.f32.mrf.mxu1 }
 0x4b7   : > { %v7731_v4 = vpop.f32.mrf.mxu0 }
 0x4b8   : > { %v7732_v16 = vadd.f32 %v7731_v4, %v7730_v33  ;;  %v10234_v63 = vpop.f32.mrf.mxu1 }
 0x4b9   : > { %v7733_v31 = vpop.f32.mrf.mxu0 }
 0x4ba   : > { %v10237_v30 = vadd.f32 %v7732_v16, %v10119_v55  ;;  %v10239_v46 = vpop.f32.mrf.mxu1 }
 0x4bb   : > { %v7734_v34 = vpop.f32.mrf.mxu0 }
 0x4bc   : > { %v7735_v15 = vadd.f32 %v7734_v34, %v7733_v31  ;;  %v10241_v26 = vpop.f32.mrf.mxu1 }
 0x4bd   : > { %v7736_v20 = vpop.f32.mrf.mxu0 }
 0x4be   : > { %v10244_v7 = vadd.f32 %v7735_v15, %v10124_v61  ;;  %v10246_v14 = vpop.f32.mrf.mxu1 }
 0x4bf   : > { %v7737_v42 = vpop.f32.mrf.mxu0 }
 0x4c0   : > { %v7738_v18 = vadd.f32 %v7737_v42, %v7736_v20  ;;  %v10248_v57 = vpop.f32.mrf.mxu1 }
 0x4c1   : > { %v7739_v43 = vpop.f32.mrf.mxu0 }
 0x4c2   : > { %v10251_v55 = vadd.f32 %v7738_v18, %v10127_v41  ;;  %v10253_v10 = vpop.f32.mrf.mxu1 }
 0x4c3   : > { %v7740_v52 = vpop.f32.mrf.mxu0 }
 0x4c4   : > { %v7741_v39 = vadd.f32 %v7740_v52, %v7739_v43  ;;  %v10255_v13 = vpop.f32.mrf.mxu1 }
 0x4c5   : > { %v7742_v33 = vpop.f32.mrf.mxu0 }
 0x4c6   : > { %v10258_v61 = vadd.f32 %v7741_v39, %v10129_v37  ;;  %v10260_v4 = vpop.f32.mrf.mxu1 }
 0x4c7   : > { %v7743_v16 = vpop.f32.mrf.mxu0 }
 0x4c8   : > { %10833 = vst [vmem:[#allocation40_spill] sm:$0xff] %v10258_v61  ;;  %v7744_v31 = vadd.f32 %v7743_v16, %v7742_v33  ;;  %v10262_v34 = vpop.f32.mrf.mxu1 }
 0x4c9   : > { %v7745_v15 = vpop.f32.mrf.mxu0 }
 0x4ca   : > { %v10265_v41 = vadd.f32 %v7744_v31, %v10131_v12  ;;  %v10267_v20 = vpop.f32.mrf.mxu1 }
 0x4cb   : > { %v7746_v42 = vpop.f32.mrf.mxu0 }
 0x4cc   : > { %10834 = vst [vmem:[#allocation41_spill] sm:$0xff] %v10265_v41  ;;  %v7747_v18 = vadd.f32 %v7746_v42, %v7745_v15  ;;  %v10269_v43 = vpop.f32.mrf.mxu1 }
 0x4cd   : > { %10835 = vst [vmem:[#allocation42_spill] sm:$0xff] %v10269_v43  ;;  %v7748_v52 = vpop.f32.mrf.mxu0 }
 0x4ce   : > { %v10272_v37 = vadd.f32 %v7747_v18, %v10136_v29  ;;  %v10274_v39 = vpop.f32.mrf.mxu1 }
 0x4cf   : > { %10837 = vst [vmem:[#allocation44_spill] sm:$0xff] %v10274_v39  ;;  %v7749_v62 = vpop.f32.mrf.mxu0 }
 0x4d0   : > { %10836 = vst [vmem:[#allocation43_spill] sm:$0xff] %v10272_v37  ;;  %v7750_v33 = vadd.f32 %v7749_v62, %v7748_v52  ;;  %v10276_v16 = vpop.f32.mrf.mxu1 }
 0x4d1   : > { %10838 = vst [vmem:[#allocation45_spill] sm:$0xff] %v10276_v16  ;;  %v7751_v61 = vpop.f32.mrf.mxu0 }
 0x4d2   : > { %v10279_v12 = vadd.f32 %v7750_v33, %v10138_v59  ;;  %v10281_v31 = vpop.f32.mrf.mxu1 }
 0x4d3   : > { %v7752_v41 = vpop.f32.mrf.mxu0 }
 0x4d4   : > { %10839 = vst [vmem:[#allocation46_spill] sm:$0xff] %v10279_v12  ;;  %v7753_v15 = vadd.f32 %v7752_v41, %v7751_v61  ;;  %v10283_v42 = vpop.f32.mrf.mxu1 }
 0x4d5   : > { %v7754_v43 = vpop.f32.mrf.mxu0 }
 0x4d6   : > { %v10286_v29 = vadd.f32 %v7753_v15, %v10140_v49  ;;  %v10288_v18 = vpop.f32.mrf.mxu1 }
 0x4d7   : > { %v7755_v37 = vpop.f32.mrf.mxu0 }
 0x4d8   : > { %10840 = vst [vmem:[#allocation47_spill] sm:$0xff] %v10286_v29  ;;  %v7756_v62 = vadd.f32 %v7755_v37, %v7754_v43  ;;  %v10290_v52 = vpop.f32.mrf.mxu1 }
 0x4d9   : > { %10841 = vst [vmem:[#allocation48_spill] sm:$0xff] %v10290_v52  ;;  %v7757_v16 = vpop.f32.mrf.mxu0 }
 0x4da   : > { %v10293_v59 = vadd.f32 %v7756_v62, %v10142_v32  ;;  %v10295_v33 = vpop.f32.mrf.mxu1 }
 0x4db   : > { %v7758_v12 = vpop.f32.mrf.mxu0 }
 0x4dc   : > { %10842 = vst [vmem:[#allocation49_spill] sm:$0xff] %v10293_v59  ;;  %v7759_v61 = vadd.f32 %v7758_v12, %v7757_v16  ;;  %v10297_v41 = vpop.f32.mrf.mxu1 }
 0x4dd   : > { %10843 = vst [vmem:[#allocation50_spill] sm:$0xff] %v10297_v41  ;;  %v7760_v39 = vpop.f32.mrf.mxu0 }
 0x4de   : > { %v10300_v49 = vadd.f32 %v7759_v61, %v10147_v53  ;;  %v10302_v15 = vpop.f32.mrf.mxu1 }
 0x4df   : > { %10845 = vst [vmem:[#allocation52_spill] sm:$0xff] %v10302_v15  ;;  %v7761_v29 = vpop.f32.mrf.mxu0 }
 0x4e0   : > { %10844 = vst [vmem:[#allocation51_spill] sm:$0xff] %v10300_v49  ;;  %v7762_v43 = vadd.f32 %v7761_v29, %v7760_v39  ;;  %v10304_v37 = vpop.f32.mrf.mxu1 }
 0x4e1   : > { %10846 = vst [vmem:[#allocation53_spill] sm:$0xff] %v10304_v37  ;;  %v7763_v52 = vpop.f32.mrf.mxu0 }
 0x4e2   : > { %v10307_v32 = vadd.f32 %v7762_v43, %v10149_v47  ;;  %v10309_v62 = vpop.f32.mrf.mxu1 }
 0x4e3   : > { %v7764_v59 = vpop.f32.mrf.mxu0 }
 0x4e4   : > { %10847 = vst [vmem:[#allocation54_spill] sm:$0xff] %v10307_v32  ;;  %v7765_v16 = vadd.f32 %v7764_v59, %v7763_v52  ;;  %v10311_v12 = vpop.f32.mrf.mxu1 }
 0x4e5   : > { %v7766_v41 = vpop.f32.mrf.mxu0 }
 0x4e6   : > { %v10314_v53 = vadd.f32 %v7765_v16, %v10151_v58  ;;  %v10316_v61 = vpop.f32.mrf.mxu1 }
 0x4e7   : > { %10849 = vst [vmem:[#allocation56_spill] sm:$0xff] %v10316_v61  ;;  %v7767_v49 = vpop.f32.mrf.mxu0 }
 0x4e8   : > { %10848 = vst [vmem:[#allocation55_spill] sm:$0xff] %v10314_v53  ;;  %v7768_v39 = vadd.f32 %v7767_v49, %v7766_v41  ;;  %v10318_v29 = vpop.f32.mrf.mxu1 }
 0x4e9   : > { %v7769_v37 = vpop.f32.mrf.mxu0 }
 0x4ea   : > { %v10321_v47 = vadd.f32 %v7768_v39, %v10153_v38  ;;  %v10323_v43 = vpop.f32.mrf.mxu1 }
 0x4eb   : > { %10851 = vst [vmem:[#allocation58_spill] sm:$0xff] %v10323_v43  ;;  %v7770_v32 = vpop.f32.mrf.mxu0 }
 0x4ec   : > { %10850 = vst [vmem:[#allocation57_spill] sm:$0xff] %v10321_v47  ;;  %v7771_v52 = vadd.f32 %v7770_v32, %v7769_v37  ;;  %v10325_v59 = vpop.f32.mrf.mxu1 }
 0x4ed   : > { %10852 = vst [vmem:[#allocation59_spill] sm:$0xff] %v10325_v59  ;;  %v7772_v15 = vpop.f32.mrf.mxu0 }
 0x4ee   : > { %v10328_v58 = vadd.f32 %v7771_v52, %v10158_v44  ;;  %v10330_v61 = vpop.f32.mrf.mxu1 }
 0x4ef   : > { %v7773_v16 = vpop.f32.mrf.mxu0 }
 0x4f0   : > { %10853 = vst [vmem:[#allocation60_spill] sm:$0xff] %v10328_v58  ;;  %v7774_v53 = vadd.f32 %v7773_v16, %v7772_v15  ;;  %v10335_v47 = vpop.f32.mrf.mxu1 }
 0x4f1   : > { %v7775_v41 = vpop.f32.mrf.mxu0 }
 0x4f2   : > { %v10333_v49 = vadd.f32 %v7774_v53, %v10160_v51  ;;  %v10340_v44 = vpop.f32.mrf.mxu1 }
 0x4f3   : > { %v7776_v38 = vpop.f32.mrf.mxu0 }
 0x4f4   : > { %10854 = vst [vmem:[#allocation61_spill] sm:$0xff] %v10333_v49  ;;  %v7777_v39 = vadd.f32 %v7776_v38, %v7775_v41  ;;  %v10345_v51 = vpop.f32.mrf.mxu1 }
 0x4f5   : > { %v7778_v43 = vpop.f32.mrf.mxu0 }
 0x4f6   : > { %v10338_v37 = vadd.f32 %v7777_v39, %v10162_v5  ;;  %v10350_v5 = vpop.f32.mrf.mxu1 }
 0x4f7   : > { %v7779_v32 = vpop.f32.mrf.mxu0 }
 0x4f8   : > { %10855 = vst [vmem:[#allocation62_spill] sm:$0xff] %v10338_v37  ;;  %v7780_v59 = vadd.f32 %v7779_v32, %v7778_v43 }
 0x4f9   : > { %v7781_v52 = vpop.f32.mrf.mxu0 }
 0x4fa   : > { %v10343_v15 = vadd.f32 %v7780_v59, %v10165_v17  ;;  %v10355_v17 = vpop.f32.mrf.mxu1 }
 0x4fb   : > { %v7782_v16 = vpop.f32.mrf.mxu0 }
 0x4fc   : > { %10856 = vst [vmem:[#allocation63_spill] sm:$0xff] %v10343_v15  ;;  %v7783_v58 = vadd.f32 %v7782_v16, %v7781_v52 }
 0x4fd   : > { %v7784_v53 = vpop.f32.mrf.mxu0 }
 0x4fe   : > { %v10348_v41 = vadd.f32 %v7783_v58, %v10170_v40  ;;  %v10360_v40 = vpop.f32.mrf.mxu1 }
 0x4ff   : > { %v7785_v38 = vpop.f32.mrf.mxu0 }
 0x500   : > { %v7786_v49 = vadd.f32 %v7785_v38, %v7784_v53 }
 0x501   : > { %v7787_v39 = vpop.f32.mrf.mxu0 }
 0x502   : > { %v10353_v43 = vadd.f32 %v7786_v49, %v10172_v45  ;;  %v7823_v45 = vadd.f32 %v10199_v3, %v10195_v56  ;;  %v10384_v56 = vld [vmem:[%s10712_s11] ss:$0 sm:$0xff] }
 0x503   : > { %v7788_v32 = vpop.f32.mrf.mxu0 }
 0x504   : > { %v7789_v37 = vadd.f32 %v7788_v32, %v7787_v39  ;;  %v10367_v39 = vpop.f32.mrf.mxu1 }
 0x505   : > { %v7790_v59 = vpop.f32.mrf.mxu0 }
 0x506   : > { %v10358_v52 = vadd.f32 %v7789_v37, %v10174_v28 }
 0x507   : > { %v7791_v16 = vpop.f32.mrf.mxu0 }
 0x508   : > { %10857 = vst [vmem:[#allocation64_spill] sm:$0xff] %v10358_v52  ;;  %v7792_v15 = vadd.f32 %v7791_v16, %v7790_v59  ;;  %v7826_v59 = vadd.f32 %v10206_v48, %v10204_v9  ;;  %v7835_v48 = vadd.f32 %v10227_v35, %v10225_v19 }
 0x509   : > { %v7793_v58 = vpop.f32.mrf.mxu0 }
 0x50a   : > { %v10363_v53 = vadd.f32 %v7792_v15, %v10176_v23  ;;  %v6005_v23 = vadd.f32 %v7823_v45, %v10188_v8  ;;  %v10379_v15 = vpop.f32.mrf.mxu1  ;;  %v6008_v8 = vadd.f32 %v7826_v59, %v10193_v24 }
 0x50b   : > { %v7794_v38 = vpop.f32.mrf.mxu0 }
 0x50c   : > { %10858 = vst [vmem:[#allocation65_spill] sm:$0xff] %v10363_v53  ;;  %v7795_v49 = vadd.f32 %v7794_v38, %v7793_v58  ;;  %v10396_v45 = vpop.f32.mrf.mxu1 }
 0x50d   : > { %v10369_v32 = vpop.f32.mrf.mxu0 }
 0x50e   : > { %v10372_v28 = vadd.f32 %v7795_v49, %v10179_v6  ;;  %v10389_v6 = vld [vmem:[%s10713_s12] ss:$0 sm:$0xff]  ;;  %v10408_v59 = vpop.f32.mrf.mxu1 }
 0x50f   : > { %v10374_v37 = vpop.f32.mrf.mxu0 }
 0x511   : > { %v8073_v16 = vpop.f32.mrf.mxu0 }
 0x512   : > { %v6166_v3 = vadd.f32 %v8073_v16, %v6005_v23  ;;  %v7829_v23 = vadd.f32 %v10213_v1, %v10211_v21  ;;  %v6021_v1 = vadd.f32 %v7835_v48, %v10216_v36  ;;  %v7841_v48 = vadd.f32 %v10241_v26, %v10239_v46 }
 0x513   : > { %v6157_v58 = vpop.f32.mrf.mxu0 }
 0x514   : > { %v6293_v38 = vmul.f32 %v10384_v56, %v6166_v3  ;;  %v6158_v9 = vadd.f32 %v6157_v58, %v10190_v27  ;;  %v7832_v3 = vadd.f32 %v10220_v2, %v10218_v22  ;;  %v7838_v27 = vadd.f32 %v10234_v63, %v10232_v50 }
 0x515   : > { %v8074_v49 = vpop.f32.mrf.mxu0  ;;  %v6013_v2 = vadd.f32 %v7829_v23, %v10202_v60 }
 0x516   : > { %v6332_v16 = vadd.f32 %v10389_v6, %v6293_v38  ;;  %v6291_v53 = vmul.f32 %v10384_v56, %v6158_v9  ;;  %v6169_v52 = vadd.f32 %v8074_v49, %v6008_v8  ;;  %v7847_v8 = vadd.f32 %v10255_v13, %v10253_v10 }
 0x517   : > { %v6160_v24 = vpop.f32.mrf.mxu0 }
 0x518   : > { %v6294_v19 = vmul.f32 %v10384_v56, %v6169_v52  ;;  %v6161_v35 = vadd.f32 %v6160_v24, %v10197_v54  ;;  %v6364_v58 = vmax.f32 %v6332_v16, 0.0  ;;  %v6330_v21 = vadd.f32 %v10389_v6, %v6291_v53  ;;  %v10422_v16 = vpop.f32.mrf.mxu1  ;;  %v10859_v24 = vld [vmem:[#allocation7_spill] sm:$0xff] }
 0x519   : > { %v8077_v38 = vpop.f32.mrf.mxu0  ;;  %v6024_v52 = vadd.f32 %v7838_v27, %v10223_v0  ;;  %v6016_v54 = vadd.f32 %v7832_v3, %v10209_v25  ;;  %v10860_v60 = vmax.f32 %v10859_v24, 0.0  ;;  %v10861_v25 = vld [vmem:[#allocation9_spill] sm:$0xff] }
 0x51a   : > { %v6333_v9 = vadd.f32 %v10389_v6, %v6294_v19  ;;  %v6292_v22 = vmul.f32 %v10384_v56, %v6161_v35  ;;  %v6182_v50 = vadd.f32 %v8077_v38, %v6021_v1  ;;  %v6362_v19 = vmax.f32 %v6330_v21, 0.0 }
 0x51b   : > { %v6173_v63 = vpop.f32.mrf.mxu0  ;;  %v6428_v23 = vadd.f32 %v6364_v58, %v10860_v60  ;;  %v10862_v3 = vmax.f32 %v10861_v25, 0.0  ;;  %v7844_v38 = vadd.f32 %v10248_v57, %v10246_v14  ;;  %v10865_v57 = vld [vmem:[#allocation10_spill] sm:$0xff] }
 0x51c   : > { %v6365_v49 = vmax.f32 %v6333_v9, 0.0  ;;  %v6331_v53 = vadd.f32 %v10389_v6, %v6292_v22  ;;  %v6174_v36 = vadd.f32 %v6173_v63, %v6013_v2  ;;  %v6297_v0 = vmul.f32 %v10384_v56, %v6182_v50  ;;  %v10437_v50 = vpop.f32.mrf.mxu1 }
 0x51d   : > { %v8078_v27 = vpop.f32.mrf.mxu0  ;;  %v6037_v22 = vadd.f32 %v7847_v8, %v10244_v7  ;;  %v7850_v2 = vadd.f32 %v10262_v34, %v10260_v4  ;;  %v6029_v7 = vadd.f32 %v7841_v48, %v10230_v11  ;;  %v7859_v4 = vadd.f32 %v10283_v42, %v10281_v31  ;;  %v10867_v31 = vld [vmem:[#allocation42_spill] sm:$0xff]  ;;  %v10868_v48 = vld [vmem:[#allocation13_spill] sm:$0xff] }
 0x51e   : > { %v6429_v35 = vadd.f32 %v6365_v49, %v10862_v3  ;;  %v6363_v10 = vmax.f32 %v6331_v53, 0.0  ;;  %v6295_v13 = vmul.f32 %v10384_v56, %v6174_v36  ;;  %v6185_v1 = vadd.f32 %v8078_v27, %v6024_v52  ;;  %v10863_v49 = vld [vmem:[#allocation8_spill] sm:$0xff] }
 0x51f   : > { %v6336_v46 = vadd.f32 %v10389_v6, %v6297_v0  ;;  %v6176_v26 = vpop.f32.mrf.mxu0  ;;  %v10864_v53 = vmax.f32 %v10863_v49, 0.0  ;;  %v10866_v36 = vmax.f32 %v10865_v57, 0.0  ;;  %v6032_v11 = vadd.f32 %v7844_v38, %v10237_v30  ;;  %v10873_v38 = vld [vmem:[#allocation44_spill] sm:$0xff] }
 0x520   : > { %v6459_v9 = vpack.c.bf16 %v6429_v35, %v6428_v23  ;;  %v6298_v58 = vmul.f32 %v10384_v56, %v6185_v1  ;;  %v6177_v21 = vadd.f32 %v6176_v26, %v6016_v54  ;;  %v6334_v63 = vadd.f32 %v10389_v6, %v6295_v13  ;;  %v10451_v35 = vpop.f32.mrf.mxu1 }
 0x521   : > { %v8081_v52 = vpop.f32.mrf.mxu0  ;;  %v6426_v14 = vadd.f32 %v6362_v19, %v10864_v53  ;;  %v6427_v24 = vadd.f32 %v6363_v10, %v10866_v36  ;;  %v6368_v34 = vmax.f32 %v6336_v46, 0.0  ;;  %v6040_v13 = vadd.f32 %v7850_v2, %v10251_v55  ;;  %v10875_v36 = vld [vmem:[#allocation43_spill] sm:$0xff] }
 0x522   : > { %v6337_v60 = vadd.f32 %v10389_v6, %v6298_v58  ;;  %v6296_v54 = vmul.f32 %v10384_v56, %v6177_v21  ;;  %v6198_v23 = vadd.f32 %v8081_v52, %v6037_v22  ;;  %v6366_v10 = vmax.f32 %v6334_v63, 0.0  ;;  %v10870_v22 = vld [vmem:[#allocation48_spill] sm:$0xff]  ;;  %v10871_v63 = vld [vmem:[#allocation11_spill] sm:$0xff] }
 0x523   : > { %v6189_v8 = vpop.f32.mrf.mxu0  ;;  %v6458_v0 = vpack.c.bf16 %v6427_v24, %v6426_v14  ;;  %v7853_v42 = vadd.f32 %v10867_v31, %v10267_v20  ;;  %v10869_v46 = vmax.f32 %v10868_v48, 0.0  ;;  %v7862_v52 = vadd.f32 %v10870_v22, %v10288_v18  ;;  %v10874_v14 = vld [vmem:[#allocation45_spill] sm:$0xff] }
 0x524   : > { %v6369_v27 = vmax.f32 %v6337_v60, 0.0  ;;  %v6335_v25 = vadd.f32 %v10389_v6, %v6296_v54  ;;  %v6301_v19 = vmul.f32 %v10384_v56, %v6198_v23  ;;  %v6190_v3 = vadd.f32 %v6189_v8, %v6029_v7  ;;  %v10876_v60 = vld [vmem:[#allocation14_spill] sm:$0xff]  ;;  %v10878_v8 = vld [vmem:[#allocation12_spill] sm:$0xff] }
 0x525   : > { %8119 = vmatprep.mubr.bf16.mxu1 %v6458_v0  ;;  %v8082_v1 = vpop.f32.mrf.mxu0  ;;  %v10872_v49 = vmax.f32 %v10871_v63, 0.0  ;;  %v7856_v20 = vadd.f32 %v10874_v14, %v10873_v38  ;;  %v6053_v24 = vadd.f32 %v7859_v4, %v10875_v36  ;;  %v10877_v54 = vmax.f32 %v10876_v60, 0.0  ;;  %v10885_v36 = vld [vmem:[#allocation15_spill] sm:$0xff] }
 0x526   : > { %v6433_v26 = vadd.f32 %v6369_v27, %v10869_v46  ;;  %v6367_v58 = vmax.f32 %v6335_v25, 0.0  ;;  %v6299_v21 = vmul.f32 %v10384_v56, %v6190_v3  ;;  %8120 = vmatmul.mubr.bf16.vlgmr.msra.gmra.mxu1 %v6459_v9  ;;  %v6340_v55 = vadd.f32 %v10389_v6, %v6301_v19  ;;  %v10470_v9 = vpop.f32.mrf.mxu1  ;;  %v10881_v46 = vld [vmem:[#allocation46_spill] sm:$0xff] }
 0x527   : > { %v6432_v53 = vadd.f32 %v6368_v34, %v10872_v49  ;;  %v6201_v2 = vadd.f32 %v8082_v1, %v6040_v13  ;;  %v6192_v30 = vpop.f32.mrf.mxu0  ;;  %v10879_v0 = vmax.f32 %v10878_v8, 0.0  ;;  %v10880_v13 = vld [vmem:[#allocation40_spill] sm:$0xff]  ;;  %v10890_v8 = vld [vmem:[#allocation53_spill] sm:$0xff] }
 0x528   : > { %v6193_v57 = vadd.f32 %v6192_v30, %v6032_v11  ;;  %v6431_v23 = vadd.f32 %v6367_v58, %v10877_v54  ;;  %v6338_v18 = vadd.f32 %v10389_v6, %v6299_v21  ;;  %v6045_v1 = vadd.f32 %v7853_v42, %v10880_v13  ;;  %v10484_v63 = vpop.f32.mrf.mxu1  ;;  %v10883_v30 = vld [vmem:[#allocation50_spill] sm:$0xff]  ;;  %v10887_v54 = vld [vmem:[#allocation17_spill] sm:$0xff] }
 0x529   : > { %v6302_v7 = vmul.f32 %v10384_v56, %v6201_v2  ;;  %v8085_v34 = vpop.f32.mrf.mxu0  ;;  %v6430_v27 = vadd.f32 %v6366_v10, %v10879_v0  ;;  %v6461_v25 = vpack.c.bf16 %v6433_v26, %v6432_v53  ;;  %v6372_v4 = vmax.f32 %v6340_v55, 0.0  ;;  %v10882_v55 = vld [vmem:[#allocation41_spill] sm:$0xff] }
 0x52a   : > { %v6300_v19 = vmul.f32 %v10384_v56, %v6193_v57  ;;  %v6214_v3 = vadd.f32 %v8085_v34, %v6053_v24  ;;  %v6056_v58 = vadd.f32 %v7862_v52, %v10881_v46  ;;  %v7871_v21 = vadd.f32 %v10311_v12, %v10309_v62  ;;  %v10884_v12 = vld [vmem:[#allocation56_spill] sm:$0xff] }
 0x52b   : > { %v6341_v11 = vadd.f32 %v10389_v6, %v6302_v7  ;;  %v6205_v31 = vpop.f32.mrf.mxu0  ;;  %v6460_v48 = vpack.c.bf16 %v6431_v23, %v6430_v27  ;;  %v6370_v49 = vmax.f32 %v6338_v18, 0.0  ;;  %v6048_v2 = vadd.f32 %v7856_v20, %v10882_v55  ;;  %v10889_v34 = vld [vmem:[#allocation52_spill] sm:$0xff] }
 0x52c   : > { %v6339_v22 = vadd.f32 %v10389_v6, %v6300_v19  ;;  %v6305_v10 = vmul.f32 %v10384_v56, %v6214_v3  ;;  %v6206_v26 = vadd.f32 %v6205_v31, %v6045_v1  ;;  %v7865_v38 = vadd.f32 %v10883_v30, %v10295_v33  ;;  %v10891_v19 = vld [vmem:[#allocation51_spill] sm:$0xff]  ;;  %v10501_v3 = vpop.f32.mrf.mxu1  ;;  %v10892_v1 = vld [vmem:[#allocation16_spill] sm:$0xff]  ;;  %v10894_v31 = vld [vmem:[#allocation18_spill] sm:$0xff] }
 0x52d   : > { %v6373_v53 = vmax.f32 %v6341_v11, 0.0  ;;  %8123 = vmatprep.mubr.bf16.mxu1 %v6460_v48  ;;  %v8086_v42 = vpop.f32.mrf.mxu0  ;;  %v7874_v57 = vadd.f32 %v10318_v29, %v10884_v12  ;;  %v10886_v24 = vmax.f32 %v10885_v36, 0.0  ;;  %v10888_v23 = vmax.f32 %v10887_v54, 0.0  ;;  %v10897_v30 = vld [vmem:[#allocation54_spill] sm:$0xff] }
 0x52e   : > { %v6371_v52 = vmax.f32 %v6339_v22, 0.0  ;;  %v6303_v14 = vmul.f32 %v10384_v56, %v6206_v26  ;;  %v6217_v62 = vadd.f32 %v8086_v42, %v6056_v58  ;;  %8124 = vmatmul.mubr.bf16.gmra.mxu1 %v6461_v25  ;;  %v6344_v7 = vadd.f32 %v10389_v6, %v6305_v10  ;;  %v10896_v26 = vld [vmem:[#allocation47_spill] sm:$0xff]  ;;  %v10898_v36 = vld [vmem:[#allocation58_spill] sm:$0xff]  ;;  %v10517_v54 = vpop.f32.mrf.mxu1 }
 0x52f   : > { %v6436_v60 = vadd.f32 %v6372_v4, %v10886_v24  ;;  %v6437_v18 = vadd.f32 %v6373_v53, %v10888_v23  ;;  %v6208_v20 = vpop.f32.mrf.mxu0  ;;  %v7868_v33 = vadd.f32 %v10890_v8, %v10889_v34  ;;  %v6069_v25 = vadd.f32 %v7871_v21, %v10891_v19  ;;  %v10899_v24 = vld [vmem:[#allocation59_spill] sm:$0xff] }
 0x530   : > { %v6306_v0 = vmul.f32 %v10384_v56, %v6217_v62  ;;  %v6209_v27 = vadd.f32 %v6208_v20, %v6048_v2  ;;  %v6342_v29 = vadd.f32 %v10389_v6, %v6303_v14  ;;  %v10893_v4 = vmax.f32 %v10892_v1, 0.0  ;;  %v10903_v19 = vld [vmem:[#allocation19_spill] sm:$0xff] }
 0x531   : > { %v8089_v13 = vpop.f32.mrf.mxu0  ;;  %v10895_v48 = vmax.f32 %v10894_v31, 0.0  ;;  %v6463_v58 = vpack.c.bf16 %v6437_v18, %v6436_v60  ;;  %v6061_v53 = vadd.f32 %v7865_v38, %v10896_v26  ;;  %v6376_v42 = vmax.f32 %v6344_v7, 0.0  ;;  %v10900_v7 = vld [vmem:[#allocation49_spill] sm:$0xff]  ;;  %v10908_v26 = vld [vmem:[#allocation20_spill] sm:$0xff] }
 0x532   : > { %v6434_v11 = vadd.f32 %v6370_v49, %v10893_v4  ;;  %v6345_v22 = vadd.f32 %v10389_v6, %v6306_v0  ;;  %v6304_v10 = vmul.f32 %v10384_v56, %v6209_v27  ;;  %v6230_v21 = vadd.f32 %v8089_v13, %v6069_v25 }
 0x533   : > { %v6435_v46 = vadd.f32 %v6371_v52, %v10895_v48  ;;  %v6221_v55 = vpop.f32.mrf.mxu0  ;;  %v6072_v14 = vadd.f32 %v7874_v57, %v10897_v30  ;;  %v7883_v62 = vadd.f32 %v10345_v51, %v10340_v44  ;;  %v7877_v60 = vadd.f32 %v10899_v24, %v10898_v36  ;;  %v10901_v57 = vld [vmem:[#allocation21_spill] sm:$0xff]  ;;  %v10906_v48 = vld [vmem:[#allocation22_spill] sm:$0xff] }
 0x534   : > { %v6377_v49 = vmax.f32 %v6345_v22, 0.0  ;;  %v6343_v12 = vadd.f32 %v10389_v6, %v6304_v10  ;;  %v6222_v52 = vadd.f32 %v6221_v55, %v6061_v53  ;;  %v6374_v23 = vmax.f32 %v6342_v29, 0.0  ;;  %v7905_v10 = vpop.f32.mrf.mxu1 }
 0x535   : > { %v6462_v2 = vpack.c.bf16 %v6435_v46, %v6434_v11  ;;  %v6309_v38 = vmul.f32 %v10384_v56, %v6230_v21  ;;  %v8090_v18 = vpop.f32.mrf.mxu0  ;;  %v6064_v20 = vadd.f32 %v7868_v33, %v10900_v7  ;;  %v10902_v34 = vmax.f32 %v10901_v57, 0.0  ;;  %v10905_v11 = vld [vmem:[#allocation60_spill] sm:$0xff]  ;;  %v10911_v7 = vld [vmem:[#allocation61_spill] sm:$0xff] }
 0x536   : > { %v6375_v44 = vmax.f32 %v6343_v12, 0.0  ;;  %v6307_v51 = vmul.f32 %v10384_v56, %v6222_v52  ;;  %v6233_v0 = vadd.f32 %v8090_v18, %v6072_v14  ;;  %v7880_v27 = vadd.f32 %v10335_v47, %v10330_v61  ;;  %v10910_v14 = vld [vmem:[#allocation55_spill] sm:$0xff] }
 0x537   : > { %8127 = vmatprep.mubr.bf16.mxu1 %v6462_v2  ;;  %v6441_v8 = vadd.f32 %v6377_v49, %v10902_v34  ;;  %v10904_v25 = vmax.f32 %v10903_v19, 0.0  ;;  %v6348_v13 = vadd.f32 %v10389_v6, %v6309_v38  ;;  %v6224_v1 = vpop.f32.mrf.mxu0  ;;  %v6085_v31 = vadd.f32 %v7883_v62, %v10905_v11  ;;  %v7906_v38 = vpop.f32.mrf.mxu1  ;;  %v10912_v34 = vld [vmem:[#allocation57_spill] sm:$0xff]  ;;  %v10917_v11 = vld [vmem:[#allocation26_spill] sm:$0xff] }
 0x538   : > { %8128 = vmatmul.mubr.bf16.gmra.mxu1 %v6463_v58  ;;  %v6310_v4 = vmul.f32 %v10384_v56, %v6233_v0  ;;  %v6225_v33 = vadd.f32 %v6224_v1, %v6064_v20  ;;  %v10907_v46 = vmax.f32 %v10906_v48, 0.0  ;;  %v7886_v58 = vadd.f32 %v10355_v17, %v10350_v5 }
 0x539   : > { %v6440_v29 = vadd.f32 %v6376_v42, %v10904_v25  ;;  %v6346_v61 = vadd.f32 %v10389_v6, %v6307_v51  ;;  %v8093_v47 = vpop.f32.mrf.mxu0  ;;  %v10909_v53 = vmax.f32 %v10908_v26, 0.0  ;;  %v6077_v62 = vadd.f32 %v7877_v60, %v10910_v14  ;;  %v10915_v25 = vld [vmem:[#allocation23_spill] sm:$0xff] }
 0x53a   : > { %v6439_v22 = vadd.f32 %v6375_v44, %v10907_v46  ;;  %v6349_v55 = vadd.f32 %v10389_v6, %v6310_v4  ;;  %v6308_v2 = vmul.f32 %v10384_v56, %v6225_v33  ;;  %v6246_v30 = vadd.f32 %v8093_v47, %v6085_v31  ;;  %v7908_v46 = vpop.f32.mrf.mxu1 }
 0x53b   : > { %v6438_v42 = vadd.f32 %v6374_v23, %v10909_v53  ;;  %v6465_v21 = vpack.c.bf16 %v6441_v8, %v6440_v29  ;;  %v7895_v49 = vadd.f32 %v10422_v16, %v10408_v59  ;;  %v6380_v12 = vmax.f32 %v6348_v13, 0.0  ;;  %v6237_v5 = vpop.f32.mrf.mxu0  ;;  %v10913_v16 = vld [vmem:[#allocation25_spill] sm:$0xff] }
 0x53c   : > { %v6381_v52 = vmax.f32 %v6349_v55, 0.0  ;;  %v6347_v36 = vadd.f32 %v10389_v6, %v6308_v2  ;;  %v6313_v24 = vmul.f32 %v10384_v56, %v6246_v30  ;;  %v6238_v23 = vadd.f32 %v6237_v5, %v6077_v62  ;;  %v10922_v30 = vld [vmem:[#allocation63_spill] sm:$0xff] }
 0x53d   : > { %v6464_v17 = vpack.c.bf16 %v6439_v22, %v6438_v42  ;;  %v6378_v18 = vmax.f32 %v6346_v61, 0.0  ;;  %v6088_v20 = vadd.f32 %v7886_v58, %v10911_v7  ;;  %v8094_v57 = vpop.f32.mrf.mxu0  ;;  %v6080_v60 = vadd.f32 %v7880_v27, %v10912_v34  ;;  %v10919_v58 = vld [vmem:[#allocation24_spill] sm:$0xff] }
 0x53e   : > { %v7889_v59 = vadd.f32 %v10367_v39, %v10360_v40  ;;  %v10914_v8 = vmax.f32 %v10913_v16, 0.0  ;;  %v6379_v51 = vmax.f32 %v6347_v36, 0.0  ;;  %v6311_v0 = vmul.f32 %v10384_v56, %v6238_v23  ;;  %v7909_v36 = vpop.f32.mrf.mxu1 }
 0x53f   : > { %8131 = vmatprep.mubr.bf16.mxu1 %v6464_v17  ;;  %v7892_v19 = vadd.f32 %v10396_v45, %v10379_v15  ;;  %v10916_v29 = vmax.f32 %v10915_v25, 0.0  ;;  %v6352_v1 = vadd.f32 %v10389_v6, %v6313_v24  ;;  %v6249_v4 = vadd.f32 %v8094_v57, %v6088_v20  ;;  %v6240_v27 = vpop.f32.mrf.mxu0  ;;  %v10927_v25 = vld [vmem:[#allocation28_spill] sm:$0xff] }
 0x540   : > { %v6445_v44 = vadd.f32 %v6381_v52, %v10914_v8  ;;  %8132 = vmatmul.mubr.bf16.gmra.mxu1 %v6465_v21  ;;  %v7898_v40 = vadd.f32 %v10451_v35, %v10437_v50  ;;  %v6241_v39 = vadd.f32 %v6240_v27, %v6080_v60  ;;  %v6101_v33 = vadd.f32 %v7895_v49, %v10348_v41  ;;  %v10921_v50 = vld [vmem:[#allocation62_spill] sm:$0xff]  ;;  %v10923_v60 = vld [vmem:[#allocation27_spill] sm:$0xff] }
 0x541   : > { %v6444_v13 = vadd.f32 %v6380_v12, %v10916_v29  ;;  %v10918_v31 = vmax.f32 %v10917_v11, 0.0  ;;  %v6350_v22 = vadd.f32 %v10389_v6, %v6311_v0  ;;  %v6314_v15 = vmul.f32 %v10384_v56, %v6249_v4  ;;  %v8097_v45 = vpop.f32.mrf.mxu0  ;;  %v10929_v29 = vld [vmem:[#allocation30_spill] sm:$0xff]  ;;  %v10931_v27 = vld [vmem:[#allocation39_spill] sm:$0xff]  ;;  %v10932_v11 = vld [vmem:[#allocation64_spill] sm:$0xff] }
 0x542   : > { %v10920_v61 = vmax.f32 %v10919_v58, 0.0  ;;  %v6312_v53 = vmul.f32 %v10384_v56, %v6241_v39  ;;  %v6262_v42 = vadd.f32 %v8097_v45, %v6101_v33  ;;  %v6093_v35 = vadd.f32 %v7889_v59, %v10921_v50 }
 0x543   : > { %v6443_v48 = vadd.f32 %v6379_v51, %v10918_v31  ;;  %v6467_v26 = vpack.c.bf16 %v6445_v44, %v6444_v13  ;;  %v6384_v21 = vmax.f32 %v6352_v1, 0.0  ;;  %v6353_v41 = vadd.f32 %v10389_v6, %v6314_v15  ;;  %v6253_v55 = vpop.f32.mrf.mxu0 }
 0x544   : > { %v6442_v47 = vadd.f32 %v6378_v18, %v10920_v61  ;;  %v6096_v14 = vadd.f32 %v7892_v19, %v10922_v30  ;;  %v6351_v62 = vadd.f32 %v10389_v6, %v6312_v53  ;;  %v6317_v49 = vmul.f32 %v10384_v56, %v6262_v42  ;;  %v10933_v42 = vld [vmem:[#allocation65_spill] sm:$0xff] }
 0x545   : > { %v6254_v12 = vadd.f32 %v6253_v55, %v6093_v35  ;;  %v6104_v5 = vadd.f32 %v7898_v40, %v10353_v43  ;;  %v7901_v17 = vadd.f32 %v10484_v63, %v10470_v9  ;;  %v7907_v52 = vadd.f32 %v7906_v38, %v7905_v10  ;;  %v8098_v18 = vpop.f32.mrf.mxu0  ;;  %v10925_v63 = vld [vmem:[#allocation29_spill] sm:$0xff] }
 0x546   : > { %v6466_v2 = vpack.c.bf16 %v6443_v48, %v6442_v47  ;;  %v6382_v24 = vmax.f32 %v6350_v22, 0.0  ;;  %v6385_v23 = vmax.f32 %v6353_v41, 0.0  ;;  %v7798_v7 = vadd.f32 %v10374_v37, %v10369_v32  ;;  %v10934_v35 = vld [vmem:[#allocation33_spill] sm:$0xff] }
 0x547   : > { %v6383_v20 = vmax.f32 %v6351_v62, 0.0  ;;  %v6315_v57 = vmul.f32 %v10384_v56, %v6254_v12  ;;  %v6265_v34 = vadd.f32 %v8098_v18, %v6104_v5  ;;  %v7904_v43 = vadd.f32 %v10517_v54, %v10501_v3  ;;  %v6256_v8 = vpop.f32.mrf.mxu0 }
 0x548   : > { %8135 = vmatprep.mubr.bf16.mxu1 %v6466_v2  ;;  %v10924_v59 = vmax.f32 %v10923_v60, 0.0  ;;  %v10926_v10 = vmax.f32 %v10925_v63, 0.0  ;;  %v6356_v16 = vadd.f32 %v10389_v6, %v6317_v49  ;;  %v7910_v44 = vadd.f32 %v7909_v36, %v7908_v46 }
 0x549   : > { %8136 = vmatmul.mubr.bf16.gmra.mxu1 %v6467_v26  ;;  %v6354_v32 = vadd.f32 %v10389_v6, %v6315_v57  ;;  %v6318_v37 = vmul.f32 %v10384_v56, %v6265_v34  ;;  %v6257_v51 = vadd.f32 %v6256_v8, %v6096_v14  ;;  %v6117_v0 = vadd.f32 %v7907_v52, %v10372_v28  ;;  %v8101_v19 = vpop.f32.mrf.mxu0  ;;  %v10936_v14 = vld [vmem:[#allocation31_spill] sm:$0xff] }
 0x54a   : > { %v6448_v9 = vadd.f32 %v6384_v21, %v10924_v59  ;;  %v6449_v38 = vadd.f32 %v6385_v23, %v10926_v10  ;;  %v10928_v3 = vmax.f32 %v10927_v25, 0.0  ;;  %v10930_v13 = vmax.f32 %v10929_v29, 0.0 }
 0x54b   : > { %v5959_v40 = vadd.f32 %v7798_v7, %v10931_v27  ;;  %v6357_v39 = vadd.f32 %v10389_v6, %v6318_v37  ;;  %v6316_v33 = vmul.f32 %v10384_v56, %v6257_v51  ;;  %v6109_v31 = vadd.f32 %v7901_v17, %v10932_v11  ;;  %v6269_v28 = vpop.f32.mrf.mxu0  ;;  %v10938_v17 = vld [vmem:[#allocation32_spill] sm:$0xff]  ;;  %v10940_v7 = vld [vmem:[#allocation34_spill] sm:$0xff] }
 0x54c   : > { %v6446_v54 = vadd.f32 %v6382_v24, %v10928_v3  ;;  %v6447_v1 = vadd.f32 %v6383_v20, %v10930_v13  ;;  %v6469_v4 = vpack.c.bf16 %v6449_v38, %v6448_v9  ;;  %v6388_v48 = vmax.f32 %v6356_v16, 0.0  ;;  %v10942_v16 = vld [vmem:[#allocation35_spill] sm:$0xff] }
 0x54d   : > { %v6386_v46 = vmax.f32 %v6354_v32, 0.0  ;;  %v6278_v22 = vadd.f32 %v8101_v19, %v6117_v0  ;;  %v6389_v45 = vmax.f32 %v6357_v39, 0.0  ;;  %v6355_v58 = vadd.f32 %v10389_v6, %v6316_v33  ;;  %v8102_v53 = vpop.f32.mrf.mxu0  ;;  %v10944_v32 = vld [vmem:[#allocation37_spill] sm:$0xff]  ;;  %v10946_v19 = vld [vmem:[#allocation36_spill] sm:$0xff] }
 0x54e   : > { %v6468_v15 = vpack.c.bf16 %v6447_v1, %v6446_v54  ;;  %v6270_v61 = vadd.f32 %v6269_v28, %v6109_v31  ;;  %v6120_v47 = vadd.f32 %v7910_v44, %v5959_v40  ;;  %v6112_v50 = vadd.f32 %v7904_v43, %v10933_v42  ;;  %v10948_v54 = vld [vmem:[#allocation38_spill] sm:$0xff] }
 0x54f   : > { %v6321_v26 = vmul.f32 %v10384_v56, %v6278_v22  ;;  %v10935_v21 = vmax.f32 %v10934_v35, 0.0  ;;  %v6387_v55 = vmax.f32 %v6355_v58, 0.0  ;;  %v10937_v62 = vmax.f32 %v10936_v14, 0.0  ;;  %v6272_v5 = vpop.f32.mrf.mxu0 }
 0x550   : > { %8139 = vmatprep.mubr.bf16.mxu1 %v6468_v15  ;;  %v6319_v2 = vmul.f32 %v10384_v56, %v6270_v61  ;;  %v6281_v30 = vadd.f32 %v8102_v53, %v6120_v47  ;;  %v10939_v52 = vmax.f32 %v10938_v17, 0.0  ;;  %v6273_v18 = vadd.f32 %v6272_v5, %v6112_v50 }
 0x551   : > { %v6453_v41 = vadd.f32 %v6389_v45, %v10935_v21  ;;  %8140 = vmatmul.mubr.bf16.gmra.mxu1 %v6469_v4  ;;  %v6452_v49 = vadd.f32 %v6388_v48, %v10937_v62  ;;  %v6360_v12 = vadd.f32 %v10389_v6, %v6321_v26  ;;  %v10941_v20 = vmax.f32 %v10940_v7, 0.0 }
 0x552   : > { %v6450_v36 = vadd.f32 %v6386_v46, %v10939_v52  ;;  %v6358_v24 = vadd.f32 %v10389_v6, %v6319_v2  ;;  %v6322_v23 = vmul.f32 %v10384_v56, %v6281_v30  ;;  %v6320_v59 = vmul.f32 %v10384_v56, %v6273_v18 }
 0x553   : > { %v6451_v57 = vadd.f32 %v6387_v55, %v10941_v20  ;;  %v6471_v34 = vpack.c.bf16 %v6453_v41, %v6452_v49  ;;  %v6392_v43 = vmax.f32 %v6360_v12, 0.0  ;;  %v10943_v8 = vmax.f32 %v10942_v16, 0.0 }
 0x554   : > { %v6361_v60 = vadd.f32 %v10389_v6, %v6322_v23  ;;  %v6390_v63 = vmax.f32 %v6358_v24, 0.0  ;;  %v6359_v38 = vadd.f32 %v10389_v6, %v6320_v59  ;;  %v10945_v37 = vmax.f32 %v10944_v32, 0.0  ;;  %v10625_v6 = vld [vmem:[%s10715_s14] ss:$0 sm:$0xff] }
 0x555   : > { %v6470_v9 = vpack.c.bf16 %v6451_v57, %v6450_v36  ;;  %v6456_v44 = vadd.f32 %v6392_v43, %v10943_v8  ;;  %v10947_v25 = vmax.f32 %v10946_v19, 0.0  ;;  %v10949_v56 = vmax.f32 %v10948_v54, 0.0 }
 0x556   : > { %v6393_v10 = vmax.f32 %v6361_v60, 0.0  ;;  %v6391_v0 = vmax.f32 %v6359_v38, 0.0 }
 0x557   : > { %8143 = vmatprep.mubr.bf16.mxu1 %v6470_v9  ;;  %v6454_v3 = vadd.f32 %v6390_v63, %v10947_v25 }
 0x558   : > { %v6457_v51 = vadd.f32 %v6393_v10, %v10945_v37  ;;  %v6455_v29 = vadd.f32 %v6391_v0, %v10949_v56 }
 0x559   : > { %8144 = vmatmul.mubr.bf16.gmra.mxu1 %v6471_v34 }
 0x55a   : > { %v6473_v13 = vpack.c.bf16 %v6457_v51, %v6456_v44  ;;  %v6472_v1 = vpack.c.bf16 %v6455_v29, %v6454_v3 }
 0x55c   : > { %8147 = vmatprep.mubr.bf16.mxu1 %v6472_v1 }
 0x561   : > { %8148 = vmatmul.mubr.bf16.gmra.mxu1 %v6473_v13 }
 0x5e6   : > { %v8121_v4 = vpop.f32.mrf.mxu1 }
 0x5e7   : > { %v6588_v27 = vadd.f32 %v8121_v4, %v10625_v6 }
 0x5e8   : > { %v6579_v40 = vpop.f32.mrf.mxu1 }
 0x5e9   : > { %6708 = vst [vmem:[%s10632_s30 + $0x10] sm:$0xff] %v6588_v27  ;;  %v6580_v39 = vadd.f32 %v10625_v6, %v6579_v40 }
 0x5ea   : > { %v8122_v33 = vpop.f32.mrf.mxu1 }
 0x5eb   : > { %6706 = vst [vmem:[%s10632_s30] sm:$0xff] %v6580_v39  ;;  %v6591_v11 = vadd.f32 %v8122_v33, %v10625_v6 }
 0x5ec   : > { %v6582_v31 = vpop.f32.mrf.mxu1 }
 0x5ed   : > { %6709 = vst [vmem:[%s10632_s30 + $0x18] sm:$0xff] %v6591_v11  ;;  %v6583_v48 = vadd.f32 %v10625_v6, %v6582_v31 }
 0x5ee   : > { %v8125_v46 = vpop.f32.mrf.mxu1 }
 0x5ef   : > { %6707 = vst [vmem:[%s10632_s30 + $0x8] sm:$0xff] %v6583_v48  ;;  %v6604_v22 = vadd.f32 %v8125_v46, %v10625_v6 }
 0x5f0   : > { %v6595_v28 = vpop.f32.mrf.mxu1 }
 0x5f1   : > { %6712 = vst [vmem:[%s10632_s30 + $0x30] sm:$0xff] %v6604_v22  ;;  %v6596_v15 = vadd.f32 %v10625_v6, %v6595_v28 }
 0x5f2   : > { %v8126_v45 = vpop.f32.mrf.mxu1 }
 0x5f3   : > { %6710 = vst [vmem:[%s10632_s30 + $0x20] sm:$0xff] %v6596_v15  ;;  %v6607_v58 = vadd.f32 %v8126_v45, %v10625_v6 }
 0x5f4   : > { %v6598_v61 = vpop.f32.mrf.mxu1 }
 0x5f5   : > { %6713 = vst [vmem:[%s10632_s30 + $0x38] sm:$0xff] %v6607_v58  ;;  %v6599_v47 = vadd.f32 %v10625_v6, %v6598_v61 }
 0x5f7   : > { %6711 = vst [vmem:[%s10632_s30 + $0x28] sm:$0xff] %v6599_v47 }
 0x5f8   : > { %v8129_v26 = vpop.f32.mrf.mxu1 }
 0x5f9   : > { %v6620_v53 = vadd.f32 %v8129_v26, %v10625_v6 }
 0x5fa   : > { %v6611_v42 = vpop.f32.mrf.mxu1 }
 0x5fb   : > { %6716 = vst [vmem:[%s10632_s30 + $0x50] sm:$0xff] %v6620_v53  ;;  %v6612_v50 = vadd.f32 %v10625_v6, %v6611_v42 }
 0x5fc   : > { %v8130_v35 = vpop.f32.mrf.mxu1 }
 0x5fd   : > { %6714 = vst [vmem:[%s10632_s30 + $0x40] sm:$0xff] %v6612_v50  ;;  %v6623_v21 = vadd.f32 %v8130_v35, %v10625_v6 }
 0x5fe   : > { %v6614_v41 = vpop.f32.mrf.mxu1 }
 0x5ff   : > { %6717 = vst [vmem:[%s10632_s30 + $0x58] sm:$0xff] %v6623_v21  ;;  %v6615_v55 = vadd.f32 %v10625_v6, %v6614_v41 }
 0x600   : > { %v8133_v2 = vpop.f32.mrf.mxu1 }
 0x601   : > { %6715 = vst [vmem:[%s10632_s30 + $0x48] sm:$0xff] %v6615_v55  ;;  %v6636_v30 = vadd.f32 %v8133_v2, %v10625_v6 }
 0x602   : > { %v6627_v14 = vpop.f32.mrf.mxu1 }
 0x603   : > { %6720 = vst [vmem:[%s10632_s30 + $0x70] sm:$0xff] %v6636_v30  ;;  %v6628_v62 = vadd.f32 %v10625_v6, %v6627_v14 }
 0x604   : > { %v8134_v49 = vpop.f32.mrf.mxu1 }
 0x605   : > { %6718 = vst [vmem:[%s10632_s30 + $0x60] sm:$0xff] %v6628_v62  ;;  %v6639_v12 = vadd.f32 %v8134_v49, %v10625_v6 }
 0x606   : > { %v6630_v5 = vpop.f32.mrf.mxu1 }
 0x607   : > { %6721 = vst [vmem:[%s10632_s30 + $0x78] sm:$0xff] %v6639_v12  ;;  %v6631_v17 = vadd.f32 %v10625_v6, %v6630_v5 }
 0x609   : > { %v8137_v52 = vpop.f32.mrf.mxu1  ;;  %6719 = vst [vmem:[%s10632_s30 + $0x68] sm:$0xff] %v6631_v17 }
 0x60a   : > { %v6652_v36 = vadd.f32 %v8137_v52, %v10625_v6 }
 0x60b   : > { %v6643_v24 = vpop.f32.mrf.mxu1 }
 0x60c   : > { %6724 = vst [vmem:[%s10632_s30 + $0x90] sm:$0xff] %v6652_v36  ;;  %v6644_v23 = vadd.f32 %v10625_v6, %v6643_v24 }
 0x60d   : > { %v8138_v18 = vpop.f32.mrf.mxu1 }
 0x60e   : > { %6722 = vst [vmem:[%s10632_s30 + $0x80] sm:$0xff] %v6644_v23  ;;  %v6655_v7 = vadd.f32 %v8138_v18, %v10625_v6 }
 0x60f   : > { %v6646_v20 = vpop.f32.mrf.mxu1 }
 0x610   : > { %6725 = vst [vmem:[%s10632_s30 + $0x98] sm:$0xff] %v6655_v7  ;;  %v6647_v57 = vadd.f32 %v10625_v6, %v6646_v20 }
 0x611   : > { %v8141_v34 = vpop.f32.mrf.mxu1 }
 0x612   : > { %6723 = vst [vmem:[%s10632_s30 + $0x88] sm:$0xff] %v6647_v57  ;;  %v6668_v43 = vadd.f32 %v8141_v34, %v10625_v6 }
 0x613   : > { %v6659_v60 = vpop.f32.mrf.mxu1 }
 0x614   : > { %6728 = vst [vmem:[%s10632_s30 + $0xb0] sm:$0xff] %v6668_v43  ;;  %v6660_v59 = vadd.f32 %v10625_v6, %v6659_v60 }
 0x615   : > { %v8142_v9 = vpop.f32.mrf.mxu1 }
 0x616   : > { %6726 = vst [vmem:[%s10632_s30 + $0xa0] sm:$0xff] %v6660_v59  ;;  %v6671_v63 = vadd.f32 %v8142_v9, %v10625_v6 }
 0x617   : > { %v6662_v10 = vpop.f32.mrf.mxu1 }
 0x618   : > { %6729 = vst [vmem:[%s10632_s30 + $0xb8] sm:$0xff] %v6671_v63  ;;  %v6663_v38 = vadd.f32 %v10625_v6, %v6662_v10 }
 0x619   : > { %v8145_v16 = vpop.f32.mrf.mxu1 }
 0x61a   : > { %6727 = vst [vmem:[%s10632_s30 + $0xa8] sm:$0xff] %v6663_v38  ;;  %v6684_v8 = vadd.f32 %v8145_v16, %v10625_v6 }
 0x61b   : > { %v6675_v44 = vpop.f32.mrf.mxu1 }
 0x61c   : > { %6732 = vst [vmem:[%s10632_s30 + $0xd0] sm:$0xff] %v6684_v8  ;;  %v6676_v32 = vadd.f32 %v10625_v6, %v6675_v44 }
 0x61d   : > { %v8146_v37 = vpop.f32.mrf.mxu1 }
 0x61e   : > { %6730 = vst [vmem:[%s10632_s30 + $0xc0] sm:$0xff] %v6676_v32  ;;  %v6687_v51 = vadd.f32 %v8146_v37, %v10625_v6 }
 0x61f   : > { %v6678_v0 = vpop.f32.mrf.mxu1 }
 0x620   : > { %6733 = vst [vmem:[%s10632_s30 + $0xd8] sm:$0xff] %v6687_v51  ;;  %v6679_v19 = vadd.f32 %v10625_v6, %v6678_v0 }
 0x621   : > { %v8149_v25 = vpop.f32.mrf.mxu1 }
 0x622   : > { %6731 = vst [vmem:[%s10632_s30 + $0xc8] sm:$0xff] %v6679_v19  ;;  %v6700_v3 = vadd.f32 %v8149_v25, %v10625_v6 }
 0x623   : > { %v6691_v54 = vpop.f32.mrf.mxu1 }
 0x624   : > { %6736 = vst [vmem:[%s10632_s30 + $0xf0] sm:$0xff] %v6700_v3  ;;  %v6692_v56 = vadd.f32 %v10625_v6, %v6691_v54 }
 0x625   : > { %v8150_v29 = vpop.f32.mrf.mxu1 }
 0x626   : > { %6734 = vst [vmem:[%s10632_s30 + $0xe0] sm:$0xff] %v6692_v56  ;;  %v6703_v13 = vadd.f32 %v8150_v29, %v10625_v6 }
 0x627   : > { %v6694_v1 = vpop.f32.mrf.mxu1 }
 0x628   : > { %6737 = vst [vmem:[%s10632_s30 + $0xf8] sm:$0xff] %v6703_v13  ;;  %v6695_v4 = vadd.f32 %v10625_v6, %v6694_v1 }
 0x62a   : > { %6735 = vst [vmem:[%s10632_s30 + $0xe8] sm:$0xff] %v6695_v4 }
 0x62b PF: > { %s25_s18 = sadd.s32 1, %s8400_s18  }
 0x62c   : > { %p22_p4 = scmp.ge.s32.totalorder %s25_s18, 4  }
 0x62e   :  { %24 = sbr.rel (!%p22_p4) target bundleno = 1 (0x1), region = 186 }

</bundles_post_ra>
